<compile_context>
chip_gen: v6e
topology: v6e:2x2x1
jax: 0.10.0
libtpu: 0.0.40
codegen_flags: <defaults>
</compile_context>

<pallas_src>
import functools
import math

import jax
import jax.numpy as jnp
from jax.experimental import pallas as pl
from jax.experimental.pallas import tpu as pltpu


def _round_up(x, n):
    return ((x + n - 1) // n) * n


def deep_ritz_kernel(x_ref, wa_ref, wb_ref, wc_ref,
                     b1_ref, b2_ref, b3_ref, o_ref, *, seg, out_w):
    P = seg
    x0 = x_ref[...]                                                   # [tb, in_dim]

    # t0 = x0 @ [w1 | w2a | w3a]   (one fused MXU op, N = 3P lanes)
    t0 = jnp.dot(x0, wa_ref[...], preferred_element_type=jnp.float32)  # [tb, 3P]

    # y1 = relu(linear1(x0))   (padded columns are exactly 0)
    y1 = jnp.maximum(t0[:, :P] + b1_ref[...], 0.0)                    # [tb, P]

    # t1 = y1 @ [w2b | w3b]
    t1 = jnp.dot(y1, wb_ref[...], preferred_element_type=jnp.float32)  # [tb, 2P]

    # y2 = relu(linear2(cat(x0, y1)))
    y2 = jnp.maximum(t0[:, P:2 * P] + t1[:, :P] + b2_ref[...], 0.0)   # [tb, P]

    # y3 = linear3(cat(x0, y1, y2))  (computed P-wide; only out_w cols stored)
    y3 = (t0[:, 2 * P:] + t1[:, P:]
          + jnp.dot(y2, wc_ref[...], preferred_element_type=jnp.float32)
          + b3_ref[...])                                              # [tb, P]

    # Narrow store: only the real (8-padded) output columns hit HBM.
    o_ref[...] = y3[:, :out_w].astype(o_ref.dtype)


def pack_params(params):
    """One-time packing of torch-layout weights into fused, lane-aligned blocks."""
    w1, b1 = params["linear1"]   # w1: [m, in_dim]
    w2, b2 = params["linear2"]   # w2: [m, in_dim + m]
    w3, b3 = params["linear3"]   # w3: [out_dim, in_dim + 2m]
    m, in_dim = w1.shape
    out_dim = w3.shape[0]

    # Internal segment width: each of y1 / y2 / y3 is P columns in-kernel.
    P = _round_up(max(m, out_dim), 128)

    def pad_cols(a, cols):
        return jnp.pad(a, ((0, 0), (0, cols - a.shape[1])))

    # Transpose to [in, out] and split the concatenated input dims.
    w1_t = w1.T                                   # [in_dim, m]
    w2_t = w2.T
    w2a, w2b = w2_t[:in_dim], w2_t[in_dim:]       # [in_dim, m], [m, m]
    w3_t = w3.T
    w3a = w3_t[:in_dim]                           # [in_dim, out_dim]
    w3b = w3_t[in_dim:in_dim + m]                 # [m, out_dim]
    w3c = w3_t[in_dim + m:]                       # [m, out_dim]

    # Fused, zero-padded weights (exact: padded rows/cols multiply zeros).
    wa = jnp.concatenate(
        [pad_cols(w1_t, P), pad_cols(w2a, P), pad_cols(w3a, P)], axis=1)   # [in_dim, 3P]
    wb = jnp.concatenate([pad_cols(w2b, P), pad_cols(w3b, P)], axis=1)     # [m, 2P]
    wb = jnp.pad(wb, ((0, P - m), (0, 0)))                                 # [P, 2P]
    wc = jnp.pad(w3c, ((0, P - m), (0, P - out_dim)))                      # [P, P]

    b1p = jnp.pad(b1, (0, P - m)).reshape(1, P)
    b2p = jnp.pad(b2, (0, P - m)).reshape(1, P)
    b3p = jnp.pad(b3, (0, P - out_dim)).reshape(1, P)

    return (wa, wb, wc, b1p, b2p, b3p)


@functools.partial(jax.jit,
                   static_argnames=("out_dim", "batch_tile", "core_parallel"))
def deep_ritz_forward(x, packed, *, out_dim, batch_tile=1024,
                      core_parallel=False):
    """x: [B, in_dim] float32. packed: output of pack_params()."""
    wa, wb, wc, b1p, b2p, b3p = packed
    B, in_dim = x.shape
    P = b1p.shape[1]
    dtype = x.dtype

    # Output width: next multiple of 8 (masked 8-lane vst is fine; reviewer #1).
    out_pad = _round_up(out_dim, 8)

    # Batch tiling: tile is a multiple of 8 (f32 sublane); pad batch to a
    # whole number of tiles so any batch size is accepted.
    # ~4 KB/row of f32 intermediates => tb=1024 uses ~4 MiB VMEM (safe on
    # v5e's 16 MiB scoped default and v7x's 32 MiB scoped / 64 MiB physical).
    tb = _round_up(min(batch_tile, _round_up(B, 8)), 8)
    Bp = _round_up(B, tb)
    if Bp != B:
        x = jnp.pad(x, ((0, Bp - B), (0, 0)))
    grid = (Bp // tb,)

    # Constant-index blocks: same block every grid step -> DMA'd only once.
    const = lambda shape: pl.BlockSpec(shape, lambda i: (0, 0))

    # v7x: CORE_PARALLEL splits batch tiles across the two TensorCores.
    # Plain "parallel" is kept as the portable default (single-TC v5e/v6e).
    if core_parallel:
        dims = (pltpu.CORE_PARALLEL,)
    else:
        dims = ("parallel",)

    # Advisory cost hint: this kernel is HBM-bandwidth bound, not FLOP bound.
    flops = 2 * Bp * (in_dim * 3 * P + P * 2 * P + P * P)
    bytes_accessed = 4 * (Bp * in_dim + Bp * out_pad
                          + wa.size + wb.size + wc.size + 3 * P)

    out = pl.pallas_call(
        functools.partial(deep_ritz_kernel, seg=P, out_w=out_pad),
        out_shape=jax.ShapeDtypeStruct((Bp, out_pad), dtype),
        grid_spec=pltpu.PrefetchScalarGridSpec(
            num_scalar_prefetch=0,
            grid=grid,
            in_specs=[
                pl.BlockSpec((tb, in_dim), lambda i: (i, 0)),   # x
                const((in_dim, 3 * P)),                         # wa = [w1|w2a|w3a]
                const((P, 2 * P)),                              # wb = [w2b|w3b]
                const((P, P)),                                  # wc = w3c
                const((1, P)),                                  # b1
                const((1, P)),                                  # b2
                const((1, P)),                                  # b3
            ],
            # Last block dim == full array dim (out_pad), so the (.,128)
            # divisibility rule is waived; store is a narrow masked vst.
            out_specs=pl.BlockSpec((tb, out_pad), lambda i: (i, 0)),
        ),
        compiler_params=pltpu.CompilerParams(dimension_semantics=dims),
        cost_estimate=pl.CostEstimate(flops=flops, transcendentals=0,
                                      bytes_accessed=bytes_accessed),
    )(x, wa, wb, wc, b1p, b2p, b3p)

    # Cheap now: only 8 columns and the batch-pad rows get sliced off.
    return out[:B, :out_dim]


def init_params(key, in_dim, m, out_dim):
    """Deterministic init matching torch.nn.Linear's default U(-1/sqrt(fan_in), ...)."""
    def linear_init(k, out_f, in_f):
        kw, kb = jax.random.split(k)
        bound = 1.0 / math.sqrt(in_f)
        w = jax.random.uniform(kw, (out_f, in_f), jnp.float32, -bound, bound)
        b = jax.random.uniform(kb, (out_f,), jnp.float32, -bound, bound)
        return w, b

    k1, k2, k3 = jax.random.split(key, 3)
    return {
        "linear1": linear_init(k1, m, in_dim),
        "linear2": linear_init(k2, m, in_dim + m),
        "linear3": linear_init(k3, out_dim, in_dim + 2 * m),
    }


def deep_ritz_reference(x, params):
    """Pure-JAX reference reproducing the PyTorch forward exactly."""
    w1, b1 = params["linear1"]
    w2, b2 = params["linear2"]
    w3, b3 = params["linear3"]
    x0 = x
    y1 = jax.nn.relu(x0 @ w1.T + b1)
    x1 = jnp.concatenate((x0, y1), axis=1)
    y2 = jax.nn.relu(x1 @ w2.T + b2)
    x2 = jnp.concatenate((x1, y2), axis=1)
    return x2 @ w3.T + b3


if __name__ == "__main__":
    in_dim, m, out_dim = 4, 32, 2
    batch = 2500   # not a multiple of the tile -> exercises batch padding; 3 grid steps

    key = jax.random.PRNGKey(0)
    kx, kp = jax.random.split(key)
    x = jax.random.normal(kx, (batch, in_dim), jnp.float32)
    params = init_params(kp, in_dim, m, out_dim)

    packed = pack_params(params)                      # packed once, reused per call
    out = deep_ritz_forward(x, packed, out_dim=out_dim, batch_tile=1024)
    out = jax.block_until_ready(out)

    ref = deep_ritz_reference(x, params)
    assert out.shape == (batch, out_dim)
    assert jnp.allclose(out, ref, atol=1e-4, rtol=1e-4), "mismatch vs reference"

    print("KERNEL_OK")
</pallas_src>

<mosaic_0001>
module attributes {stable_mosaic.version = 11 : i64} {
  func.func @deep_ritz_kernel(%arg0: i32, %arg1: memref<1024x4xf32, #tpu.memory_space<vmem>>, %arg2: memref<4x384xf32, #tpu.memory_space<vmem>>, %arg3: memref<128x256xf32, #tpu.memory_space<vmem>>, %arg4: memref<128x128xf32, #tpu.memory_space<vmem>>, %arg5: memref<1x128xf32, #tpu.memory_space<vmem>>, %arg6: memref<1x128xf32, #tpu.memory_space<vmem>>, %arg7: memref<1x128xf32, #tpu.memory_space<vmem>>, %arg8: memref<1024x8xf32, #tpu.memory_space<vmem>>) attributes {dimension_semantics = [#tpu.dimension_semantics<parallel>], iteration_bounds = array<i64: 3>, scalar_prefetch = 0 : i64, scratch_operands = 0 : i64, tpu.core_type = #tpu.core_type<tc>, window_params = [{transform_indices = @transform_0, window_bounds = array<i64: 1024, 4>}, {pipeline_mode = #tpu.pipeline_mode<synchronous>, transform_indices = @transform_1, window_bounds = array<i64: 4, 384>}, {pipeline_mode = #tpu.pipeline_mode<synchronous>, transform_indices = @transform_2, window_bounds = array<i64: 128, 256>}, {pipeline_mode = #tpu.pipeline_mode<synchronous>, transform_indices = @transform_3, window_bounds = array<i64: 128, 128>}, {pipeline_mode = #tpu.pipeline_mode<synchronous>, transform_indices = @transform_4, window_bounds = array<i64: 1, 128>}, {pipeline_mode = #tpu.pipeline_mode<synchronous>, transform_indices = @transform_5, window_bounds = array<i64: 1, 128>}, {pipeline_mode = #tpu.pipeline_mode<synchronous>, transform_indices = @transform_6, window_bounds = array<i64: 1, 128>}, {transform_indices = @transform_7, window_bounds = array<i64: 1024, 8>}]} {
    %c0 = arith.constant 0 : index
    %c0_0 = arith.constant 0 : index
    %0 = vector.load %arg1[%c0, %c0_0] : memref<1024x4xf32, #tpu.memory_space<vmem>>, vector<1024x4xf32>
    %c0_1 = arith.constant 0 : index
    %c0_2 = arith.constant 0 : index
    %1 = vector.load %arg2[%c0_1, %c0_2] : memref<4x384xf32, #tpu.memory_space<vmem>>, vector<4x384xf32>
    %cst = arith.constant dense<0.000000e+00> : vector<1024x384xf32>
    %2 = tpu.matmul %0, %1, %cst {dimension_numbers = #tpu.dot_dimension_numbers<[1], [0], [0], [1], [0, 0, 1, 1], [], []>} : vector<1024x4xf32>, vector<4x384xf32>, vector<1024x384xf32> -> vector<1024x384xf32>
    %3 = vector.extract_strided_slice %2 {offsets = [0, 0], sizes = [1024, 128], strides = [1, 1]} : vector<1024x384xf32> to vector<1024x128xf32>
    %c0_3 = arith.constant 0 : index
    %c0_4 = arith.constant 0 : index
    %4 = vector.load %arg5[%c0_3, %c0_4] : memref<1x128xf32, #tpu.memory_space<vmem>>, vector<1x128xf32>
    %5 = vector.broadcast %4 : vector<1x128xf32> to vector<1024x128xf32>
    %6 = arith.addf %3, %5 : vector<1024x128xf32>
    %cst_5 = arith.constant 0.000000e+00 : f32
    %7 = vector.broadcast %cst_5 : f32 to vector<1024x128xf32>
    %8 = arith.maximumf %6, %7 : vector<1024x128xf32>
    %c0_6 = arith.constant 0 : index
    %c0_7 = arith.constant 0 : index
    %9 = vector.load %arg3[%c0_6, %c0_7] : memref<128x256xf32, #tpu.memory_space<vmem>>, vector<128x256xf32>
    %cst_8 = arith.constant dense<0.000000e+00> : vector<1024x256xf32>
    %10 = tpu.matmul %8, %9, %cst_8 {dimension_numbers = #tpu.dot_dimension_numbers<[1], [0], [0], [1], [0, 0, 1, 1], [], []>} : vector<1024x128xf32>, vector<128x256xf32>, vector<1024x256xf32> -> vector<1024x256xf32>
    %11 = vector.extract_strided_slice %2 {offsets = [0, 128], sizes = [1024, 128], strides = [1, 1]} : vector<1024x384xf32> to vector<1024x128xf32>
    %12 = vector.extract_strided_slice %10 {offsets = [0, 0], sizes = [1024, 128], strides = [1, 1]} : vector<1024x256xf32> to vector<1024x128xf32>
    %13 = arith.addf %11, %12 : vector<1024x128xf32>
    %c0_9 = arith.constant 0 : index
    %c0_10 = arith.constant 0 : index
    %14 = vector.load %arg6[%c0_9, %c0_10] : memref<1x128xf32, #tpu.memory_space<vmem>>, vector<1x128xf32>
    %15 = vector.broadcast %14 : vector<1x128xf32> to vector<1024x128xf32>
    %16 = arith.addf %13, %15 : vector<1024x128xf32>
    %cst_11 = arith.constant 0.000000e+00 : f32
    %17 = vector.broadcast %cst_11 : f32 to vector<1024x128xf32>
    %18 = arith.maximumf %16, %17 : vector<1024x128xf32>
    %19 = vector.extract_strided_slice %2 {offsets = [0, 256], sizes = [1024, 128], strides = [1, 1]} : vector<1024x384xf32> to vector<1024x128xf32>
    %20 = vector.extract_strided_slice %10 {offsets = [0, 128], sizes = [1024, 128], strides = [1, 1]} : vector<1024x256xf32> to vector<1024x128xf32>
    %21 = arith.addf %19, %20 : vector<1024x128xf32>
    %c0_12 = arith.constant 0 : index
    %c0_13 = arith.constant 0 : index
    %22 = vector.load %arg4[%c0_12, %c0_13] : memref<128x128xf32, #tpu.memory_space<vmem>>, vector<128x128xf32>
    %cst_14 = arith.constant dense<0.000000e+00> : vector<1024x128xf32>
    %23 = tpu.matmul %18, %22, %cst_14 {dimension_numbers = #tpu.dot_dimension_numbers<[1], [0], [0], [1], [0, 0, 1, 1], [], []>} : vector<1024x128xf32>, vector<128x128xf32>, vector<1024x128xf32> -> vector<1024x128xf32>
    %24 = arith.addf %21, %23 : vector<1024x128xf32>
    %c0_15 = arith.constant 0 : index
    %c0_16 = arith.constant 0 : index
    %25 = vector.load %arg7[%c0_15, %c0_16] : memref<1x128xf32, #tpu.memory_space<vmem>>, vector<1x128xf32>
    %26 = vector.broadcast %25 : vector<1x128xf32> to vector<1024x128xf32>
    %27 = arith.addf %24, %26 : vector<1024x128xf32>
    %28 = vector.extract_strided_slice %27 {offsets = [0, 0], sizes = [1024, 8], strides = [1, 1]} : vector<1024x128xf32> to vector<1024x8xf32>
    %c0_17 = arith.constant 0 : index
    %c0_18 = arith.constant 0 : index
    %29 = vector.load %arg8[%c0_17, %c0_18] : memref<1024x8xf32, #tpu.memory_space<vmem>>, vector<1024x8xf32>
    tpu.vector_store %arg8[%c0_17, %c0_18], %28 {strides = array<i32>} : memref<1024x8xf32, #tpu.memory_space<vmem>>, vector<1024x8xf32>,
    return
  }
  func.func @transform_0(%arg0: i32) -> (i32, i32) {
    %c0_i32 = arith.constant 0 : i32
    %c0_i32_0 = arith.constant 0 : i32
    return %arg0, %c0_i32 : i32, i32
  }
  func.func @transform_1(%arg0: i32) -> (i32, i32) {
    %c0_i32 = arith.constant 0 : i32
    %c0_i32_0 = arith.constant 0 : i32
    %c0_i32_1 = arith.constant 0 : i32
    return %c0_i32, %c0_i32_0 : i32, i32
  }
  func.func @transform_2(%arg0: i32) -> (i32, i32) {
    %c0_i32 = arith.constant 0 : i32
    %c0_i32_0 = arith.constant 0 : i32
    %c0_i32_1 = arith.constant 0 : i32
    return %c0_i32, %c0_i32_0 : i32, i32
  }
  func.func @transform_3(%arg0: i32) -> (i32, i32) {
    %c0_i32 = arith.constant 0 : i32
    %c0_i32_0 = arith.constant 0 : i32
    %c0_i32_1 = arith.constant 0 : i32
    return %c0_i32, %c0_i32_0 : i32, i32
  }
  func.func @transform_4(%arg0: i32) -> (i32, i32) {
    %c0_i32 = arith.constant 0 : i32
    %c0_i32_0 = arith.constant 0 : i32
    %c0_i32_1 = arith.constant 0 : i32
    return %c0_i32, %c0_i32_0 : i32, i32
  }
  func.func @transform_5(%arg0: i32) -> (i32, i32) {
    %c0_i32 = arith.constant 0 : i32
    %c0_i32_0 = arith.constant 0 : i32
    %c0_i32_1 = arith.constant 0 : i32
    return %c0_i32, %c0_i32_0 : i32, i32
  }
  func.func @transform_6(%arg0: i32) -> (i32, i32) {
    %c0_i32 = arith.constant 0 : i32
    %c0_i32_0 = arith.constant 0 : i32
    %c0_i32_1 = arith.constant 0 : i32
    return %c0_i32, %c0_i32_0 : i32, i32
  }
  func.func @transform_7(%arg0: i32) -> (i32, i32) {
    %c0_i32 = arith.constant 0 : i32
    %c0_i32_0 = arith.constant 0 : i32
    return %arg0, %c0_i32 : i32, i32
  }
}

</mosaic_0001>

<bundles_post_ra>
// kernel: deep_ritz_forward.1
= control target key start
LH: loop header
LB: loop body
LE: loop exit
PB: predicated region body
PF: predicated region fallthrough
CT: control target
= control target key end

     0   :  { %s6223_s24 = smov 0   ;;  %s9651_s0 = inlined_call_operand.vmem [shape: f32[3072,4], index: 0, kind: input, shape index: {}]   ;;  %s9652_s1 = inlined_call_operand.vmem [shape: f32[4,384], index: 1, kind: input, shape index: {}]   ;;  %s9653_s2 = inlined_call_operand.vmem [shape: f32[128,256], index: 2, kind: input, shape index: {}]   ;;  %s9654_s3 = inlined_call_operand.vmem [shape: f32[128,128], index: 3, kind: input, shape index: {}]   ;;  %s9655_s4 = inlined_call_operand.vmem [shape: f32[1,128], index: 4, kind: input, shape index: {}]   ;;  %s9656_s5 = inlined_call_operand.vmem [shape: f32[1,128], index: 5, kind: input, shape index: {}]   ;;  %s9657_s6 = inlined_call_operand.vmem [shape: f32[1,128], index: 6, kind: input, shape index: {}]   ;;  %s9658_s7 = inlined_call_operand.vmem [shape: f32[3072,8], index: 7, kind: output, shape index: {}]  }
   0x1 LB: > { %s5161_s25 = sadd.s32 4294967295, %s6180_s24   ;;  %p5165_p0 = scmp.ge.s32.totalorder %s6180_s24, 1  ;;  %s6180_s24 = sphi %s6223_s24, %s17_s24  }
   0x2   : > { %p238_p1 = scmp.lt.s32.totalorder %s6180_s24, 4 }
   0x4   : > { %p239_p2 = pnand %p5165_p0, %p238_p1 }
   0x6   : > { %242 = sbr.rel (%p239_p2) target bundleno = 1182 (0x49e), region = 48 }
   0xb   : > { %v410_v0 = vld [vmem:[%s9652_s1] sm:$0xff]  ;;  %vm800_vm0 = vcmask 1043456   ;;  %v411_v1 = vld [vmem:[%s9652_s1 + $0x8] sm:$0xf]  ;;  %s5166_s30 = sshll.u32 %s5161_s25, 7  ;;  %v9659_v3 = vmov 0.0  }
   0xc   : > { %v414_v2 = vcombine.high %v410_v0, %v410_v0  ;;  %5707 = vmatprep.subr.msk.mxu1 %vm800_vm0, %v411_v1  ;;  %871 = vmatprep.mubr.f32.mxu0 %v9659_v3  ;;  %p271_p3 = scmp.lt.s32.totalorder %s5166_s30, 383  ;;  %v2639_v4 = vld [vmem:[%s9653_s2 + $0xf8] sm:$0xff]  ;;  %vm415_vm1 = vcmask 31744   ;;  %v2638_v5 = vld [vmem:[%s9653_s2 + $0xf0] sm:$0xff]  ;;  %v2637_v9 = vld [vmem:[%s9653_s2 + $0xe8] sm:$0xff]  ;;  %vm4976_vm2 = vcmask 64512  }
   0xd   : > { %5708 = vmatpush3.msk.msra.mxu1 %vm800_vm0, %v411_v1  ;;  %v2636_v10 = vld [vmem:[%s9653_s2 + $0xe0] sm:$0xff]  ;;  %v2635_v13 = vld [vmem:[%s9653_s2 + $0xd8] sm:$0xff]  ;;  %v2634_v14 = vld [vmem:[%s9653_s2 + $0xd0] sm:$0xff] }
   0xe   : > { %5170 = vmatprep.subr.msk.mxu0 %vm800_vm0, %v414_v2  ;;  %s10215_s30 = smov (!%p271_p3, %s5166_s30), 383  ;;  %2640 = vmatprep.subr.mxu1 %v2639_v4  ;;  %v2633_v15 = vld [vmem:[%s9653_s2 + $0xc8] sm:$0xff]  ;;  %v2632_v18 = vld [vmem:[%s9653_s2 + $0xc0] sm:$0xff]  ;;  %v2631_v19 = vld [vmem:[%s9653_s2 + $0xb8] sm:$0xff] }
   0xf   : > { %5171 = vmatpush1.msk.msra.mxu0 %vm800_vm0, %v410_v0  ;;  %s5167_s10 = sshll.u32 %s10215_s30, 3  ;;  %v2630_v20 = vld [vmem:[%s9653_s2 + $0xb0] sm:$0xff]  ;;  %v2629_v23 = vld [vmem:[%s9653_s2 + $0xa8] sm:$0xff]  ;;  %v2628_v24 = vld [vmem:[%s9653_s2 + $0xa0] sm:$0xff] }
  0x10   : > { %s6249_s13 = scalar_lea.vmem %s9651_s0, %s5167_s10  ;;  %v2627_v25 = vld [vmem:[%s9653_s2 + $0x98] sm:$0xff]  ;;  %v2626_v28 = vld [vmem:[%s9653_s2 + $0x90] sm:$0xff]  ;;  %v2625_v29 = vld [vmem:[%s9653_s2 + $0x88] sm:$0xff]  ;;  %s8715_s27 = scalar_lea.vmem %s9658_s7, %s5167_s10 }
  0x11   : > { %v282_v6 = vld [vmem:[%s6249_s13] sm:$0xff]  ;;  %v283_v7 = vld [vmem:[%s6249_s13 + $0x8] sm:$0xff]  ;;  %v284_v8 = vld [vmem:[%s6249_s13 + $0x10] sm:$0xff] }
  0x12   : > { %5172 = vmatmul.mubr.msk.f32.vlgmr.msra.gmra.mxu0 %vm415_vm1, %v282_v6  ;;  %5709 = vmatprep.mubr.msk.f32.mxu1 %vm415_vm1, %v282_v6  ;;  %v285_v11 = vld [vmem:[%s6249_s13 + $0x18] sm:$0xff]  ;;  %v286_v12 = vld [vmem:[%s6249_s13 + $0x20] sm:$0xff]  ;;  %v287_v16 = vld [vmem:[%s6249_s13 + $0x28] sm:$0xff] }
  0x13   : > { %5710 = vmatmul.mubr.msk.f32.vlgmr.msra.gmra.mxu1 %vm415_vm1, %v283_v7  ;;  %877 = vmatprep.mubr.f32.mxu0 %v9659_v3  ;;  %v288_v17 = vld [vmem:[%s6249_s13 + $0x30] sm:$0xff]  ;;  %v289_v21 = vld [vmem:[%s6249_s13 + $0x38] sm:$0xff]  ;;  %v290_v22 = vld [vmem:[%s6249_s13 + $0x40] sm:$0xff] }
  0x14   : > { %2641 = vmatpush1.msra.mxu1 %v2638_v5  ;;  %5712 = vmatprep.mubr.msk.f32.mxu1 %vm415_vm1, %v284_v8  ;;  %v291_v26 = vld [vmem:[%s6249_s13 + $0x48] sm:$0xff]  ;;  %v292_v27 = vld [vmem:[%s6249_s13 + $0x50] sm:$0xff]  ;;  %v2624_v30 = vld [vmem:[%s9653_s2 + $0x80] sm:$0xff] }
  0x15   : > { %2642 = vmatprep.subr.mxu1 %v2637_v9  ;;  %v293_v31 = vld [vmem:[%s6249_s13 + $0x58] sm:$0xff]  ;;  %v294_v32 = vld [vmem:[%s6249_s13 + $0x60] sm:$0xff]  ;;  %v2622_v34 = vld [vmem:[%s9653_s2 + $0x70] sm:$0xff] }
  0x16   : > { %5173 = vmatmul.mubr.msk.f32.gmra.mxu0 %vm415_vm1, %v283_v7  ;;  %2643 = vmatpush1.msra.mxu1 %v2636_v10  ;;  %v2623_v33 = vld [vmem:[%s9653_s2 + $0x78] sm:$0xff]  ;;  %v295_v35 = vld [vmem:[%s6249_s13 + $0x68] sm:$0xff]  ;;  %v296_v36 = vld [vmem:[%s6249_s13 + $0x70] sm:$0xff] }
  0x17   : > { %5713 = vmatmul.mubr.msk.f32.gmra.mxu1 %vm415_vm1, %v285_v11  ;;  %883 = vmatprep.mubr.f32.mxu0 %v9659_v3  ;;  %v2621_v37 = vld [vmem:[%s9653_s2 + $0x68] sm:$0xff]  ;;  %v2620_v38 = vld [vmem:[%s9653_s2 + $0x60] sm:$0xff]  ;;  %v297_v39 = vld [vmem:[%s6249_s13 + $0x78] sm:$0xff] }
  0x18   : > { %5715 = vmatprep.mubr.msk.f32.mxu1 %vm415_vm1, %v286_v12  ;;  %2644 = vmatprep.subr.mxu1 %v2635_v13  ;;  %v6354_v40 = vld [vmem:[%s6249_s13 + $0x80] sm:$0xff]  ;;  %v6362_v41 = vld [vmem:[%s6249_s13 + $0x88] sm:$0xff]  ;;  %v6365_v42 = vld [vmem:[%s6249_s13 + $0x90] sm:$0xff] }
  0x19   : > { %2645 = vmatpush1.msra.mxu1 %v2634_v14  ;;  %v2619_v43 = vld [vmem:[%s9653_s2 + $0x58] sm:$0xff]  ;;  %v2618_v44 = vld [vmem:[%s9653_s2 + $0x50] sm:$0xff]  ;;  %v6383_v46 = vld [vmem:[%s6249_s13 + $0xa0] sm:$0xff] }
  0x1a   : > { %5174 = vmatmul.mubr.msk.f32.gmra.mxu0 %vm415_vm1, %v284_v8  ;;  %2646 = vmatprep.subr.mxu1 %v2633_v15  ;;  %v6380_v45 = vld [vmem:[%s6249_s13 + $0x98] sm:$0xff]  ;;  %v6392_v47 = vld [vmem:[%s6249_s13 + $0xa8] sm:$0xff]  ;;  %v6395_v48 = vld [vmem:[%s6249_s13 + $0xb0] sm:$0xff] }
  0x1b   : > { %5716 = vmatmul.mubr.msk.f32.gmra.mxu1 %vm415_vm1, %v287_v16  ;;  %889 = vmatprep.mubr.f32.mxu0 %v9659_v3  ;;  %v6404_v49 = vld [vmem:[%s6249_s13 + $0xb8] sm:$0xff]  ;;  %v6407_v50 = vld [vmem:[%s6249_s13 + $0xc0] sm:$0xff]  ;;  %v6416_v51 = vld [vmem:[%s6249_s13 + $0xc8] sm:$0xff] }
  0x1c   : > { %5718 = vmatprep.mubr.msk.f32.mxu1 %vm415_vm1, %v288_v17  ;;  %2647 = vmatpush1.msra.mxu1 %v2632_v18  ;;  %v6419_v52 = vld [vmem:[%s6249_s13 + $0xd0] sm:$0xff]  ;;  %v2617_v53 = vld [vmem:[%s9653_s2 + $0x48] sm:$0xff]  ;;  %v2616_v54 = vld [vmem:[%s9653_s2 + $0x40] sm:$0xff] }
  0x1d   : > { %2648 = vmatprep.subr.mxu1 %v2631_v19  ;;  %v6434_v55 = vld [vmem:[%s6249_s13 + $0xd8] sm:$0xff]  ;;  %v6437_v56 = vld [vmem:[%s6249_s13 + $0xe0] sm:$0xff]  ;;  %v6446_v57 = vld [vmem:[%s6249_s13 + $0xe8] sm:$0xff] }
  0x1e   : > { %5175 = vmatmul.mubr.msk.f32.gmra.mxu0 %vm415_vm1, %v285_v11  ;;  %2649 = vmatpush1.msra.mxu1 %v2630_v20  ;;  %v6449_v58 = vld [vmem:[%s6249_s13 + $0xf0] sm:$0xff]  ;;  %v6458_v59 = vld [vmem:[%s6249_s13 + $0xf8] sm:$0xff]  ;;  %v6461_v60 = vld [vmem:[%s6249_s13 + $0x100] sm:$0xff] }
  0x1f   : > { %5719 = vmatmul.mubr.msk.f32.gmra.mxu1 %vm415_vm1, %v289_v21  ;;  %895 = vmatprep.mubr.f32.mxu0 %v9659_v3  ;;  %v6470_v61 = vld [vmem:[%s6249_s13 + $0x108] sm:$0xff]  ;;  %v6473_v62 = vld [vmem:[%s6249_s13 + $0x110] sm:$0xff]  ;;  %v6483_v63 = vld [vmem:[%s6249_s13 + $0x118] sm:$0xff] }
  0x20   : > { %5721 = vmatprep.mubr.msk.f32.mxu1 %vm415_vm1, %v290_v22  ;;  %2650 = vmatprep.subr.mxu1 %v2629_v23  ;;  %v6486_v0 = vld [vmem:[%s6249_s13 + $0x120] sm:$0xff]  ;;  %v2615_v1 = vld [vmem:[%s9653_s2 + $0x38] sm:$0xff]  ;;  %v2614_v2 = vld [vmem:[%s9653_s2 + $0x30] sm:$0xff] }
  0x21   : > { %2651 = vmatpush1.msra.mxu1 %v2628_v24  ;;  %v6502_v4 = vld [vmem:[%s6249_s13 + $0x128] sm:$0xff]  ;;  %v6505_v5 = vld [vmem:[%s6249_s13 + $0x130] sm:$0xff]  ;;  %v4007_v6 = vld [vmem:[%s9654_s3 + $0x78] sm:$0xff] }
  0x22   : > { %5176 = vmatmul.mubr.msk.f32.gmra.mxu0 %vm415_vm1, %v286_v12  ;;  %2652 = vmatprep.subr.mxu1 %v2627_v25  ;;  %v6518_v7 = vld [vmem:[%s6249_s13 + $0x138] sm:$0xff]  ;;  %v6521_v8 = vld [vmem:[%s6249_s13 + $0x140] sm:$0xff]  ;;  %v6531_v9 = vld [vmem:[%s6249_s13 + $0x148] sm:$0xff] }
  0x23   : > { %5722 = vmatmul.mubr.msk.f32.gmra.mxu1 %vm415_vm1, %v291_v26  ;;  %901 = vmatprep.mubr.f32.mxu0 %v9659_v3  ;;  %v6534_v10 = vld [vmem:[%s6249_s13 + $0x150] sm:$0xff]  ;;  %v6544_v11 = vld [vmem:[%s6249_s13 + $0x158] sm:$0xff]  ;;  %v6547_v12 = vld [vmem:[%s6249_s13 + $0x160] sm:$0xff] }
  0x24   : > { %5724 = vmatprep.mubr.msk.f32.mxu1 %vm415_vm1, %v292_v27  ;;  %2653 = vmatpush1.msra.mxu1 %v2626_v28  ;;  %v2613_v13 = vld [vmem:[%s9653_s2 + $0x28] sm:$0xff]  ;;  %v2612_v14 = vld [vmem:[%s9653_s2 + $0x20] sm:$0xff]  ;;  %v6592_v20 = vld [vmem:[%s6249_s13 + $0x190] sm:$0xff] }
  0x25   : > { %2654 = vmatprep.subr.mxu1 %v2625_v29  ;;  %5901 = vmatprep.subr.mxu0 %v4007_v6  ;;  %v6563_v15 = vld [vmem:[%s6249_s13 + $0x168] sm:$0xff]  ;;  %v6579_v18 = vld [vmem:[%s6249_s13 + $0x180] sm:$0xff]  ;;  %v2611_v23 = vld [vmem:[%s9653_s2 + $0x18] sm:$0xff] }
  0x26   : > { %5177 = vmatmul.mubr.msk.f32.gmra.mxu0 %vm415_vm1, %v287_v16  ;;  %2655 = vmatpush1.msra.mxu1 %v2624_v30  ;;  %v6566_v16 = vld [vmem:[%s6249_s13 + $0x170] sm:$0xff]  ;;  %v6589_v19 = vld [vmem:[%s6249_s13 + $0x188] sm:$0xff]  ;;  %v6637_v28 = vld [vmem:[%s6249_s13 + $0x1b8] sm:$0xff] }
  0x27   : > { %5725 = vmatmul.mubr.msk.f32.gmra.mxu1 %vm415_vm1, %v293_v31  ;;  %907 = vmatprep.mubr.f32.mxu0 %v9659_v3  ;;  %v2610_v24 = vld [vmem:[%s9653_s2 + $0x10] sm:$0xff]  ;;  %v6621_v25 = vld [vmem:[%s6249_s13 + $0x1a8] sm:$0xff]  ;;  %v6640_v29 = vld [vmem:[%s6249_s13 + $0x1c0] sm:$0xff] }
  0x28   : > { %5727 = vmatprep.mubr.msk.f32.mxu1 %vm415_vm1, %v294_v32  ;;  %2656 = vmatprep.subr.mxu1 %v2623_v33  ;;  %v6650_v30 = vld [vmem:[%s6249_s13 + $0x1c8] sm:$0xff]  ;;  %v6666_v33 = vld [vmem:[%s6249_s13 + $0x1e0] sm:$0xff] }
  0x29   : > { %2657 = vmatpush1.msra.mxu1 %v2622_v34  ;;  %5902 = vmatpush3.msra.mxu0 %v4007_v6  ;;  %v2609_v34 = vld [vmem:[%s9653_s2 + $0x8] sm:$0xff]  ;;  %v6886_v6 = vld [vmem:[%s6249_s13 + $0x2e0] sm:$0xff] }
  0x2a   : > { %5178 = vmatmul.mubr.msk.f32.gmra.mxu0 %vm415_vm1, %v288_v17  ;;  %2658 = vmatprep.subr.mxu1 %v2621_v37  ;;  %v6576_v17 = vld [vmem:[%s6249_s13 + $0x178] sm:$0xff]  ;;  %v6685_v37 = vld [vmem:[%s6249_s13 + $0x1f0] sm:$0xff] }
  0x2b   : > { %5728 = vmatmul.mubr.msk.f32.gmra.mxu1 %vm415_vm1, %v295_v35  ;;  %913 = vmatprep.mubr.f32.mxu0 %v9659_v3 }
  0x2c   : > { %5730 = vmatprep.mubr.msk.f32.mxu1 %vm415_vm1, %v296_v36  ;;  %2659 = vmatpush1.msra.mxu1 %v2620_v38  ;;  %v6695_v38 = vld [vmem:[%s6249_s13 + $0x1f8] sm:$0xff] }
  0x2d   : > { %2660 = vmatprep.subr.mxu1 %v2619_v43  ;;  %v6724_v43 = vld [vmem:[%s6249_s13 + $0x220] sm:$0xff] }
  0x2e   : > { %5179 = vmatmul.mubr.msk.f32.gmra.mxu0 %vm415_vm1, %v289_v21  ;;  %2661 = vmatpush1.msra.mxu1 %v2618_v44  ;;  %v6602_v21 = vld [vmem:[%s6249_s13 + $0x198] sm:$0xff]  ;;  %v6734_v44 = vld [vmem:[%s6249_s13 + $0x228] sm:$0xff] }
  0x2f   : > { %5731 = vmatmul.mubr.msk.f32.gmra.mxu1 %vm415_vm1, %v297_v39  ;;  %919 = vmatprep.mubr.f32.mxu0 %v9659_v3 }
  0x30   : > { %5733 = vmatprep.mubr.msk.f32.mxu1 %vm415_vm1, %v6354_v40  ;;  %2662 = vmatprep.subr.mxu1 %v2617_v53  ;;  %v6789_v53 = vld [vmem:[%s6249_s13 + $0x268] sm:$0xff] }
  0x31   : > { %2663 = vmatpush1.msra.mxu1 %v2616_v54  ;;  %v6792_v54 = vld [vmem:[%s6249_s13 + $0x270] sm:$0xff] }
  0x32   : > { %5180 = vmatmul.mubr.msk.f32.gmra.mxu0 %vm415_vm1, %v290_v22  ;;  %2664 = vmatprep.subr.mxu1 %v2615_v1  ;;  %v6605_v22 = vld [vmem:[%s6249_s13 + $0x1a0] sm:$0xff] }
  0x33   : > { %5734 = vmatmul.mubr.msk.f32.gmra.mxu1 %vm415_vm1, %v6362_v41  ;;  %925 = vmatprep.mubr.f32.mxu0 %v9659_v3  ;;  %v6860_v1 = vld [vmem:[%s6249_s13 + $0x2c0] sm:$0xff] }
  0x34   : > { %5736 = vmatprep.mubr.msk.f32.mxu1 %vm415_vm1, %v6365_v42  ;;  %2665 = vmatpush1.msra.mxu1 %v2614_v2  ;;  %v6870_v2 = vld [vmem:[%s6249_s13 + $0x2c8] sm:$0xff] }
  0x35   : > { %2666 = vmatprep.subr.mxu1 %v2613_v13 }
  0x36   : > { %5181 = vmatmul.mubr.msk.f32.gmra.mxu0 %vm415_vm1, %v291_v26  ;;  %2667 = vmatpush1.msra.mxu1 %v2612_v14  ;;  %v6624_v26 = vld [vmem:[%s6249_s13 + $0x1b0] sm:$0xff] }
  0x37   : > { %5737 = vmatmul.mubr.msk.f32.gmra.mxu1 %vm415_vm1, %v6380_v45  ;;  %931 = vmatprep.mubr.f32.mxu0 %v9659_v3 }
  0x38   : > { %5739 = vmatprep.mubr.msk.f32.mxu1 %vm415_vm1, %v6383_v46  ;;  %2668 = vmatprep.subr.mxu1 %v2611_v23  ;;  %v382_v23 = vld [vmem:[%s6249_s13 + $0x320] sm:$0xff] }
  0x39   : > { %2669 = vmatpush1.msra.mxu1 %v2610_v24 }
  0x3a   : > { %5182 = vmatmul.mubr.msk.f32.gmra.mxu0 %vm415_vm1, %v292_v27  ;;  %v4006_v27 = vld [vmem:[%s9654_s3 + $0x70] sm:$0xff]  ;;  %2670 = vmatprep.subr.mxu1 %v2609_v34  ;;  %v383_v34 = vld [vmem:[%s6249_s13 + $0x328] sm:$0xff] }
  0x3b   : > { %5740 = vmatmul.mubr.msk.f32.gmra.mxu1 %vm415_vm1, %v6392_v47  ;;  %937 = vmatprep.mubr.f32.mxu0 %v9659_v3 }
  0x3c   : > { %5742 = vmatprep.mubr.msk.f32.mxu1 %vm415_vm1, %v6395_v48  ;;  %5903 = vmatprep.subr.mxu0 %v4006_v27 }
  0x3d   : > { %5904 = vmatpush3.msra.mxu0 %v4006_v27 }
  0x3e   : > { %5183 = vmatmul.mubr.msk.f32.gmra.mxu0 %vm415_vm1, %v293_v31  ;;  %v6653_v31 = vld [vmem:[%s6249_s13 + $0x1d0] sm:$0xff] }
  0x3f   : > { %5743 = vmatmul.mubr.msk.f32.gmra.mxu1 %vm415_vm1, %v6404_v49  ;;  %943 = vmatprep.mubr.f32.mxu0 %v9659_v3 }
  0x40   : > { %5745 = vmatprep.mubr.msk.f32.mxu1 %vm415_vm1, %v6407_v50 }
  0x42   : > { %5184 = vmatmul.mubr.msk.f32.gmra.mxu0 %vm415_vm1, %v294_v32  ;;  %v6663_v32 = vld [vmem:[%s6249_s13 + $0x1d8] sm:$0xff] }
  0x43   : > { %5746 = vmatmul.mubr.msk.f32.gmra.mxu1 %vm415_vm1, %v6416_v51  ;;  %949 = vmatprep.mubr.f32.mxu0 %v9659_v3 }
  0x44   : > { %5748 = vmatprep.mubr.msk.f32.mxu1 %vm415_vm1, %v6419_v52 }
  0x46   : > { %5185 = vmatmul.mubr.msk.f32.gmra.mxu0 %vm415_vm1, %v295_v35  ;;  %v2608_v35 = vld [vmem:[%s9653_s2] sm:$0xff] }
  0x47   : > { %5749 = vmatmul.mubr.msk.f32.gmra.mxu1 %vm415_vm1, %v6434_v55  ;;  %955 = vmatprep.mubr.f32.mxu0 %v9659_v3 }
  0x48   : > { %5751 = vmatprep.mubr.msk.f32.mxu1 %vm415_vm1, %v6437_v56  ;;  %2671 = vmatpush1.msra.mxu1 %v2608_v35 }
  0x4a   : > { %5186 = vmatmul.mubr.msk.f32.gmra.mxu0 %vm415_vm1, %v296_v36  ;;  %v6682_v36 = vld [vmem:[%s6249_s13 + $0x1e8] sm:$0xff] }
  0x4b   : > { %5752 = vmatmul.mubr.msk.f32.gmra.mxu1 %vm415_vm1, %v6446_v57  ;;  %961 = vmatprep.mubr.f32.mxu0 %v9659_v3 }
  0x4c   : > { %5754 = vmatprep.mubr.msk.f32.mxu1 %vm415_vm1, %v6449_v58 }
  0x4e   : > { %5187 = vmatmul.mubr.msk.f32.gmra.mxu0 %vm415_vm1, %v297_v39  ;;  %v6698_v39 = vld [vmem:[%s6249_s13 + $0x200] sm:$0xff] }
  0x4f   : > { %5755 = vmatmul.mubr.msk.f32.gmra.mxu1 %vm415_vm1, %v6458_v59  ;;  %967 = vmatprep.mubr.f32.mxu0 %v9659_v3 }
  0x50   : > { %5757 = vmatprep.mubr.msk.f32.mxu1 %vm415_vm1, %v6461_v60 }
  0x52   : > { %5188 = vmatmul.mubr.msk.f32.gmra.mxu0 %vm415_vm1, %v6354_v40  ;;  %v6708_v40 = vld [vmem:[%s6249_s13 + $0x208] sm:$0xff] }
  0x53   : > { %5758 = vmatmul.mubr.msk.f32.gmra.mxu1 %vm415_vm1, %v6470_v61  ;;  %973 = vmatprep.mubr.f32.mxu0 %v9659_v3 }
  0x54   : > { %5760 = vmatprep.mubr.msk.f32.mxu1 %vm415_vm1, %v6473_v62 }
  0x56   : > { %5189 = vmatmul.mubr.msk.f32.gmra.mxu0 %vm415_vm1, %v6362_v41  ;;  %v6711_v41 = vld [vmem:[%s6249_s13 + $0x210] sm:$0xff] }
  0x57   : > { %5761 = vmatmul.mubr.msk.f32.gmra.mxu1 %vm415_vm1, %v6483_v63  ;;  %979 = vmatprep.mubr.f32.mxu0 %v9659_v3 }
  0x58   : > { %5763 = vmatprep.mubr.msk.f32.mxu1 %vm415_vm1, %v6486_v0 }
  0x5a   : > { %5190 = vmatmul.mubr.msk.f32.gmra.mxu0 %vm415_vm1, %v6365_v42  ;;  %v6721_v42 = vld [vmem:[%s6249_s13 + $0x218] sm:$0xff] }
  0x5b   : > { %5764 = vmatmul.mubr.msk.f32.gmra.mxu1 %vm415_vm1, %v6502_v4  ;;  %985 = vmatprep.mubr.f32.mxu0 %v9659_v3 }
  0x5c   : > { %5766 = vmatprep.mubr.msk.f32.mxu1 %vm415_vm1, %v6505_v5 }
  0x5e   : > { %5191 = vmatmul.mubr.msk.f32.gmra.mxu0 %vm415_vm1, %v6380_v45  ;;  %v6737_v45 = vld [vmem:[%s6249_s13 + $0x230] sm:$0xff] }
  0x5f   : > { %5767 = vmatmul.mubr.msk.f32.gmra.mxu1 %vm415_vm1, %v6518_v7  ;;  %991 = vmatprep.mubr.f32.mxu0 %v9659_v3 }
  0x60   : > { %5769 = vmatprep.mubr.msk.f32.mxu1 %vm415_vm1, %v6521_v8 }
  0x62   : > { %5192 = vmatmul.mubr.msk.f32.gmra.mxu0 %vm415_vm1, %v6383_v46  ;;  %v4005_v46 = vld [vmem:[%s9654_s3 + $0x68] sm:$0xff] }
  0x63   : > { %5770 = vmatmul.mubr.msk.f32.gmra.mxu1 %vm415_vm1, %v6531_v9  ;;  %997 = vmatprep.mubr.f32.mxu0 %v9659_v3 }
  0x64   : > { %5772 = vmatprep.mubr.msk.f32.mxu1 %vm415_vm1, %v6534_v10  ;;  %5905 = vmatprep.subr.mxu0 %v4005_v46 }
  0x65   : > { %5906 = vmatpush3.msra.mxu0 %v4005_v46  ;;  %v384_v46 = vld [vmem:[%s6249_s13 + $0x330] sm:$0xff] }
  0x66   : > { %5193 = vmatmul.mubr.msk.f32.gmra.mxu0 %vm415_vm1, %v6392_v47  ;;  %v6750_v47 = vld [vmem:[%s6249_s13 + $0x238] sm:$0xff] }
  0x67   : > { %5773 = vmatmul.mubr.msk.f32.gmra.mxu1 %vm415_vm1, %v6544_v11  ;;  %1003 = vmatprep.mubr.f32.mxu0 %v9659_v3 }
  0x68   : > { %5775 = vmatprep.mubr.msk.f32.mxu1 %vm415_vm1, %v6547_v12 }
  0x6a   : > { %5194 = vmatmul.mubr.msk.f32.gmra.mxu0 %vm415_vm1, %v6395_v48  ;;  %v6753_v48 = vld [vmem:[%s6249_s13 + $0x240] sm:$0xff] }
  0x6b   : > { %5776 = vmatmul.mubr.msk.f32.gmra.mxu1 %vm415_vm1, %v6563_v15  ;;  %1009 = vmatprep.mubr.f32.mxu0 %v9659_v3 }
  0x6c   : > { %5778 = vmatprep.mubr.msk.f32.mxu1 %vm415_vm1, %v6566_v16 }
  0x6e   : > { %5195 = vmatmul.mubr.msk.f32.gmra.mxu0 %vm415_vm1, %v6404_v49  ;;  %v6763_v49 = vld [vmem:[%s6249_s13 + $0x248] sm:$0xff] }
  0x6f   : > { %5779 = vmatmul.mubr.msk.f32.gmra.mxu1 %vm415_vm1, %v6576_v17  ;;  %1015 = vmatprep.mubr.f32.mxu0 %v9659_v3 }
  0x70   : > { %5781 = vmatprep.mubr.msk.f32.mxu1 %vm415_vm1, %v6579_v18 }
  0x72   : > { %5196 = vmatmul.mubr.msk.f32.gmra.mxu0 %vm415_vm1, %v6407_v50  ;;  %v6766_v50 = vld [vmem:[%s6249_s13 + $0x250] sm:$0xff] }
  0x73   : > { %5782 = vmatmul.mubr.msk.f32.gmra.mxu1 %vm415_vm1, %v6589_v19  ;;  %1021 = vmatprep.mubr.f32.mxu0 %v9659_v3 }
  0x74   : > { %5784 = vmatprep.mubr.msk.f32.mxu1 %vm415_vm1, %v6592_v20 }
  0x76   : > { %5197 = vmatmul.mubr.msk.f32.gmra.mxu0 %vm415_vm1, %v6416_v51  ;;  %v6776_v51 = vld [vmem:[%s6249_s13 + $0x258] sm:$0xff] }
  0x77   : > { %5785 = vmatmul.mubr.msk.f32.gmra.mxu1 %vm415_vm1, %v6602_v21  ;;  %1027 = vmatprep.mubr.f32.mxu0 %v9659_v3 }
  0x78   : > { %5787 = vmatprep.mubr.msk.f32.mxu1 %vm415_vm1, %v6605_v22 }
  0x7a   : > { %5198 = vmatmul.mubr.msk.f32.gmra.mxu0 %vm415_vm1, %v6419_v52  ;;  %v6779_v52 = vld [vmem:[%s6249_s13 + $0x260] sm:$0xff] }
  0x7b   : > { %5788 = vmatmul.mubr.msk.f32.gmra.mxu1 %vm415_vm1, %v6621_v25  ;;  %1033 = vmatprep.mubr.f32.mxu0 %v9659_v3 }
  0x7c   : > { %5790 = vmatprep.mubr.msk.f32.mxu1 %vm415_vm1, %v6624_v26 }
  0x7e   : > { %5199 = vmatmul.mubr.msk.f32.gmra.mxu0 %vm415_vm1, %v6434_v55  ;;  %v6802_v55 = vld [vmem:[%s6249_s13 + $0x278] sm:$0xff] }
  0x7f   : > { %5791 = vmatmul.mubr.msk.f32.gmra.mxu1 %vm415_vm1, %v6637_v28  ;;  %1039 = vmatprep.mubr.f32.mxu0 %v9659_v3 }
  0x80   : > { %5793 = vmatprep.mubr.msk.f32.mxu1 %vm415_vm1, %v6640_v29 }
  0x82   : > { %5200 = vmatmul.mubr.msk.f32.gmra.mxu0 %vm415_vm1, %v6437_v56  ;;  %v6805_v56 = vld [vmem:[%s6249_s13 + $0x280] sm:$0xff] }
  0x83   : > { %5794 = vmatmul.mubr.msk.f32.gmra.mxu1 %vm415_vm1, %v6650_v30  ;;  %1045 = vmatprep.mubr.f32.mxu0 %v9659_v3 }
  0x84   : > { %5796 = vmatprep.mubr.msk.f32.mxu1 %vm415_vm1, %v6653_v31 }
  0x86   : > { %5201 = vmatmul.mubr.msk.f32.gmra.mxu0 %vm415_vm1, %v6446_v57  ;;  %v6815_v57 = vld [vmem:[%s6249_s13 + $0x288] sm:$0xff] }
  0x87   : > { %5797 = vmatmul.mubr.msk.f32.gmra.mxu1 %vm415_vm1, %v6663_v32  ;;  %1051 = vmatprep.mubr.f32.mxu0 %v9659_v3 }
  0x88   : > { %5799 = vmatprep.mubr.msk.f32.mxu1 %vm415_vm1, %v6666_v33 }
  0x8a   : > { %5202 = vmatmul.mubr.msk.f32.gmra.mxu0 %vm415_vm1, %v6449_v58  ;;  %v6818_v58 = vld [vmem:[%s6249_s13 + $0x290] sm:$0xff] }
  0x8b   : > { %5800 = vmatmul.mubr.msk.f32.gmra.mxu1 %vm415_vm1, %v6682_v36  ;;  %1057 = vmatprep.mubr.f32.mxu0 %v9659_v3 }
  0x8c   : > { %5802 = vmatprep.mubr.msk.f32.mxu1 %vm415_vm1, %v6685_v37 }
  0x8e   : > { %5203 = vmatmul.mubr.msk.f32.gmra.mxu0 %vm415_vm1, %v6458_v59  ;;  %v6828_v59 = vld [vmem:[%s6249_s13 + $0x298] sm:$0xff] }
  0x8f   : > { %5803 = vmatmul.mubr.msk.f32.gmra.mxu1 %vm415_vm1, %v6695_v38  ;;  %1063 = vmatprep.mubr.f32.mxu0 %v9659_v3 }
  0x90   : > { %5805 = vmatprep.mubr.msk.f32.mxu1 %vm415_vm1, %v6698_v39 }
  0x92   : > { %5204 = vmatmul.mubr.msk.f32.gmra.mxu0 %vm415_vm1, %v6461_v60  ;;  %v6831_v60 = vld [vmem:[%s6249_s13 + $0x2a0] sm:$0xff] }
  0x93   : > { %5806 = vmatmul.mubr.msk.f32.gmra.mxu1 %vm415_vm1, %v6708_v40  ;;  %1069 = vmatprep.mubr.f32.mxu0 %v9659_v3 }
  0x94   : > { %5808 = vmatprep.mubr.msk.f32.mxu1 %vm415_vm1, %v6711_v41 }
  0x96   : > { %5205 = vmatmul.mubr.msk.f32.gmra.mxu0 %vm415_vm1, %v6470_v61  ;;  %v6841_v61 = vld [vmem:[%s6249_s13 + $0x2a8] sm:$0xff] }
  0x97   : > { %5809 = vmatmul.mubr.msk.f32.gmra.mxu1 %vm415_vm1, %v6721_v42  ;;  %1075 = vmatprep.mubr.f32.mxu0 %v9659_v3 }
  0x98   : > { %5811 = vmatprep.mubr.msk.f32.mxu1 %vm415_vm1, %v6724_v43 }
  0x9a   : > { %5206 = vmatmul.mubr.msk.f32.gmra.mxu0 %vm415_vm1, %v6473_v62  ;;  %v6844_v62 = vld [vmem:[%s6249_s13 + $0x2b0] sm:$0xff] }
  0x9b   : > { %5812 = vmatmul.mubr.msk.f32.gmra.mxu1 %vm415_vm1, %v6734_v44  ;;  %1081 = vmatprep.mubr.f32.mxu0 %v9659_v3 }
  0x9c   : > { %5814 = vmatprep.mubr.msk.f32.mxu1 %vm415_vm1, %v6737_v45 }
  0x9e   : > { %5207 = vmatmul.mubr.msk.f32.gmra.mxu0 %vm415_vm1, %v6483_v63  ;;  %v4004_v63 = vld [vmem:[%s9654_s3 + $0x60] sm:$0xff] }
  0x9f   : > { %5815 = vmatmul.mubr.msk.f32.gmra.mxu1 %vm415_vm1, %v6750_v47  ;;  %1087 = vmatprep.mubr.f32.mxu0 %v9659_v3 }
  0xa0   : > { %5817 = vmatprep.mubr.msk.f32.mxu1 %vm415_vm1, %v6753_v48  ;;  %5907 = vmatprep.subr.mxu0 %v4004_v63 }
  0xa1   : > { %5908 = vmatpush3.msra.mxu0 %v4004_v63 }
  0xa2   : > { %5208 = vmatmul.mubr.msk.f32.gmra.mxu0 %vm415_vm1, %v6486_v0  ;;  %v6857_v0 = vld [vmem:[%s6249_s13 + $0x2b8] sm:$0xff] }
  0xa3   : > { %5818 = vmatmul.mubr.msk.f32.gmra.mxu1 %vm415_vm1, %v6763_v49  ;;  %1093 = vmatprep.mubr.f32.mxu0 %v9659_v3 }
  0xa4   : > { %5820 = vmatprep.mubr.msk.f32.mxu1 %vm415_vm1, %v6766_v50 }
  0xa6   : > { %5209 = vmatmul.mubr.msk.f32.gmra.mxu0 %vm415_vm1, %v6502_v4  ;;  %v6873_v4 = vld [vmem:[%s6249_s13 + $0x2d0] sm:$0xff] }
  0xa7   : > { %5821 = vmatmul.mubr.msk.f32.gmra.mxu1 %vm415_vm1, %v6776_v51  ;;  %1099 = vmatprep.mubr.f32.mxu0 %v9659_v3 }
  0xa8   : > { %5823 = vmatprep.mubr.msk.f32.mxu1 %vm415_vm1, %v6779_v52 }
  0xaa   : > { %5210 = vmatmul.mubr.msk.f32.gmra.mxu0 %vm415_vm1, %v6505_v5  ;;  %v6883_v5 = vld [vmem:[%s6249_s13 + $0x2d8] sm:$0xff] }
  0xab   : > { %5824 = vmatmul.mubr.msk.f32.gmra.mxu1 %vm415_vm1, %v6789_v53  ;;  %1105 = vmatprep.mubr.f32.mxu0 %v9659_v3 }
  0xac   : > { %5826 = vmatprep.mubr.msk.f32.mxu1 %vm415_vm1, %v6792_v54 }
  0xae   : > { %5211 = vmatmul.mubr.msk.f32.gmra.mxu0 %vm415_vm1, %v6518_v7  ;;  %v6896_v7 = vld [vmem:[%s6249_s13 + $0x2e8] sm:$0xff] }
  0xaf   : > { %5827 = vmatmul.mubr.msk.f32.gmra.mxu1 %vm415_vm1, %v6802_v55  ;;  %1111 = vmatprep.mubr.f32.mxu0 %v9659_v3 }
  0xb0   : > { %5829 = vmatprep.mubr.msk.f32.mxu1 %vm415_vm1, %v6805_v56 }
  0xb2   : > { %5212 = vmatmul.mubr.msk.f32.gmra.mxu0 %vm415_vm1, %v6521_v8  ;;  %v6899_v8 = vld [vmem:[%s6249_s13 + $0x2f0] sm:$0xff] }
  0xb3   : > { %5830 = vmatmul.mubr.msk.f32.gmra.mxu1 %vm415_vm1, %v6815_v57  ;;  %1117 = vmatprep.mubr.f32.mxu0 %v9659_v3 }
  0xb4   : > { %5832 = vmatprep.mubr.msk.f32.mxu1 %vm415_vm1, %v6818_v58 }
  0xb6   : > { %5213 = vmatmul.mubr.msk.f32.gmra.mxu0 %vm415_vm1, %v6531_v9  ;;  %v6909_v9 = vld [vmem:[%s6249_s13 + $0x2f8] sm:$0xff] }
  0xb7   : > { %5833 = vmatmul.mubr.msk.f32.gmra.mxu1 %vm415_vm1, %v6828_v59  ;;  %1123 = vmatprep.mubr.f32.mxu0 %v9659_v3 }
  0xb8   : > { %5835 = vmatprep.mubr.msk.f32.mxu1 %vm415_vm1, %v6831_v60 }
  0xba   : > { %5214 = vmatmul.mubr.msk.f32.gmra.mxu0 %vm415_vm1, %v6534_v10  ;;  %v378_v10 = vld [vmem:[%s6249_s13 + $0x300] sm:$0xff] }
  0xbb   : > { %5836 = vmatmul.mubr.msk.f32.gmra.mxu1 %vm415_vm1, %v6841_v61  ;;  %1129 = vmatprep.mubr.f32.mxu0 %v9659_v3 }
  0xbc   : > { %5838 = vmatprep.mubr.msk.f32.mxu1 %vm415_vm1, %v6844_v62 }
  0xbe   : > { %5215 = vmatmul.mubr.msk.f32.gmra.mxu0 %vm415_vm1, %v6544_v11  ;;  %v379_v11 = vld [vmem:[%s6249_s13 + $0x308] sm:$0xff] }
  0xbf   : > { %5839 = vmatmul.mubr.msk.f32.gmra.mxu1 %vm415_vm1, %v6857_v0  ;;  %1135 = vmatprep.mubr.f32.mxu0 %v9659_v3 }
  0xc0   : > { %5841 = vmatprep.mubr.msk.f32.mxu1 %vm415_vm1, %v6860_v1 }
  0xc2   : > { %5216 = vmatmul.mubr.msk.f32.gmra.mxu0 %vm415_vm1, %v6547_v12  ;;  %v380_v12 = vld [vmem:[%s6249_s13 + $0x310] sm:$0xff] }
  0xc3   : > { %5842 = vmatmul.mubr.msk.f32.gmra.mxu1 %vm415_vm1, %v6870_v2  ;;  %1141 = vmatprep.mubr.f32.mxu0 %v9659_v3 }
  0xc4   : > { %5844 = vmatprep.mubr.msk.f32.mxu1 %vm415_vm1, %v6873_v4 }
  0xc6   : > { %5217 = vmatmul.mubr.msk.f32.gmra.mxu0 %vm415_vm1, %v6563_v15 }
  0xc7   : > { %5845 = vmatmul.mubr.msk.f32.gmra.mxu1 %vm415_vm1, %v6883_v5  ;;  %1147 = vmatprep.mubr.f32.mxu0 %v9659_v3 }
  0xc8   : > { %5847 = vmatprep.mubr.msk.f32.mxu1 %vm415_vm1, %v6886_v6 }
  0xca   : > { %5218 = vmatmul.mubr.msk.f32.gmra.mxu0 %vm415_vm1, %v6566_v16  ;;  %v381_v16 = vld [vmem:[%s6249_s13 + $0x318] sm:$0xff] }
  0xcb   : > { %5848 = vmatmul.mubr.msk.f32.gmra.mxu1 %vm415_vm1, %v6896_v7  ;;  %1153 = vmatprep.mubr.f32.mxu0 %v9659_v3 }
  0xcc   : > { %5850 = vmatprep.mubr.msk.f32.mxu1 %vm415_vm1, %v6899_v8 }
  0xce   : > { %5219 = vmatmul.mubr.msk.f32.gmra.mxu0 %vm415_vm1, %v6576_v17 }
  0xcf   : > { %5851 = vmatmul.mubr.msk.f32.gmra.mxu1 %vm415_vm1, %v6909_v9  ;;  %1159 = vmatprep.mubr.f32.mxu0 %v9659_v3 }
  0xd0   : > { %5853 = vmatprep.mubr.msk.f32.mxu1 %vm415_vm1, %v378_v10 }
  0xd2   : > { %v6920_v13 = vpop.f32.mrf.mxu0  ;;  %5220 = vmatmul.mubr.msk.f32.gmra.mxu0 %vm415_vm1, %v6579_v18 }
  0xd3   : > { %v6924_v14 = vpop.f32.mrf.mxu1  ;;  %5854 = vmatmul.mubr.msk.f32.gmra.mxu1 %vm415_vm1, %v379_v11  ;;  %1165 = vmatprep.mubr.f32.mxu0 %v9659_v3 }
  0xd4   : > { %9661 = vst [vmem:[#allocation2_spill] sm:$0xff] %v6924_v14  ;;  %v6928_v15 = vpop.f32.mrf.mxu0  ;;  %5856 = vmatprep.mubr.msk.f32.mxu1 %vm415_vm1, %v380_v12  ;;  %v385_v12 = vld [vmem:[%s6249_s13 + $0x338] sm:$0xff] }
  0xd5   : > { %v6932_v17 = vpop.f32.mrf.mxu1 }
  0xd6   : > { %9662 = vst [vmem:[#allocation3_spill] sm:$0xff] %v6932_v17  ;;  %v6935_v24 = vpop.f32.mrf.mxu0  ;;  %5221 = vmatmul.mubr.msk.f32.gmra.mxu0 %vm415_vm1, %v6589_v19  ;;  %v4003_v19 = vld [vmem:[%s9654_s3 + $0x58] sm:$0xff] }
  0xd7   : > { %v6939_v18 = vpop.f32.mrf.mxu1  ;;  %5857 = vmatmul.mubr.msk.f32.gmra.mxu1 %vm415_vm1, %v381_v16  ;;  %1171 = vmatprep.mubr.f32.mxu0 %v9659_v3 }
  0xd8   : > { %9663 = vst [vmem:[#allocation4_spill] sm:$0xff] %v6939_v18  ;;  %v6943_v27 = vpop.f32.mrf.mxu0  ;;  %5859 = vmatprep.mubr.msk.f32.mxu1 %vm415_vm1, %v382_v23  ;;  %5909 = vmatprep.subr.mxu0 %v4003_v19  ;;  %v386_v23 = vld [vmem:[%s6249_s13 + $0x340] sm:$0xff] }
  0xd9   : > { %v6947_v35 = vpop.f32.mrf.mxu1  ;;  %5910 = vmatpush3.msra.mxu0 %v4003_v19 }
  0xda   : > { %9664 = vst [vmem:[#allocation5_spill] sm:$0xff] %v6947_v35  ;;  %v6953_v63 = vpop.f32.mrf.mxu0  ;;  %5222 = vmatmul.mubr.msk.f32.gmra.mxu0 %vm415_vm1, %v6592_v20 }
  0xdb   : > { %v6957_v10 = vpop.f32.mrf.mxu1  ;;  %5860 = vmatmul.mubr.msk.f32.gmra.mxu1 %vm415_vm1, %v383_v34  ;;  %1177 = vmatprep.mubr.f32.mxu0 %v9659_v3 }
  0xdc   : > { %9665 = vst [vmem:[#allocation6_spill] sm:$0xff] %v6957_v10  ;;  %v6961_v11 = vpop.f32.mrf.mxu0  ;;  %5862 = vmatprep.mubr.msk.f32.mxu1 %vm415_vm1, %v384_v46  ;;  %v387_v46 = vld [vmem:[%s6249_s13 + $0x348] sm:$0xff] }
  0xdd   : > { %v6965_v16 = vpop.f32.mrf.mxu1 }
  0xde   : > { %9666 = vst [vmem:[#allocation7_spill] sm:$0xff] %v6965_v16  ;;  %v6968_v35 = vpop.f32.mrf.mxu0  ;;  %5223 = vmatmul.mubr.msk.f32.gmra.mxu0 %vm415_vm1, %v6602_v21  ;;  %v388_v16 = vld [vmem:[%s6249_s13 + $0x350] sm:$0xff] }
  0xdf   : > { %v6972_v20 = vpop.f32.mrf.mxu1  ;;  %5863 = vmatmul.mubr.msk.f32.gmra.mxu1 %vm415_vm1, %v385_v12  ;;  %1183 = vmatprep.mubr.f32.mxu0 %v9659_v3 }
  0xe0   : > { %9667 = vst [vmem:[#allocation8_spill] sm:$0xff] %v6972_v20  ;;  %v6976_v34 = vpop.f32.mrf.mxu0  ;;  %5865 = vmatprep.mubr.msk.f32.mxu1 %vm415_vm1, %v386_v23  ;;  %v389_v23 = vld [vmem:[%s6249_s13 + $0x358] sm:$0xff]  ;;  %v390_v20 = vld [vmem:[%s6249_s13 + $0x360] sm:$0xff] }
  0xe1   : > { %v6980_v19 = vpop.f32.mrf.mxu1 }
  0xe2   : > { %9668 = vst [vmem:[#allocation9_spill] sm:$0xff] %v6980_v19  ;;  %v6983_v10 = vpop.f32.mrf.mxu0  ;;  %5224 = vmatmul.mubr.msk.f32.gmra.mxu0 %vm415_vm1, %v6605_v22 }
  0xe3   : > { %v6987_v21 = vpop.f32.mrf.mxu1  ;;  %5866 = vmatmul.mubr.msk.f32.gmra.mxu1 %vm415_vm1, %v387_v46  ;;  %1189 = vmatprep.mubr.f32.mxu0 %v9659_v3 }
  0xe4   : > { %9669 = vst [vmem:[#allocation10_spill] sm:$0xff] %v6987_v21  ;;  %v6991_v12 = vpop.f32.mrf.mxu0  ;;  %5868 = vmatprep.mubr.msk.f32.mxu1 %vm415_vm1, %v388_v16  ;;  %v391_v16 = vld [vmem:[%s6249_s13 + $0x368] sm:$0xff]  ;;  %v392_v21 = vld [vmem:[%s6249_s13 + $0x370] sm:$0xff] }
  0xe5   : > { %v6995_v19 = vpop.f32.mrf.mxu1 }
  0xe6   : > { %9670 = vst [vmem:[#allocation11_spill] sm:$0xff] %v6995_v19  ;;  %v6998_v18 = vpop.f32.mrf.mxu0  ;;  %5225 = vmatmul.mubr.msk.f32.gmra.mxu0 %vm415_vm1, %v6621_v25 }
  0xe7   : > { %v7002_v22 = vpop.f32.mrf.mxu1  ;;  %5869 = vmatmul.mubr.msk.f32.gmra.mxu1 %vm415_vm1, %v389_v23  ;;  %1195 = vmatprep.mubr.f32.mxu0 %v9659_v3 }
  0xe8   : > { %9671 = vst [vmem:[#allocation12_spill] sm:$0xff] %v7002_v22  ;;  %v7006_v46 = vpop.f32.mrf.mxu0  ;;  %5871 = vmatprep.mubr.msk.f32.mxu1 %vm415_vm1, %v390_v20  ;;  %v393_v20 = vld [vmem:[%s6249_s13 + $0x378] sm:$0xff]  ;;  %v394_v22 = vld [vmem:[%s6249_s13 + $0x380] sm:$0xff] }
  0xe9   : > { %9672 = vst [vmem:[#allocation13_spill] sm:$0xff] %v7006_v46  ;;  %v7010_v19 = vpop.f32.mrf.mxu1 }
  0xea   : > { %9673 = vst [vmem:[#allocation14_spill] sm:$0xff] %v7010_v19  ;;  %v7013_v17 = vpop.f32.mrf.mxu0  ;;  %5226 = vmatmul.mubr.msk.f32.gmra.mxu0 %vm415_vm1, %v6624_v26 }
  0xeb   : > { %v7017_v25 = vpop.f32.mrf.mxu1  ;;  %5872 = vmatmul.mubr.msk.f32.gmra.mxu1 %vm415_vm1, %v391_v16  ;;  %1201 = vmatprep.mubr.f32.mxu0 %v9659_v3 }
  0xec   : > { %9674 = vst [vmem:[#allocation15_spill] sm:$0xff] %v7017_v25  ;;  %v7021_v23 = vpop.f32.mrf.mxu0  ;;  %5874 = vmatprep.mubr.msk.f32.mxu1 %vm415_vm1, %v392_v21  ;;  %v395_v21 = vld [vmem:[%s6249_s13 + $0x388] sm:$0xff]  ;;  %v396_v25 = vld [vmem:[%s6249_s13 + $0x390] sm:$0xff] }
  0xed   : > { %9675 = vst [vmem:[#allocation16_spill] sm:$0xff] %v7021_v23  ;;  %v7025_v19 = vpop.f32.mrf.mxu1 }
  0xee   : > { %9676 = vst [vmem:[#allocation17_spill] sm:$0xff] %v7025_v19  ;;  %v7028_v14 = vpop.f32.mrf.mxu0  ;;  %5227 = vmatmul.mubr.msk.f32.gmra.mxu0 %vm415_vm1, %v6637_v28 }
  0xef   : > { %v7032_v26 = vpop.f32.mrf.mxu1  ;;  %5875 = vmatmul.mubr.msk.f32.gmra.mxu1 %vm415_vm1, %v393_v20  ;;  %1207 = vmatprep.mubr.f32.mxu0 %v9659_v3 }
  0xf0   : > { %9677 = vst [vmem:[#allocation18_spill] sm:$0xff] %v7032_v26  ;;  %v7036_v16 = vpop.f32.mrf.mxu0  ;;  %5877 = vmatprep.mubr.msk.f32.mxu1 %vm415_vm1, %v394_v22  ;;  %v397_v22 = vld [vmem:[%s6249_s13 + $0x398] sm:$0xff]  ;;  %v398_v26 = vld [vmem:[%s6249_s13 + $0x3a0] sm:$0xff] }
  0xf1   : > { %9678 = vst [vmem:[#allocation19_spill] sm:$0xff] %v7036_v16  ;;  %v7040_v19 = vpop.f32.mrf.mxu1 }
  0xf2   : > { %9679 = vst [vmem:[#allocation20_spill] sm:$0xff] %v7040_v19  ;;  %v7043_v23 = vpop.f32.mrf.mxu0  ;;  %5228 = vmatmul.mubr.msk.f32.gmra.mxu0 %vm415_vm1, %v6640_v29 }
  0xf3   : > { %v7047_v28 = vpop.f32.mrf.mxu1  ;;  %5878 = vmatmul.mubr.msk.f32.gmra.mxu1 %vm415_vm1, %v395_v21  ;;  %1213 = vmatprep.mubr.f32.mxu0 %v9659_v3 }
  0xf4   : > { %9680 = vst [vmem:[#allocation21_spill] sm:$0xff] %v7047_v28  ;;  %v7051_v20 = vpop.f32.mrf.mxu0  ;;  %5880 = vmatprep.mubr.msk.f32.mxu1 %vm415_vm1, %v396_v25  ;;  %v399_v25 = vld [vmem:[%s6249_s13 + $0x3a8] sm:$0xff]  ;;  %v400_v28 = vld [vmem:[%s6249_s13 + $0x3b0] sm:$0xff] }
  0xf5   : > { %9681 = vst [vmem:[#allocation22_spill] sm:$0xff] %v7051_v20  ;;  %v7055_v19 = vpop.f32.mrf.mxu1 }
  0xf6   : > { %9682 = vst [vmem:[#allocation23_spill] sm:$0xff] %v7055_v19  ;;  %v7058_v16 = vpop.f32.mrf.mxu0  ;;  %5229 = vmatmul.mubr.msk.f32.gmra.mxu0 %vm415_vm1, %v6650_v30  ;;  %v4002_v30 = vld [vmem:[%s9654_s3 + $0x50] sm:$0xff] }
  0xf7   : > { %v7062_v29 = vpop.f32.mrf.mxu1  ;;  %5881 = vmatmul.mubr.msk.f32.gmra.mxu1 %vm415_vm1, %v397_v22  ;;  %1219 = vmatprep.mubr.f32.mxu0 %v9659_v3 }
  0xf8   : > { %9683 = vst [vmem:[#allocation24_spill] sm:$0xff] %v7062_v29  ;;  %v7066_v21 = vpop.f32.mrf.mxu0  ;;  %5883 = vmatprep.mubr.msk.f32.mxu1 %vm415_vm1, %v398_v26  ;;  %5911 = vmatprep.subr.mxu0 %v4002_v30 }
  0xf9   : > { %9684 = vst [vmem:[#allocation25_spill] sm:$0xff] %v7066_v21  ;;  %v7070_v19 = vpop.f32.mrf.mxu1  ;;  %5912 = vmatpush3.msra.mxu0 %v4002_v30  ;;  %v402_v21 = vld [vmem:[%s6249_s13 + $0x3c0] sm:$0xff] }
  0xfa   : > { %9685 = vst [vmem:[#allocation26_spill] sm:$0xff] %v7070_v19  ;;  %v7076_v20 = vpop.f32.mrf.mxu0  ;;  %5230 = vmatmul.mubr.msk.f32.gmra.mxu0 %vm415_vm1, %v6653_v31  ;;  %v401_v19 = vld [vmem:[%s6249_s13 + $0x3b8] sm:$0xff] }
  0xfb   : > { %v7080_v22 = vpop.f32.mrf.mxu1  ;;  %5884 = vmatmul.mubr.msk.f32.gmra.mxu1 %vm415_vm1, %v399_v25  ;;  %1225 = vmatprep.mubr.f32.mxu0 %v9659_v3 }
  0xfc   : > { %9686 = vst [vmem:[#allocation27_spill] sm:$0xff] %v7080_v22  ;;  %v7084_v26 = vpop.f32.mrf.mxu0  ;;  %5886 = vmatprep.mubr.msk.f32.mxu1 %vm415_vm1, %v400_v28  ;;  %v403_v28 = vld [vmem:[%s6249_s13 + $0x3c8] sm:$0xff] }
  0xfd   : > { %9687 = vst [vmem:[#allocation28_spill] sm:$0xff] %v7084_v26  ;;  %v7088_v29 = vpop.f32.mrf.mxu1 }
  0xfe   : > { %9688 = vst [vmem:[#allocation29_spill] sm:$0xff] %v7088_v29  ;;  %v7091_v46 = vpop.f32.mrf.mxu0  ;;  %5231 = vmatmul.mubr.msk.f32.gmra.mxu0 %vm415_vm1, %v6663_v32  ;;  %v404_v29 = vld [vmem:[%s6249_s13 + $0x3d0] sm:$0xff] }
  0xff   : > { %v7095_v31 = vpop.f32.mrf.mxu1  ;;  %5887 = vmatmul.mubr.msk.f32.gmra.mxu1 %vm415_vm1, %v401_v19  ;;  %1231 = vmatprep.mubr.f32.mxu0 %v9659_v3 }
 0x100   : > { %9689 = vst [vmem:[#allocation30_spill] sm:$0xff] %v7095_v31  ;;  %v7099_v25 = vpop.f32.mrf.mxu0  ;;  %5889 = vmatprep.mubr.msk.f32.mxu1 %vm415_vm1, %v402_v21  ;;  %v405_v21 = vld [vmem:[%s6249_s13 + $0x3d8] sm:$0xff]  ;;  %v406_v31 = vld [vmem:[%s6249_s13 + $0x3e0] sm:$0xff] }
 0x101   : > { %9690 = vst [vmem:[#allocation31_spill] sm:$0xff] %v7099_v25  ;;  %v7103_v30 = vpop.f32.mrf.mxu1 }
 0x102   : > { %9691 = vst [vmem:[#allocation32_spill] sm:$0xff] %v7103_v30  ;;  %v7106_v22 = vpop.f32.mrf.mxu0  ;;  %5232 = vmatmul.mubr.msk.f32.gmra.mxu0 %vm415_vm1, %v6666_v33 }
 0x103   : > { %v7110_v32 = vpop.f32.mrf.mxu1  ;;  %5890 = vmatmul.mubr.msk.f32.gmra.mxu1 %vm415_vm1, %v403_v28  ;;  %1237 = vmatprep.mubr.f32.mxu0 %v9659_v3 }
 0x104   : > { %9692 = vst [vmem:[#allocation33_spill] sm:$0xff] %v7110_v32  ;;  %v7114_v19 = vpop.f32.mrf.mxu0  ;;  %5892 = vmatprep.mubr.msk.f32.mxu1 %vm415_vm1, %v404_v29  ;;  %v7132_v29 = vld [vmem:[%s9655_s4] ss:$0 sm:$0xff] }
 0x105   : > { %9693 = vst [vmem:[#allocation34_spill] sm:$0xff] %v7114_v19  ;;  %v7118_v30 = vpop.f32.mrf.mxu1 }
 0x106   : > { %9694 = vst [vmem:[#allocation35_spill] sm:$0xff] %v7118_v30  ;;  %v7121_v25 = vpop.f32.mrf.mxu0  ;;  %5233 = vmatmul.mubr.msk.f32.gmra.mxu0 %vm415_vm1, %v6682_v36  ;;  %v407_v30 = vld [vmem:[%s6249_s13 + $0x3e8] sm:$0xff]  ;;  %v408_v36 = vld [vmem:[%s6249_s13 + $0x3f0] sm:$0xff] }
 0x107   : > { %v7125_v33 = vpop.f32.mrf.mxu1  ;;  %5893 = vmatmul.mubr.msk.f32.gmra.mxu1 %vm415_vm1, %v405_v21  ;;  %1243 = vmatprep.mubr.f32.mxu0 %v9659_v3  ;;  %v2352_v21 = vadd.f32 %v7132_v29, %v6920_v13  ;;  %v2353_v13 = vadd.f32 %v7132_v29, %v6935_v24  ;;  %v2354_v24 = vadd.f32 %v7132_v29, %v6953_v63 }
 0x108   : > { %9695 = vst [vmem:[#allocation36_spill] sm:$0xff] %v7125_v33  ;;  %v7134_v28 = vpop.f32.mrf.mxu0  ;;  %5895 = vmatprep.mubr.msk.f32.mxu1 %vm415_vm1, %v406_v31  ;;  %v9699_v33 = vmov 0.0   ;;  %v409_v31 = vld [vmem:[%s6249_s13 + $0x3f8] sm:$0xff]  ;;  %v2355_v63 = vadd.f32 %v7132_v29, %v6968_v35 }
 0x109   : > { %9696 = vst [vmem:[#allocation37_spill] sm:$0xff] %v7134_v28  ;;  %v7138_v32 = vpop.f32.mrf.mxu1 }
 0x10a   : > { %9697 = vst [vmem:[#allocation38_spill] sm:$0xff] %v7138_v32  ;;  %v7141_v19 = vpop.f32.mrf.mxu0  ;;  %5234 = vmatmul.mubr.msk.f32.gmra.mxu0 %vm415_vm1, %v6685_v37  ;;  %v2480_v37 = vmax.f32 %v2352_v21, 0.0  ;;  %v2483_v35 = vmax.f32 %v2355_v63, 0.0 }
 0x10b   : > { %v7147_v3 = vpop.f32.mrf.mxu1  ;;  %5896 = vmatmul.mubr.msk.f32.gmra.mxu1 %vm415_vm1, %v407_v30  ;;  %1249 = vmatprep.mubr.f32.mxu0 %v9699_v33 }
 0x10c   : > { %9698 = vst [vmem:[#allocation39_spill] sm:$0xff] %v7147_v3  ;;  %v7151_v28 = vpop.f32.mrf.mxu0  ;;  %5898 = vmatprep.mubr.msk.f32.mxu1 %vm415_vm1, %v408_v36 }
 0x10d   : > { %v7155_v32 = vpop.f32.mrf.mxu1 }
 0x10e   : > { %9700 = vst [vmem:[#allocation40_spill] sm:$0xff] %v7155_v32  ;;  %v7157_v26 = vpop.f32.mrf.mxu0  ;;  %5235 = vmatmul.mubr.msk.f32.gmra.mxu0 %vm415_vm1, %v6695_v38  ;;  %v2481_v38 = vmax.f32 %v2353_v13, 0.0 }
 0x10f   : > { %v7163_v3 = vpop.f32.mrf.mxu1  ;;  %5899 = vmatmul.mubr.msk.f32.gmra.mxu1 %vm415_vm1, %v409_v31  ;;  %1255 = vmatprep.mubr.f32.mxu0 %v9699_v33 }
 0x110   : > { %9701 = vst [vmem:[#allocation41_spill] sm:$0xff] %v7163_v3  ;;  %v7167_v30 = vpop.f32.mrf.mxu0  ;;  %2704 = vmatprep.mubr.f32.mxu1 %v9699_v33 }
 0x111   : > { %v7170_v36 = vpop.f32.mrf.mxu1 }
 0x112   : > { %9702 = vst [vmem:[#allocation42_spill] sm:$0xff] %v7170_v36  ;;  %v7172_v32 = vpop.f32.mrf.mxu0  ;;  %5236 = vmatmul.mubr.msk.f32.gmra.mxu0 %vm415_vm1, %v6698_v39  ;;  %v2482_v39 = vmax.f32 %v2354_v24, 0.0 }
 0x113   : > { %v7178_v21 = vpop.f32.mrf.mxu1  ;;  %2705 = vmatmul.mubr.f32.vlgmr.msra.gmra.mxu1 %v2480_v37  ;;  %1261 = vmatprep.mubr.f32.mxu0 %v9699_v33 }
 0x114   : > { %9703 = vst [vmem:[#allocation43_spill] sm:$0xff] %v7178_v21  ;;  %v7181_v31 = vpop.f32.mrf.mxu0  ;;  %2710 = vmatprep.mubr.f32.mxu1 %v9699_v33 }
 0x115   : > { %v7184_v3 = vpop.f32.mrf.mxu1 }
 0x116   : > { %9704 = vst [vmem:[#allocation44_spill] sm:$0xff] %v7184_v3  ;;  %v7186_v36 = vpop.f32.mrf.mxu0  ;;  %5237 = vmatmul.mubr.msk.f32.gmra.mxu0 %vm415_vm1, %v6708_v40  ;;  %v4001_v3 = vld [vmem:[%s9654_s3 + $0x48] sm:$0xff] }
 0x117   : > { %v7192_v13 = vpop.f32.mrf.mxu1  ;;  %2711 = vmatmul.mubr.f32.gmra.mxu1 %v2481_v38  ;;  %1267 = vmatprep.mubr.f32.mxu0 %v9699_v33  ;;  %v2356_v38 = vadd.f32 %v7132_v29, %v6983_v10  ;;  %v2357_v10 = vadd.f32 %v7132_v29, %v6998_v18  ;;  %v2358_v18 = vadd.f32 %v7132_v29, %v7013_v17 }
 0x118   : > { %9705 = vst [vmem:[#allocation45_spill] sm:$0xff] %v7192_v13  ;;  %v7195_v37 = vpop.f32.mrf.mxu0  ;;  %2716 = vmatprep.mubr.f32.mxu1 %v9699_v33  ;;  %5913 = vmatprep.subr.mxu0 %v4001_v3  ;;  %v2359_v17 = vadd.f32 %v7132_v29, %v7028_v14  ;;  %v2360_v14 = vadd.f32 %v7132_v29, %v7043_v23 }
 0x119   : > { %9706 = vst [vmem:[#allocation46_spill] sm:$0xff] %v7195_v37  ;;  %v7198_v21 = vpop.f32.mrf.mxu1  ;;  %5914 = vmatpush3.msra.mxu0 %v4001_v3  ;;  %v2361_v23 = vadd.f32 %v7132_v29, %v7058_v16  ;;  %v2362_v16 = vadd.f32 %v7132_v29, %v7076_v20  ;;  %v2363_v20 = vadd.f32 %v7132_v29, %v7091_v46 }
 0x11a   : > { %9707 = vst [vmem:[#allocation47_spill] sm:$0xff] %v7198_v21  ;;  %v7203_v40 = vpop.f32.mrf.mxu0  ;;  %5238 = vmatmul.mubr.msk.f32.gmra.mxu0 %vm415_vm1, %v6711_v41  ;;  %v2484_v41 = vmax.f32 %v2356_v38, 0.0 }
 0x11b   : > { %v7209_v24 = vpop.f32.mrf.mxu1  ;;  %2717 = vmatmul.mubr.f32.gmra.mxu1 %v2482_v39  ;;  %1273 = vmatprep.mubr.f32.mxu0 %v9699_v33  ;;  %v2491_v46 = vmax.f32 %v2363_v20, 0.0 }
 0x11c   : > { %9708 = vst [vmem:[#allocation48_spill] sm:$0xff] %v7209_v24  ;;  %v7212_v21 = vpop.f32.mrf.mxu0  ;;  %2722 = vmatprep.mubr.f32.mxu1 %v9699_v33 }
 0x11d   : > { %v7215_v13 = vpop.f32.mrf.mxu1 }
 0x11e   : > { %9709 = vst [vmem:[#allocation49_spill] sm:$0xff] %v7215_v13  ;;  %v7217_v37 = vpop.f32.mrf.mxu0  ;;  %5239 = vmatmul.mubr.msk.f32.gmra.mxu0 %vm415_vm1, %v6721_v42  ;;  %v2485_v42 = vmax.f32 %v2357_v10, 0.0 }
 0x11f   : > { %v7223_v63 = vpop.f32.mrf.mxu1  ;;  %2723 = vmatmul.mubr.f32.gmra.mxu1 %v2483_v35  ;;  %1279 = vmatprep.mubr.f32.mxu0 %v9699_v33 }
 0x120   : > { %9710 = vst [vmem:[#allocation50_spill] sm:$0xff] %v7223_v63  ;;  %v7226_v39 = vpop.f32.mrf.mxu0  ;;  %2728 = vmatprep.mubr.f32.mxu1 %v9699_v33 }
 0x121   : > { %v7229_v3 = vpop.f32.mrf.mxu1 }
 0x122   : > { %9711 = vst [vmem:[#allocation51_spill] sm:$0xff] %v7229_v3  ;;  %v7231_v13 = vpop.f32.mrf.mxu0  ;;  %5240 = vmatmul.mubr.msk.f32.gmra.mxu0 %vm415_vm1, %v6724_v43  ;;  %v2486_v43 = vmax.f32 %v2358_v18, 0.0 }
 0x123   : > { %v7237_v38 = vpop.f32.mrf.mxu1  ;;  %2729 = vmatmul.mubr.f32.gmra.mxu1 %v2484_v41  ;;  %1285 = vmatprep.mubr.f32.mxu0 %v9699_v33 }
 0x124   : > { %9712 = vst [vmem:[#allocation52_spill] sm:$0xff] %v7237_v38  ;;  %v7240_v35 = vpop.f32.mrf.mxu0  ;;  %2734 = vmatprep.mubr.f32.mxu1 %v9699_v33 }
 0x125   : > { %v7243_v63 = vpop.f32.mrf.mxu1 }
 0x126   : > { %9713 = vst [vmem:[#allocation53_spill] sm:$0xff] %v7243_v63  ;;  %v7245_v3 = vpop.f32.mrf.mxu0  ;;  %5241 = vmatmul.mubr.msk.f32.gmra.mxu0 %vm415_vm1, %v6734_v44  ;;  %v2487_v44 = vmax.f32 %v2359_v17, 0.0 }
 0x127   : > { %v7251_v10 = vpop.f32.mrf.mxu1  ;;  %2735 = vmatmul.mubr.f32.gmra.mxu1 %v2485_v42  ;;  %1291 = vmatprep.mubr.f32.mxu0 %v9699_v33 }
 0x128   : > { %9714 = vst [vmem:[#allocation54_spill] sm:$0xff] %v7251_v10  ;;  %v7254_v41 = vpop.f32.mrf.mxu0  ;;  %2740 = vmatprep.mubr.f32.mxu1 %v9699_v33 }
 0x129   : > { %v7257_v38 = vpop.f32.mrf.mxu1 }
 0x12a   : > { %9715 = vst [vmem:[#allocation55_spill] sm:$0xff] %v7257_v38  ;;  %v7259_v63 = vpop.f32.mrf.mxu0  ;;  %5242 = vmatmul.mubr.msk.f32.gmra.mxu0 %vm415_vm1, %v6737_v45  ;;  %v2488_v45 = vmax.f32 %v2360_v14, 0.0 }
 0x12b   : > { %v7265_v18 = vpop.f32.mrf.mxu1  ;;  %2741 = vmatmul.mubr.f32.gmra.mxu1 %v2486_v43  ;;  %1297 = vmatprep.mubr.f32.mxu0 %v9699_v33 }
 0x12c   : > { %9716 = vst [vmem:[#allocation56_spill] sm:$0xff] %v7265_v18  ;;  %v7268_v42 = vpop.f32.mrf.mxu0  ;;  %2746 = vmatprep.mubr.f32.mxu1 %v9699_v33 }
 0x12d   : > { %v7271_v10 = vpop.f32.mrf.mxu1 }
 0x12e   : > { %9717 = vst [vmem:[#allocation57_spill] sm:$0xff] %v7271_v10  ;;  %v7273_v38 = vpop.f32.mrf.mxu0  ;;  %5243 = vmatmul.mubr.msk.f32.gmra.mxu0 %vm415_vm1, %v6750_v47  ;;  %v2489_v47 = vmax.f32 %v2361_v23, 0.0 }
 0x12f   : > { %v7279_v17 = vpop.f32.mrf.mxu1  ;;  %2747 = vmatmul.mubr.f32.gmra.mxu1 %v2487_v44  ;;  %1303 = vmatprep.mubr.f32.mxu0 %v9699_v33 }
 0x130   : > { %9718 = vst [vmem:[#allocation58_spill] sm:$0xff] %v7279_v17  ;;  %v7282_v43 = vpop.f32.mrf.mxu0  ;;  %2752 = vmatprep.mubr.f32.mxu1 %v9699_v33 }
 0x131   : > { %v7285_v18 = vpop.f32.mrf.mxu1 }
 0x132   : > { %9719 = vst [vmem:[#allocation59_spill] sm:$0xff] %v7285_v18  ;;  %v7287_v10 = vpop.f32.mrf.mxu0  ;;  %5244 = vmatmul.mubr.msk.f32.gmra.mxu0 %vm415_vm1, %v6753_v48  ;;  %v2490_v48 = vmax.f32 %v2362_v16, 0.0 }
 0x133   : > { %v7293_v14 = vpop.f32.mrf.mxu1  ;;  %2753 = vmatmul.mubr.f32.gmra.mxu1 %v2488_v45  ;;  %1309 = vmatprep.mubr.f32.mxu0 %v9699_v33 }
 0x134   : > { %9720 = vst [vmem:[#allocation60_spill] sm:$0xff] %v7293_v14  ;;  %v7296_v44 = vpop.f32.mrf.mxu0  ;;  %2758 = vmatprep.mubr.f32.mxu1 %v9699_v33 }
 0x135   : > { %v7299_v17 = vpop.f32.mrf.mxu1 }
 0x136   : > { %9721 = vst [vmem:[#allocation61_spill] sm:$0xff] %v7299_v17  ;;  %v7301_v18 = vpop.f32.mrf.mxu0  ;;  %5245 = vmatmul.mubr.msk.f32.gmra.mxu0 %vm415_vm1, %v6763_v49  ;;  %v4000_v17 = vld [vmem:[%s9654_s3 + $0x40] sm:$0xff] }
 0x137   : > { %v7307_v23 = vpop.f32.mrf.mxu1  ;;  %2759 = vmatmul.mubr.f32.gmra.mxu1 %v2489_v47  ;;  %1315 = vmatprep.mubr.f32.mxu0 %v9699_v33  ;;  %v2364_v47 = vadd.f32 %v7132_v29, %v7106_v22  ;;  %v2365_v22 = vadd.f32 %v7132_v29, %v7121_v25  ;;  %v2366_v25 = vadd.f32 %v7132_v29, %v7141_v19 }
 0x138   : > { %9722 = vst [vmem:[#allocation62_spill] sm:$0xff] %v7307_v23  ;;  %v7310_v45 = vpop.f32.mrf.mxu0  ;;  %2764 = vmatprep.mubr.f32.mxu1 %v9699_v33  ;;  %5915 = vmatprep.subr.mxu0 %v4000_v17  ;;  %v2367_v19 = vadd.f32 %v7132_v29, %v7157_v26  ;;  %v2368_v26 = vadd.f32 %v7132_v29, %v7172_v32 }
 0x139   : > { %v7313_v14 = vpop.f32.mrf.mxu1  ;;  %5916 = vmatpush3.msra.mxu0 %v4000_v17  ;;  %v2369_v32 = vadd.f32 %v7132_v29, %v7186_v36  ;;  %v2370_v36 = vadd.f32 %v7132_v29, %v7203_v40  ;;  %v2371_v40 = vadd.f32 %v7132_v29, %v7217_v37  ;;  %v2372_v37 = vadd.f32 %v7132_v29, %v7231_v13 }
 0x13a   : > { %9723 = vst [vmem:[#allocation63_spill] sm:$0xff] %v7313_v14  ;;  %v7318_v49 = vpop.f32.mrf.mxu0  ;;  %5246 = vmatmul.mubr.msk.f32.gmra.mxu0 %vm415_vm1, %v6766_v50  ;;  %v2492_v50 = vmax.f32 %v2364_v47, 0.0 }
 0x13b   : > { %v7324_v16 = vpop.f32.mrf.mxu1  ;;  %2765 = vmatmul.mubr.f32.gmra.mxu1 %v2490_v48  ;;  %1321 = vmatprep.mubr.f32.mxu0 %v9699_v33  ;;  %v2500_v13 = vmax.f32 %v2372_v37, 0.0 }
 0x13c   : > { %9724 = vst [vmem:[#allocation64_spill] sm:$0xff] %v7324_v16  ;;  %v7327_v14 = vpop.f32.mrf.mxu0  ;;  %2770 = vmatprep.mubr.f32.mxu1 %v9699_v33 }
 0x13d   : > { %v7330_v23 = vpop.f32.mrf.mxu1 }
 0x13e   : > { %9725 = vst [vmem:[#allocation65_spill] sm:$0xff] %v7330_v23  ;;  %v7332_v24 = vpop.f32.mrf.mxu0  ;;  %5247 = vmatmul.mubr.msk.f32.gmra.mxu0 %vm415_vm1, %v6776_v51  ;;  %v2493_v51 = vmax.f32 %v2365_v22, 0.0 }
 0x13f   : > { %v7338_v20 = vpop.f32.mrf.mxu1  ;;  %2771 = vmatmul.mubr.f32.gmra.mxu1 %v2491_v46  ;;  %1327 = vmatprep.mubr.f32.mxu0 %v9699_v33 }
 0x140   : > { %9726 = vst [vmem:[#allocation66_spill] sm:$0xff] %v7338_v20  ;;  %v7341_v48 = vpop.f32.mrf.mxu0  ;;  %2776 = vmatprep.mubr.f32.mxu1 %v9699_v33 }
 0x141   : > { %v7344_v17 = vpop.f32.mrf.mxu1 }
 0x142   : > { %9727 = vst [vmem:[#allocation67_spill] sm:$0xff] %v7344_v17  ;;  %v7346_v23 = vpop.f32.mrf.mxu0  ;;  %5248 = vmatmul.mubr.msk.f32.gmra.mxu0 %vm415_vm1, %v6779_v52  ;;  %v2494_v52 = vmax.f32 %v2366_v25, 0.0 }
 0x143   : > { %v7352_v47 = vpop.f32.mrf.mxu1  ;;  %2777 = vmatmul.mubr.f32.gmra.mxu1 %v2492_v50  ;;  %1333 = vmatprep.mubr.f32.mxu0 %v9699_v33 }
 0x144   : > { %9728 = vst [vmem:[#allocation68_spill] sm:$0xff] %v7352_v47  ;;  %v7355_v46 = vpop.f32.mrf.mxu0  ;;  %2782 = vmatprep.mubr.f32.mxu1 %v9699_v33 }
 0x145   : > { %v7358_v20 = vpop.f32.mrf.mxu1 }
 0x146   : > { %9729 = vst [vmem:[#allocation69_spill] sm:$0xff] %v7358_v20  ;;  %v7360_v17 = vpop.f32.mrf.mxu0  ;;  %5249 = vmatmul.mubr.msk.f32.gmra.mxu0 %vm415_vm1, %v6789_v53  ;;  %v2495_v53 = vmax.f32 %v2367_v19, 0.0 }
 0x147   : > { %v7366_v22 = vpop.f32.mrf.mxu1  ;;  %2783 = vmatmul.mubr.f32.gmra.mxu1 %v2493_v51  ;;  %1339 = vmatprep.mubr.f32.mxu0 %v9699_v33 }
 0x148   : > { %9730 = vst [vmem:[#allocation70_spill] sm:$0xff] %v7366_v22  ;;  %v7369_v50 = vpop.f32.mrf.mxu0  ;;  %2788 = vmatprep.mubr.f32.mxu1 %v9699_v33 }
 0x149   : > { %v7372_v47 = vpop.f32.mrf.mxu1 }
 0x14a   : > { %9731 = vst [vmem:[#allocation71_spill] sm:$0xff] %v7372_v47  ;;  %v7374_v20 = vpop.f32.mrf.mxu0  ;;  %5250 = vmatmul.mubr.msk.f32.gmra.mxu0 %vm415_vm1, %v6792_v54  ;;  %v2496_v54 = vmax.f32 %v2368_v26, 0.0 }
 0x14b   : > { %v7380_v25 = vpop.f32.mrf.mxu1  ;;  %2789 = vmatmul.mubr.f32.gmra.mxu1 %v2494_v52  ;;  %1345 = vmatprep.mubr.f32.mxu0 %v9699_v33 }
 0x14c   : > { %9732 = vst [vmem:[#allocation72_spill] sm:$0xff] %v7380_v25  ;;  %v7383_v51 = vpop.f32.mrf.mxu0  ;;  %2794 = vmatprep.mubr.f32.mxu1 %v9699_v33 }
 0x14d   : > { %v7386_v22 = vpop.f32.mrf.mxu1 }
 0x14e   : > { %9733 = vst [vmem:[#allocation73_spill] sm:$0xff] %v7386_v22  ;;  %v7388_v47 = vpop.f32.mrf.mxu0  ;;  %5251 = vmatmul.mubr.msk.f32.gmra.mxu0 %vm415_vm1, %v6802_v55  ;;  %v2497_v55 = vmax.f32 %v2369_v32, 0.0 }
 0x14f   : > { %v7394_v19 = vpop.f32.mrf.mxu1  ;;  %2795 = vmatmul.mubr.f32.gmra.mxu1 %v2495_v53  ;;  %1351 = vmatprep.mubr.f32.mxu0 %v9699_v33 }
 0x150   : > { %9734 = vst [vmem:[#allocation74_spill] sm:$0xff] %v7394_v19  ;;  %v7397_v52 = vpop.f32.mrf.mxu0  ;;  %2800 = vmatprep.mubr.f32.mxu1 %v9699_v33 }
 0x151   : > { %v7400_v25 = vpop.f32.mrf.mxu1 }
 0x152   : > { %9735 = vst [vmem:[#allocation75_spill] sm:$0xff] %v7400_v25  ;;  %v7402_v22 = vpop.f32.mrf.mxu0  ;;  %5252 = vmatmul.mubr.msk.f32.gmra.mxu0 %vm415_vm1, %v6805_v56  ;;  %v2498_v56 = vmax.f32 %v2370_v36, 0.0 }
 0x153   : > { %v7408_v26 = vpop.f32.mrf.mxu1  ;;  %2801 = vmatmul.mubr.f32.gmra.mxu1 %v2496_v54  ;;  %1357 = vmatprep.mubr.f32.mxu0 %v9699_v33 }
 0x154   : > { %9736 = vst [vmem:[#allocation76_spill] sm:$0xff] %v7408_v26  ;;  %v7411_v53 = vpop.f32.mrf.mxu0  ;;  %2806 = vmatprep.mubr.f32.mxu1 %v9699_v33 }
 0x155   : > { %v7414_v19 = vpop.f32.mrf.mxu1 }
 0x156   : > { %9737 = vst [vmem:[#allocation77_spill] sm:$0xff] %v7414_v19  ;;  %v7416_v25 = vpop.f32.mrf.mxu0  ;;  %5253 = vmatmul.mubr.msk.f32.gmra.mxu0 %vm415_vm1, %v6815_v57  ;;  %v2499_v57 = vmax.f32 %v2371_v40, 0.0 }
 0x157   : > { %v7422_v32 = vpop.f32.mrf.mxu1  ;;  %2807 = vmatmul.mubr.f32.gmra.mxu1 %v2497_v55  ;;  %1363 = vmatprep.mubr.f32.mxu0 %v9699_v33 }
 0x158   : > { %9738 = vst [vmem:[#allocation78_spill] sm:$0xff] %v7422_v32  ;;  %v7425_v54 = vpop.f32.mrf.mxu0  ;;  %2812 = vmatprep.mubr.f32.mxu1 %v9699_v33 }
 0x159   : > { %9739 = vst [vmem:[#allocation79_spill] sm:$0xff] %v7425_v54  ;;  %v7428_v26 = vpop.f32.mrf.mxu1 }
 0x15a   : > { %9740 = vst [vmem:[#allocation80_spill] sm:$0xff] %v7428_v26  ;;  %v7430_v19 = vpop.f32.mrf.mxu0  ;;  %5254 = vmatmul.mubr.msk.f32.gmra.mxu0 %vm415_vm1, %v6818_v58  ;;  %v3999_v26 = vld [vmem:[%s9654_s3 + $0x38] sm:$0xff] }
 0x15b   : > { %v7436_v36 = vpop.f32.mrf.mxu1  ;;  %2813 = vmatmul.mubr.f32.gmra.mxu1 %v2498_v56  ;;  %1369 = vmatprep.mubr.f32.mxu0 %v9699_v33  ;;  %v2373_v56 = vadd.f32 %v7132_v29, %v7245_v3  ;;  %v2374_v3 = vadd.f32 %v7132_v29, %v7259_v63  ;;  %v2375_v63 = vadd.f32 %v7132_v29, %v7273_v38 }
 0x15c   : > { %9741 = vst [vmem:[#allocation81_spill] sm:$0xff] %v7436_v36  ;;  %v7439_v55 = vpop.f32.mrf.mxu0  ;;  %2818 = vmatprep.mubr.f32.mxu1 %v9699_v33  ;;  %5917 = vmatprep.subr.mxu0 %v3999_v26  ;;  %v2376_v38 = vadd.f32 %v7132_v29, %v7287_v10  ;;  %v2377_v10 = vadd.f32 %v7132_v29, %v7301_v18 }
 0x15d   : > { %9742 = vst [vmem:[#allocation82_spill] sm:$0xff] %v7439_v55  ;;  %v7445_v32 = vpop.f32.mrf.mxu1  ;;  %5918 = vmatpush3.msra.mxu0 %v3999_v26  ;;  %v2378_v18 = vadd.f32 %v7132_v29, %v7318_v49  ;;  %v2379_v49 = vadd.f32 %v7132_v29, %v7332_v24  ;;  %v2380_v24 = vadd.f32 %v7132_v29, %v7346_v23  ;;  %v6166_v55 = vld [vmem:[%s6249_s13 + $0x3f0] sm:$0xff] }
 0x15e   : > { %9743 = vst [vmem:[#allocation83_spill] sm:$0xff] %v7445_v32  ;;  %v7447_v58 = vpop.f32.mrf.mxu0  ;;  %5255 = vmatmul.mubr.msk.f32.gmra.mxu0 %vm415_vm1, %v6828_v59  ;;  %v2501_v59 = vmax.f32 %v2373_v56, 0.0 }
 0x15f   : > { %v7453_v40 = vpop.f32.mrf.mxu1  ;;  %2819 = vmatmul.mubr.f32.gmra.mxu1 %v2499_v57  ;;  %1375 = vmatprep.mubr.f32.mxu0 %v9699_v33  ;;  %v2508_v23 = vmax.f32 %v2380_v24, 0.0 }
 0x160   : > { %9744 = vst [vmem:[#allocation84_spill] sm:$0xff] %v7453_v40  ;;  %v7456_v36 = vpop.f32.mrf.mxu0  ;;  %2824 = vmatprep.mubr.f32.mxu1 %v9699_v33 }
 0x161   : > { %9745 = vst [vmem:[#allocation85_spill] sm:$0xff] %v7456_v36  ;;  %v7459_v32 = vpop.f32.mrf.mxu1 }
 0x162   : > { %9746 = vst [vmem:[#allocation86_spill] sm:$0xff] %v7459_v32  ;;  %v7461_v16 = vpop.f32.mrf.mxu0  ;;  %5256 = vmatmul.mubr.msk.f32.gmra.mxu0 %vm415_vm1, %v6831_v60  ;;  %v2502_v60 = vmax.f32 %v2374_v3, 0.0 }
 0x163   : > { %v7467_v37 = vpop.f32.mrf.mxu1  ;;  %2825 = vmatmul.mubr.f32.gmra.mxu1 %v2500_v13  ;;  %1381 = vmatprep.mubr.f32.mxu0 %v9699_v33 }
 0x164   : > { %9747 = vst [vmem:[#allocation87_spill] sm:$0xff] %v7467_v37  ;;  %v7470_v57 = vpop.f32.mrf.mxu0  ;;  %2830 = vmatprep.mubr.f32.mxu1 %v9699_v33 }
 0x165   : > { %9748 = vst [vmem:[#allocation88_spill] sm:$0xff] %v7470_v57  ;;  %v7473_v26 = vpop.f32.mrf.mxu1  ;;  %v6164_v57 = vld [vmem:[%s6249_s13 + $0x3e0] sm:$0xff] }
 0x166   : > { %9749 = vst [vmem:[#allocation89_spill] sm:$0xff] %v7473_v26  ;;  %v7475_v32 = vpop.f32.mrf.mxu0  ;;  %5257 = vmatmul.mubr.msk.f32.gmra.mxu0 %vm415_vm1, %v6841_v61  ;;  %v2503_v61 = vmax.f32 %v2375_v63, 0.0 }
 0x167   : > { %v7481_v56 = vpop.f32.mrf.mxu1  ;;  %2831 = vmatmul.mubr.f32.gmra.mxu1 %v2501_v59  ;;  %1387 = vmatprep.mubr.f32.mxu0 %v9699_v33 }
 0x168   : > { %9750 = vst [vmem:[#allocation90_spill] sm:$0xff] %v7481_v56  ;;  %v7484_v13 = vpop.f32.mrf.mxu0  ;;  %2836 = vmatprep.mubr.f32.mxu1 %v9699_v33 }
 0x169   : > { %9751 = vst [vmem:[#allocation91_spill] sm:$0xff] %v7484_v13  ;;  %v7487_v37 = vpop.f32.mrf.mxu1  ;;  %v6163_v13 = vld [vmem:[%s6249_s13 + $0x3d8] sm:$0xff] }
 0x16a   : > { %9752 = vst [vmem:[#allocation92_spill] sm:$0xff] %v7487_v37  ;;  %v7489_v26 = vpop.f32.mrf.mxu0  ;;  %5258 = vmatmul.mubr.msk.f32.gmra.mxu0 %vm415_vm1, %v6844_v62  ;;  %v2504_v62 = vmax.f32 %v2376_v38, 0.0 }
 0x16b   : > { %v7495_v3 = vpop.f32.mrf.mxu1  ;;  %2837 = vmatmul.mubr.f32.gmra.mxu1 %v2502_v60  ;;  %1393 = vmatprep.mubr.f32.mxu0 %v9699_v33 }
 0x16c   : > { %9753 = vst [vmem:[#allocation93_spill] sm:$0xff] %v7495_v3  ;;  %v7498_v59 = vpop.f32.mrf.mxu0  ;;  %2842 = vmatprep.mubr.f32.mxu1 %v9699_v33 }
 0x16d   : > { %9754 = vst [vmem:[#allocation94_spill] sm:$0xff] %v7498_v59  ;;  %v7501_v56 = vpop.f32.mrf.mxu1  ;;  %v6162_v59 = vld [vmem:[%s6249_s13 + $0x3d0] sm:$0xff] }
 0x16e   : > { %9755 = vst [vmem:[#allocation95_spill] sm:$0xff] %v7501_v56  ;;  %v7503_v37 = vpop.f32.mrf.mxu0  ;;  %5259 = vmatmul.mubr.msk.f32.gmra.mxu0 %vm415_vm1, %v6857_v0  ;;  %v2505_v0 = vmax.f32 %v2377_v10, 0.0 }
 0x16f   : > { %v7509_v63 = vpop.f32.mrf.mxu1  ;;  %2843 = vmatmul.mubr.f32.gmra.mxu1 %v2503_v61  ;;  %1399 = vmatprep.mubr.f32.mxu0 %v9699_v33 }
 0x170   : > { %9756 = vst [vmem:[#allocation96_spill] sm:$0xff] %v7509_v63  ;;  %v7512_v60 = vpop.f32.mrf.mxu0  ;;  %2848 = vmatprep.mubr.f32.mxu1 %v9699_v33 }
 0x171   : > { %9757 = vst [vmem:[#allocation97_spill] sm:$0xff] %v7512_v60  ;;  %v7515_v3 = vpop.f32.mrf.mxu1  ;;  %v6161_v60 = vld [vmem:[%s6249_s13 + $0x3c8] sm:$0xff] }
 0x172   : > { %9758 = vst [vmem:[#allocation98_spill] sm:$0xff] %v7515_v3  ;;  %v7517_v56 = vpop.f32.mrf.mxu0  ;;  %5260 = vmatmul.mubr.msk.f32.gmra.mxu0 %vm415_vm1, %v6860_v1  ;;  %v2506_v1 = vmax.f32 %v2378_v18, 0.0 }
 0x173   : > { %v7523_v38 = vpop.f32.mrf.mxu1  ;;  %2849 = vmatmul.mubr.f32.gmra.mxu1 %v2504_v62  ;;  %1405 = vmatprep.mubr.f32.mxu0 %v9699_v33 }
 0x174   : > { %9759 = vst [vmem:[#allocation99_spill] sm:$0xff] %v7523_v38  ;;  %v7526_v61 = vpop.f32.mrf.mxu0  ;;  %2854 = vmatprep.mubr.f32.mxu1 %v9699_v33 }
 0x175   : > { %9760 = vst [vmem:[#allocation100_spill] sm:$0xff] %v7526_v61  ;;  %v7529_v63 = vpop.f32.mrf.mxu1  ;;  %v6160_v61 = vld [vmem:[%s6249_s13 + $0x3c0] sm:$0xff] }
 0x176   : > { %9761 = vst [vmem:[#allocation101_spill] sm:$0xff] %v7529_v63  ;;  %v7531_v3 = vpop.f32.mrf.mxu0  ;;  %5261 = vmatmul.mubr.msk.f32.gmra.mxu0 %vm415_vm1, %v6870_v2  ;;  %v2507_v2 = vmax.f32 %v2379_v49, 0.0 }
 0x177   : > { %v7537_v10 = vpop.f32.mrf.mxu1  ;;  %2855 = vmatmul.mubr.f32.gmra.mxu1 %v2505_v0  ;;  %1411 = vmatprep.mubr.f32.mxu0 %v9699_v33 }
 0x178   : > { %9762 = vst [vmem:[#allocation102_spill] sm:$0xff] %v7537_v10  ;;  %v7540_v62 = vpop.f32.mrf.mxu0  ;;  %2860 = vmatprep.mubr.f32.mxu1 %v9699_v33 }
 0x179   : > { %9763 = vst [vmem:[#allocation103_spill] sm:$0xff] %v7540_v62  ;;  %v7543_v38 = vpop.f32.mrf.mxu1  ;;  %v6159_v62 = vld [vmem:[%s6249_s13 + $0x3b8] sm:$0xff] }
 0x17a   : > { %9764 = vst [vmem:[#allocation104_spill] sm:$0xff] %v7543_v38  ;;  %v7545_v63 = vpop.f32.mrf.mxu0  ;;  %5262 = vmatmul.mubr.msk.f32.gmra.mxu0 %vm415_vm1, %v6873_v4  ;;  %v3998_v38 = vld [vmem:[%s9654_s3 + $0x30] sm:$0xff] }
 0x17b   : > { %v7551_v18 = vpop.f32.mrf.mxu1  ;;  %2861 = vmatmul.mubr.f32.gmra.mxu1 %v2506_v1  ;;  %1417 = vmatprep.mubr.f32.mxu0 %v9699_v33  ;;  %v2381_v1 = vadd.f32 %v7132_v29, %v7360_v17  ;;  %v2382_v17 = vadd.f32 %v7132_v29, %v7374_v20 }
 0x17c   : > { %9765 = vst [vmem:[#allocation105_spill] sm:$0xff] %v7551_v18  ;;  %v7554_v0 = vpop.f32.mrf.mxu0  ;;  %2866 = vmatprep.mubr.f32.mxu1 %v9699_v33  ;;  %5919 = vmatprep.subr.mxu0 %v3998_v38 }
 0x17d   : > { %9766 = vst [vmem:[#allocation106_spill] sm:$0xff] %v7554_v0  ;;  %v7560_v10 = vpop.f32.mrf.mxu1  ;;  %5920 = vmatpush3.msra.mxu0 %v3998_v38  ;;  %v2510_v20 = vmax.f32 %v2382_v17, 0.0  ;;  %v6158_v0 = vld [vmem:[%s6249_s13 + $0x3b0] sm:$0xff] }
 0x17e   : > { %9767 = vst [vmem:[#allocation107_spill] sm:$0xff] %v7560_v10  ;;  %v7562_v4 = vpop.f32.mrf.mxu0  ;;  %5263 = vmatmul.mubr.msk.f32.gmra.mxu0 %vm415_vm1, %v6883_v5  ;;  %v2509_v5 = vmax.f32 %v2381_v1, 0.0 }
 0x17f   : > { %v7568_v49 = vpop.f32.mrf.mxu1  ;;  %2867 = vmatmul.mubr.f32.gmra.mxu1 %v2507_v2  ;;  %1423 = vmatprep.mubr.f32.mxu0 %v9699_v33 }
 0x180   : > { %9768 = vst [vmem:[#allocation108_spill] sm:$0xff] %v7568_v49  ;;  %v7571_v18 = vpop.f32.mrf.mxu0  ;;  %2872 = vmatprep.mubr.f32.mxu1 %v9699_v33 }
 0x181   : > { %9769 = vst [vmem:[#allocation109_spill] sm:$0xff] %v7571_v18  ;;  %v7574_v10 = vpop.f32.mrf.mxu1  ;;  %v6157_v18 = vld [vmem:[%s6249_s13 + $0x3a8] sm:$0xff] }
 0x182   : > { %9770 = vst [vmem:[#allocation110_spill] sm:$0xff] %v7574_v10  ;;  %v7576_v40 = vpop.f32.mrf.mxu0  ;;  %5264 = vmatmul.mubr.msk.f32.gmra.mxu0 %vm415_vm1, %v6886_v6  ;;  %v3997_v10 = vld [vmem:[%s9654_s3 + $0x28] sm:$0xff] }
 0x183   : > { %v7582_v24 = vpop.f32.mrf.mxu1  ;;  %2873 = vmatmul.mubr.f32.gmra.mxu1 %v2508_v23  ;;  %1429 = vmatprep.mubr.f32.mxu0 %v9699_v33  ;;  %v2383_v23 = vadd.f32 %v7132_v29, %v7388_v47  ;;  %v3995_v47 = vld [vmem:[%s9654_s3 + $0x18] sm:$0xff] }
 0x184   : > { %9771 = vst [vmem:[#allocation111_spill] sm:$0xff] %v7582_v24  ;;  %v7585_v2 = vpop.f32.mrf.mxu0  ;;  %2878 = vmatprep.mubr.f32.mxu1 %v9699_v33  ;;  %5921 = vmatprep.subr.mxu0 %v3997_v10 }
 0x185   : > { %9772 = vst [vmem:[#allocation112_spill] sm:$0xff] %v7585_v2  ;;  %v7588_v38 = vpop.f32.mrf.mxu1  ;;  %5922 = vmatpush3.msra.mxu0 %v3997_v10  ;;  %v6156_v2 = vld [vmem:[%s6249_s13 + $0x3a0] sm:$0xff] }
 0x186   : > { %9773 = vst [vmem:[#allocation113_spill] sm:$0xff] %v7588_v38  ;;  %v7593_v6 = vpop.f32.mrf.mxu0  ;;  %5265 = vmatmul.mubr.msk.f32.gmra.mxu0 %vm415_vm1, %v6896_v7  ;;  %v3996_v38 = vld [vmem:[%s9654_s3 + $0x20] sm:$0xff] }
 0x187   : > { %v7599_v1 = vpop.f32.mrf.mxu1  ;;  %2879 = vmatmul.mubr.f32.gmra.mxu1 %v2509_v5  ;;  %1435 = vmatprep.mubr.f32.mxu0 %v9699_v33  ;;  %v2511_v5 = vmax.f32 %v2383_v23, 0.0  ;;  %v2385_v23 = vadd.f32 %v7132_v29, %v7416_v25  ;;  %v3993_v25 = vld [vmem:[%s9654_s3 + $0x8] sm:$0xff] }
 0x188   : > { %9774 = vst [vmem:[#allocation114_spill] sm:$0xff] %v7599_v1  ;;  %v7605_v24 = vpop.f32.mrf.mxu0  ;;  %2884 = vmatprep.mubr.f32.mxu1 %v9699_v33  ;;  %5923 = vmatprep.subr.mxu0 %v3996_v38  ;;  %v2384_v1 = vadd.f32 %v7132_v29, %v7402_v22  ;;  %v3994_v22 = vld [vmem:[%s9654_s3 + $0x10] sm:$0xff] }
 0x189   : > { %9775 = vst [vmem:[#allocation115_spill] sm:$0xff] %v7605_v24  ;;  %v7608_v7 = vpop.f32.mrf.mxu1  ;;  %5924 = vmatpush3.msra.mxu0 %v3996_v38  ;;  %v6155_v24 = vld [vmem:[%s6249_s13 + $0x398] sm:$0xff] }
 0x18a   : > { %9776 = vst [vmem:[#allocation116_spill] sm:$0xff] %v7608_v7  ;;  %v7610_v17 = vpop.f32.mrf.mxu0  ;;  %5266 = vmatmul.mubr.msk.f32.gmra.mxu0 %vm415_vm1, %v6899_v8  ;;  %5925 = vmatprep.subr.mxu0 %v3995_v47 }
 0x18b   : > { %v7619_v49 = vpop.f32.mrf.mxu1  ;;  %2885 = vmatmul.mubr.f32.gmra.mxu1 %v2510_v20  ;;  %1441 = vmatprep.mubr.f32.mxu0 %v9699_v33  ;;  %v2512_v20 = vmax.f32 %v2384_v1, 0.0  ;;  %v6135_v1 = vld [vmem:[%s6249_s13 + $0x300] sm:$0xff] }
 0x18c   : > { %9777 = vst [vmem:[#allocation117_spill] sm:$0xff] %v7619_v49  ;;  %v7622_v10 = vpop.f32.mrf.mxu0  ;;  %2890 = vmatprep.mubr.f32.mxu1 %v9699_v33  ;;  %5926 = vmatpush3.msra.mxu0 %v3995_v47 }
 0x18d   : > { %9778 = vst [vmem:[#allocation118_spill] sm:$0xff] %v7622_v10  ;;  %v7625_v7 = vpop.f32.mrf.mxu1  ;;  %5927 = vmatprep.subr.mxu0 %v3994_v22  ;;  %v6154_v10 = vld [vmem:[%s6249_s13 + $0x390] sm:$0xff] }
 0x18e   : > { %9779 = vst [vmem:[#allocation119_spill] sm:$0xff] %v7625_v7  ;;  %v7627_v8 = vpop.f32.mrf.mxu0  ;;  %5267 = vmatmul.mubr.msk.f32.gmra.mxu0 %vm415_vm1, %v6909_v9 }
 0x18f   : > { %v7636_v49 = vpop.f32.mrf.mxu1  ;;  %2891 = vmatmul.mubr.f32.gmra.mxu1 %v2511_v5  ;;  %1447 = vmatprep.mubr.f32.mxu0 %v9699_v33  ;;  %v2513_v5 = vmax.f32 %v2385_v23, 0.0  ;;  %v6136_v23 = vld [vmem:[%s6249_s13 + $0x308] sm:$0xff] }
 0x190   : > { %9780 = vst [vmem:[#allocation120_spill] sm:$0xff] %v7636_v49  ;;  %v7639_v38 = vpop.f32.mrf.mxu0  ;;  %2896 = vmatprep.mubr.f32.mxu1 %v9699_v33  ;;  %v2386_v49 = vadd.f32 %v7132_v29, %v7430_v19  ;;  %5928 = vmatpush3.msra.mxu0 %v3994_v22  ;;  %v3992_v19 = vld [vmem:[%s9654_s3] sm:$0xff] }
 0x191   : > { %9781 = vst [vmem:[#allocation121_spill] sm:$0xff] %v7639_v38  ;;  %v7642_v7 = vpop.f32.mrf.mxu1  ;;  %5929 = vmatprep.subr.mxu0 %v3993_v25 }
 0x192   : > { %9782 = vst [vmem:[#allocation122_spill] sm:$0xff] %v7642_v7  ;;  %v7644_v9 = vpop.f32.mrf.mxu0  ;;  %5268 = vmatmul.mubr.msk.f32.gmra.mxu0 %vm415_vm1, %v6135_v1 }
 0x193   : > { %v7653_v38 = vpop.f32.mrf.mxu1  ;;  %2897 = vmatmul.mubr.f32.gmra.mxu1 %v2512_v20  ;;  %1453 = vmatprep.mubr.f32.mxu0 %v9699_v33  ;;  %v2514_v20 = vmax.f32 %v2386_v49, 0.0  ;;  %v6137_v49 = vld [vmem:[%s6249_s13 + $0x310] sm:$0xff] }
 0x194   : > { %9783 = vst [vmem:[#allocation123_spill] sm:$0xff] %v7653_v38  ;;  %v7656_v47 = vpop.f32.mrf.mxu0  ;;  %2902 = vmatprep.mubr.f32.mxu1 %v9699_v33  ;;  %v2387_v38 = vadd.f32 %v7132_v29, %v7447_v58  ;;  %5930 = vmatpush3.msra.mxu0 %v3993_v25 }
 0x195   : > { %9784 = vst [vmem:[#allocation124_spill] sm:$0xff] %v7656_v47  ;;  %v7659_v7 = vpop.f32.mrf.mxu1  ;;  %5931 = vmatprep.subr.mxu0 %v3992_v19 }
 0x196   : > { %9785 = vst [vmem:[#allocation125_spill] sm:$0xff] %v7659_v7  ;;  %v7661_v1 = vpop.f32.mrf.mxu0  ;;  %5269 = vmatmul.mubr.msk.f32.gmra.mxu0 %vm415_vm1, %v6136_v23  ;;  %v2515_v58 = vmax.f32 %v2387_v38, 0.0 }
 0x197   : > { %v7670_v47 = vpop.f32.mrf.mxu1  ;;  %2903 = vmatmul.mubr.f32.gmra.mxu1 %v2513_v5  ;;  %1459 = vmatprep.mubr.f32.mxu0 %v9699_v33  ;;  %v2388_v5 = vadd.f32 %v7132_v29, %v7461_v16  ;;  %v2389_v16 = vadd.f32 %v7132_v29, %v7475_v32  ;;  %v2390_v32 = vadd.f32 %v7132_v29, %v7489_v26 }
 0x198   : > { %9786 = vst [vmem:[#allocation126_spill] sm:$0xff] %v7670_v47  ;;  %v7673_v22 = vpop.f32.mrf.mxu0  ;;  %2908 = vmatprep.mubr.f32.mxu1 %v9699_v33  ;;  %5932 = vmatpush3.msra.mxu0 %v3992_v19  ;;  %v2391_v26 = vadd.f32 %v7132_v29, %v7503_v37  ;;  %v2392_v37 = vadd.f32 %v7132_v29, %v7517_v56 }
 0x199   : > { %9787 = vst [vmem:[#allocation127_spill] sm:$0xff] %v7673_v22  ;;  %v7676_v23 = vpop.f32.mrf.mxu1  ;;  %v2516_v38 = vmax.f32 %v2388_v5, 0.0  ;;  %v2517_v5 = vmax.f32 %v2389_v16, 0.0  ;;  %v2393_v56 = vadd.f32 %v7132_v29, %v7531_v3  ;;  %v2394_v3 = vadd.f32 %v7132_v29, %v7545_v63 }
 0x19a   : > { %9788 = vst [vmem:[#allocation128_spill] sm:$0xff] %v7676_v23  ;;  %v7678_v7 = vpop.f32.mrf.mxu0  ;;  %5270 = vmatmul.mubr.msk.f32.gmra.mxu0 %vm415_vm1, %v6137_v49  ;;  %v6138_v49 = vld [vmem:[%s6249_s13 + $0x318] sm:$0xff]  ;;  %v2395_v63 = vadd.f32 %v7132_v29, %v7562_v4  ;;  %v2396_v4 = vadd.f32 %v7132_v29, %v7576_v40  ;;  %v2397_v40 = vadd.f32 %v7132_v29, %v7593_v6 }
 0x19b   : > { %v7684_v47 = vpop.f32.mrf.mxu1  ;;  %2909 = vmatmul.mubr.f32.gmra.mxu1 %v2514_v20  ;;  %1465 = vmatprep.mubr.f32.mxu0 %v9699_v33  ;;  %v2398_v6 = vadd.f32 %v7132_v29, %v7610_v17  ;;  %v2399_v17 = vadd.f32 %v7132_v29, %v7627_v8  ;;  %v7853_v29 = vld [vmem:[%s9655_s4] ss:$0 sm:$0xff] }
 0x19c   : > { %9789 = vst [vmem:[#allocation129_spill] sm:$0xff] %v7684_v47  ;;  %v7687_v22 = vpop.f32.mrf.mxu0  ;;  %2914 = vmatprep.mubr.f32.mxu1 %v9699_v33  ;;  %v2400_v8 = vadd.f32 %v7853_v29, %v7644_v9  ;;  %v2401_v9 = vadd.f32 %v7853_v29, %v7661_v1  ;;  %v2402_v1 = vadd.f32 %v7853_v29, %v7678_v7 }
 0x19d   : > { %9790 = vst [vmem:[#allocation130_spill] sm:$0xff] %v7687_v22  ;;  %v7690_v25 = vpop.f32.mrf.mxu1  ;;  %v6139_v22 = vld [vmem:[%s6249_s13 + $0x320] sm:$0xff] }
 0x19e   : > { %9791 = vst [vmem:[#allocation131_spill] sm:$0xff] %v7690_v25  ;;  %v7692_v23 = vpop.f32.mrf.mxu0  ;;  %5271 = vmatmul.mubr.msk.f32.gmra.mxu0 %vm415_vm1, %v6138_v49 }
 0x19f   : > { %v7698_v20 = vpop.f32.mrf.mxu1  ;;  %2915 = vmatmul.mubr.f32.gmra.mxu1 %v2515_v58  ;;  %1471 = vmatprep.mubr.f32.mxu0 %v9699_v33  ;;  %v2403_v7 = vadd.f32 %v7853_v29, %v7692_v23 }
 0x1a0   : > { %9792 = vst [vmem:[#allocation132_spill] sm:$0xff] %v7698_v20  ;;  %v7701_v47 = vpop.f32.mrf.mxu0  ;;  %2920 = vmatprep.mubr.f32.mxu1 %v9699_v33 }
 0x1a1   : > { %9793 = vst [vmem:[#allocation133_spill] sm:$0xff] %v7701_v47  ;;  %v7704_v19 = vpop.f32.mrf.mxu1  ;;  %v6140_v47 = vld [vmem:[%s6249_s13 + $0x328] sm:$0xff] }
 0x1a2   : > { %9794 = vst [vmem:[#allocation134_spill] sm:$0xff] %v7704_v19  ;;  %v7706_v25 = vpop.f32.mrf.mxu0  ;;  %5272 = vmatmul.mubr.msk.f32.gmra.mxu0 %vm415_vm1, %v6139_v22  ;;  %v2518_v22 = vmax.f32 %v2390_v32, 0.0 }
 0x1a3   : > { %v7712_v49 = vpop.f32.mrf.mxu1  ;;  %2921 = vmatmul.mubr.f32.gmra.mxu1 %v2516_v38  ;;  %1477 = vmatprep.mubr.f32.mxu0 %v9699_v33  ;;  %v2404_v23 = vadd.f32 %v7853_v29, %v7706_v25 }
 0x1a4   : > { %9795 = vst [vmem:[#allocation135_spill] sm:$0xff] %v7712_v49  ;;  %v7715_v58 = vpop.f32.mrf.mxu0  ;;  %2926 = vmatprep.mubr.f32.mxu1 %v9699_v33 }
 0x1a5   : > { %9796 = vst [vmem:[#allocation136_spill] sm:$0xff] %v7715_v58  ;;  %v7718_v19 = vpop.f32.mrf.mxu1  ;;  %v6141_v58 = vld [vmem:[%s6249_s13 + $0x330] sm:$0xff] }
 0x1a6   : > { %9797 = vst [vmem:[#allocation137_spill] sm:$0xff] %v7718_v19  ;;  %v7720_v20 = vpop.f32.mrf.mxu0  ;;  %5273 = vmatmul.mubr.msk.f32.gmra.mxu0 %vm415_vm1, %v6140_v47  ;;  %v2519_v47 = vmax.f32 %v2391_v26, 0.0 }
 0x1a7   : > { %v7726_v16 = vpop.f32.mrf.mxu1  ;;  %2927 = vmatmul.mubr.f32.gmra.mxu1 %v2517_v5  ;;  %1483 = vmatprep.mubr.f32.mxu0 %v9699_v33  ;;  %v2405_v25 = vadd.f32 %v7853_v29, %v7720_v20 }
 0x1a8   : > { %9798 = vst [vmem:[#allocation138_spill] sm:$0xff] %v7726_v16  ;;  %v7729_v38 = vpop.f32.mrf.mxu0  ;;  %2932 = vmatprep.mubr.f32.mxu1 %v9699_v33 }
 0x1a9   : > { %9799 = vst [vmem:[#allocation139_spill] sm:$0xff] %v7729_v38  ;;  %v7732_v19 = vpop.f32.mrf.mxu1  ;;  %v6142_v38 = vld [vmem:[%s6249_s13 + $0x338] sm:$0xff] }
 0x1aa   : > { %9800 = vst [vmem:[#allocation140_spill] sm:$0xff] %v7732_v19  ;;  %v7734_v49 = vpop.f32.mrf.mxu0  ;;  %5274 = vmatmul.mubr.msk.f32.gmra.mxu0 %vm415_vm1, %v6141_v58  ;;  %v2520_v58 = vmax.f32 %v2392_v37, 0.0 }
 0x1ab   : > { %v7740_v32 = vpop.f32.mrf.mxu1  ;;  %2933 = vmatmul.mubr.f32.gmra.mxu1 %v2518_v22  ;;  %1489 = vmatprep.mubr.f32.mxu0 %v9699_v33  ;;  %v2406_v20 = vadd.f32 %v7853_v29, %v7734_v49 }
 0x1ac   : > { %9801 = vst [vmem:[#allocation141_spill] sm:$0xff] %v7740_v32  ;;  %v7743_v5 = vpop.f32.mrf.mxu0  ;;  %2938 = vmatprep.mubr.f32.mxu1 %v9699_v33 }
 0x1ad   : > { %9802 = vst [vmem:[#allocation142_spill] sm:$0xff] %v7743_v5  ;;  %v7746_v19 = vpop.f32.mrf.mxu1  ;;  %v6143_v5 = vld [vmem:[%s6249_s13 + $0x340] sm:$0xff] }
 0x1ae   : > { %9803 = vst [vmem:[#allocation143_spill] sm:$0xff] %v7746_v19  ;;  %v7748_v16 = vpop.f32.mrf.mxu0  ;;  %5275 = vmatmul.mubr.msk.f32.gmra.mxu0 %vm415_vm1, %v6142_v38  ;;  %v2521_v38 = vmax.f32 %v2393_v56, 0.0 }
 0x1af   : > { %v7754_v26 = vpop.f32.mrf.mxu1  ;;  %2939 = vmatmul.mubr.f32.gmra.mxu1 %v2519_v47  ;;  %1495 = vmatprep.mubr.f32.mxu0 %v9699_v33  ;;  %v2407_v49 = vadd.f32 %v7853_v29, %v7748_v16 }
 0x1b0   : > { %9804 = vst [vmem:[#allocation144_spill] sm:$0xff] %v7754_v26  ;;  %v7757_v22 = vpop.f32.mrf.mxu0  ;;  %2944 = vmatprep.mubr.f32.mxu1 %v9699_v33 }
 0x1b1   : > { %9805 = vst [vmem:[#allocation145_spill] sm:$0xff] %v7757_v22  ;;  %v7760_v19 = vpop.f32.mrf.mxu1  ;;  %v6144_v22 = vld [vmem:[%s6249_s13 + $0x348] sm:$0xff] }
 0x1b2   : > { %9806 = vst [vmem:[#allocation146_spill] sm:$0xff] %v7760_v19  ;;  %v7762_v32 = vpop.f32.mrf.mxu0  ;;  %5276 = vmatmul.mubr.msk.f32.gmra.mxu0 %vm415_vm1, %v6143_v5  ;;  %v2522_v5 = vmax.f32 %v2394_v3, 0.0 }
 0x1b3   : > { %v7768_v37 = vpop.f32.mrf.mxu1  ;;  %2945 = vmatmul.mubr.f32.gmra.mxu1 %v2520_v58  ;;  %1501 = vmatprep.mubr.f32.mxu0 %v9699_v33  ;;  %v2408_v16 = vadd.f32 %v7853_v29, %v7762_v32 }
 0x1b4   : > { %9807 = vst [vmem:[#allocation147_spill] sm:$0xff] %v7768_v37  ;;  %v7771_v47 = vpop.f32.mrf.mxu0  ;;  %2950 = vmatprep.mubr.f32.mxu1 %v9699_v33 }
 0x1b5   : > { %9808 = vst [vmem:[#allocation148_spill] sm:$0xff] %v7771_v47  ;;  %v7774_v19 = vpop.f32.mrf.mxu1  ;;  %v6145_v47 = vld [vmem:[%s6249_s13 + $0x350] sm:$0xff] }
 0x1b6   : > { %9809 = vst [vmem:[#allocation149_spill] sm:$0xff] %v7774_v19  ;;  %v7776_v26 = vpop.f32.mrf.mxu0  ;;  %5277 = vmatmul.mubr.msk.f32.gmra.mxu0 %vm415_vm1, %v6144_v22  ;;  %v2523_v22 = vmax.f32 %v2395_v63, 0.0 }
 0x1b7   : > { %v7782_v56 = vpop.f32.mrf.mxu1  ;;  %2951 = vmatmul.mubr.f32.gmra.mxu1 %v2521_v38  ;;  %1507 = vmatprep.mubr.f32.mxu0 %v9699_v33  ;;  %v2409_v32 = vadd.f32 %v7853_v29, %v7776_v26 }
 0x1b8   : > { %9810 = vst [vmem:[#allocation150_spill] sm:$0xff] %v7782_v56  ;;  %v7785_v58 = vpop.f32.mrf.mxu0  ;;  %2956 = vmatprep.mubr.f32.mxu1 %v9699_v33 }
 0x1b9   : > { %9811 = vst [vmem:[#allocation151_spill] sm:$0xff] %v7785_v58  ;;  %v7788_v19 = vpop.f32.mrf.mxu1  ;;  %v6146_v58 = vld [vmem:[%s6249_s13 + $0x358] sm:$0xff] }
 0x1ba   : > { %9812 = vst [vmem:[#allocation152_spill] sm:$0xff] %v7788_v19  ;;  %v7790_v37 = vpop.f32.mrf.mxu0  ;;  %5278 = vmatmul.mubr.msk.f32.gmra.mxu0 %vm415_vm1, %v6145_v47  ;;  %v2524_v47 = vmax.f32 %v2396_v4, 0.0 }
 0x1bb   : > { %v7796_v3 = vpop.f32.mrf.mxu1  ;;  %2957 = vmatmul.mubr.f32.gmra.mxu1 %v2522_v5  ;;  %1513 = vmatprep.mubr.f32.mxu0 %v9699_v33  ;;  %v2410_v26 = vadd.f32 %v7853_v29, %v7790_v37 }
 0x1bc   : > { %9813 = vst [vmem:[#allocation153_spill] sm:$0xff] %v7796_v3  ;;  %v7799_v38 = vpop.f32.mrf.mxu0  ;;  %2962 = vmatprep.mubr.f32.mxu1 %v9699_v33 }
 0x1bd   : > { %9814 = vst [vmem:[#allocation154_spill] sm:$0xff] %v7799_v38  ;;  %v7802_v19 = vpop.f32.mrf.mxu1  ;;  %v6147_v38 = vld [vmem:[%s6249_s13 + $0x360] sm:$0xff] }
 0x1be   : > { %9815 = vst [vmem:[#allocation155_spill] sm:$0xff] %v7802_v19  ;;  %v7804_v56 = vpop.f32.mrf.mxu0  ;;  %5279 = vmatmul.mubr.msk.f32.gmra.mxu0 %vm415_vm1, %v6146_v58  ;;  %v2525_v58 = vmax.f32 %v2397_v40, 0.0 }
 0x1bf   : > { %v7810_v63 = vpop.f32.mrf.mxu1  ;;  %2963 = vmatmul.mubr.f32.gmra.mxu1 %v2523_v22  ;;  %1519 = vmatprep.mubr.f32.mxu0 %v9699_v33  ;;  %v2411_v37 = vadd.f32 %v7853_v29, %v7804_v56 }
 0x1c0   : > { %9816 = vst [vmem:[#allocation156_spill] sm:$0xff] %v7810_v63  ;;  %v7813_v5 = vpop.f32.mrf.mxu0  ;;  %2968 = vmatprep.mubr.f32.mxu1 %v9699_v33 }
 0x1c1   : > { %9817 = vst [vmem:[#allocation157_spill] sm:$0xff] %v7813_v5  ;;  %v7816_v19 = vpop.f32.mrf.mxu1  ;;  %v6148_v5 = vld [vmem:[%s6249_s13 + $0x368] sm:$0xff] }
 0x1c2   : > { %9818 = vst [vmem:[#allocation158_spill] sm:$0xff] %v7816_v19  ;;  %v7818_v3 = vpop.f32.mrf.mxu0  ;;  %5280 = vmatmul.mubr.msk.f32.gmra.mxu0 %vm415_vm1, %v6147_v38  ;;  %v2526_v38 = vmax.f32 %v2398_v6, 0.0 }
 0x1c3   : > { %v7824_v4 = vpop.f32.mrf.mxu1  ;;  %2969 = vmatmul.mubr.f32.gmra.mxu1 %v2524_v47  ;;  %1525 = vmatprep.mubr.f32.mxu0 %v9699_v33  ;;  %v2412_v56 = vadd.f32 %v7853_v29, %v7818_v3 }
 0x1c4   : > { %9819 = vst [vmem:[#allocation159_spill] sm:$0xff] %v7824_v4  ;;  %v7827_v22 = vpop.f32.mrf.mxu0  ;;  %2974 = vmatprep.mubr.f32.mxu1 %v9699_v33 }
 0x1c5   : > { %9820 = vst [vmem:[#allocation160_spill] sm:$0xff] %v7827_v22  ;;  %v7830_v19 = vpop.f32.mrf.mxu1  ;;  %v6149_v22 = vld [vmem:[%s6249_s13 + $0x370] sm:$0xff] }
 0x1c6   : > { %9821 = vst [vmem:[#allocation161_spill] sm:$0xff] %v7830_v19  ;;  %v7832_v63 = vpop.f32.mrf.mxu0  ;;  %5281 = vmatmul.mubr.msk.f32.gmra.mxu0 %vm415_vm1, %v6148_v5  ;;  %v2527_v5 = vmax.f32 %v2399_v17, 0.0 }
 0x1c7   : > { %v7838_v40 = vpop.f32.mrf.mxu1  ;;  %2975 = vmatmul.mubr.f32.gmra.mxu1 %v2525_v58  ;;  %1531 = vmatprep.mubr.f32.mxu0 %v9699_v33  ;;  %v2413_v3 = vadd.f32 %v7853_v29, %v7832_v63 }
 0x1c8   : > { %9822 = vst [vmem:[#allocation162_spill] sm:$0xff] %v7838_v40  ;;  %v7841_v47 = vpop.f32.mrf.mxu0  ;;  %2980 = vmatprep.mubr.f32.mxu1 %v9699_v33  ;;  %v2528_v40 = vmax.f32 %v2400_v8, 0.0 }
 0x1c9   : > { %9823 = vst [vmem:[#allocation163_spill] sm:$0xff] %v7841_v47  ;;  %v7844_v19 = vpop.f32.mrf.mxu1  ;;  %v6152_v47 = vld [vmem:[%s6249_s13 + $0x380] sm:$0xff] }
 0x1ca   : > { %9824 = vst [vmem:[#allocation164_spill] sm:$0xff] %v7844_v19  ;;  %v7846_v4 = vpop.f32.mrf.mxu0  ;;  %5282 = vmatmul.mubr.msk.f32.gmra.mxu0 %vm415_vm1, %v6149_v22  ;;  %v6151_v19 = vld [vmem:[%s6249_s13 + $0x378] sm:$0xff] }
 0x1cb   : > { %v7857_v58 = vpop.f32.mrf.mxu1  ;;  %2981 = vmatmul.mubr.f32.gmra.mxu1 %v2526_v38  ;;  %1537 = vmatprep.mubr.f32.mxu0 %v9699_v33  ;;  %v2414_v63 = vadd.f32 %v7853_v29, %v7846_v4 }
 0x1cc   : > { %9825 = vst [vmem:[#allocation165_spill] sm:$0xff] %v7857_v58  ;;  %v7860_v6 = vpop.f32.mrf.mxu0  ;;  %2986 = vmatprep.mubr.f32.mxu1 %v9699_v33 }
 0x1cd   : > { %9826 = vst [vmem:[#allocation166_spill] sm:$0xff] %v7860_v6  ;;  %v7863_v22 = vpop.f32.mrf.mxu1 }
 0x1ce   : > { %9827 = vst [vmem:[#allocation167_spill] sm:$0xff] %v7863_v22  ;;  %v7865_v17 = vpop.f32.mrf.mxu0  ;;  %5283 = vmatmul.mubr.msk.f32.gmra.mxu0 %vm415_vm1, %v6151_v19  ;;  %v2529_v19 = vmax.f32 %v2401_v9, 0.0 }
 0x1cf   : > { %v7871_v58 = vpop.f32.mrf.mxu1  ;;  %2987 = vmatmul.mubr.f32.gmra.mxu1 %v2527_v5  ;;  %1543 = vmatprep.mubr.f32.mxu0 %v9699_v33 }
 0x1d0   : > { %9828 = vst [vmem:[#allocation168_spill] sm:$0xff] %v7871_v58  ;;  %v7874_v38 = vpop.f32.mrf.mxu0  ;;  %2992 = vmatprep.mubr.f32.mxu1 %v9699_v33 }
 0x1d1   : > { %9829 = vst [vmem:[#allocation169_spill] sm:$0xff] %v7874_v38  ;;  %v7877_v22 = vpop.f32.mrf.mxu1  ;;  %v6153_v38 = vld [vmem:[%s6249_s13 + $0x388] sm:$0xff] }
 0x1d2   : > { %9830 = vst [vmem:[#allocation170_spill] sm:$0xff] %v7877_v22  ;;  %v7879_v6 = vpop.f32.mrf.mxu0  ;;  %5284 = vmatmul.mubr.msk.f32.gmra.mxu0 %vm415_vm1, %v6152_v47  ;;  %v2530_v47 = vmax.f32 %v2402_v1, 0.0 }
 0x1d3   : > { %v7885_v8 = vpop.f32.mrf.mxu1  ;;  %2993 = vmatmul.mubr.f32.gmra.mxu1 %v2528_v40  ;;  %1549 = vmatprep.mubr.f32.mxu0 %v9699_v33 }
 0x1d4   : > { %v7888_v5 = vpop.f32.mrf.mxu0  ;;  %2998 = vmatprep.mubr.f32.mxu1 %v9699_v33 }
 0x1d5   : > { %9831 = vst [vmem:[#allocation171_spill] sm:$0xff] %v7888_v5  ;;  %v7891_v22 = vpop.f32.mrf.mxu1 }
 0x1d6   : > { %9832 = vst [vmem:[#allocation172_spill] sm:$0xff] %v7891_v22  ;;  %v7893_v58 = vpop.f32.mrf.mxu0  ;;  %5285 = vmatmul.mubr.msk.f32.gmra.mxu0 %vm415_vm1, %v6153_v38  ;;  %v2531_v38 = vmax.f32 %v2403_v7, 0.0 }
 0x1d7   : > { %v7899_v9 = vpop.f32.mrf.mxu1  ;;  %2999 = vmatmul.mubr.f32.gmra.mxu1 %v2529_v19  ;;  %1555 = vmatprep.mubr.f32.mxu0 %v9699_v33 }
 0x1d8   : > { %v7902_v40 = vpop.f32.mrf.mxu0  ;;  %3004 = vmatprep.mubr.f32.mxu1 %v9699_v33 }
 0x1d9   : > { %9833 = vst [vmem:[#allocation173_spill] sm:$0xff] %v7902_v40  ;;  %v7905_v5 = vpop.f32.mrf.mxu1 }
 0x1da   : > { %9834 = vst [vmem:[#allocation174_spill] sm:$0xff] %v7905_v5  ;;  %v7907_v22 = vpop.f32.mrf.mxu0  ;;  %5286 = vmatmul.mubr.msk.f32.gmra.mxu0 %vm415_vm1, %v6154_v10  ;;  %v2532_v10 = vmax.f32 %v2404_v23, 0.0 }
 0x1db   : > { %v7913_v1 = vpop.f32.mrf.mxu1  ;;  %3005 = vmatmul.mubr.f32.gmra.mxu1 %v2530_v47  ;;  %1561 = vmatprep.mubr.f32.mxu0 %v9699_v33 }
 0x1dc   : > { %v7916_v19 = vpop.f32.mrf.mxu0  ;;  %3010 = vmatprep.mubr.f32.mxu1 %v9699_v33 }
 0x1dd   : > { %9835 = vst [vmem:[#allocation175_spill] sm:$0xff] %v7916_v19  ;;  %v7919_v40 = vpop.f32.mrf.mxu1 }
 0x1de   : > { %9836 = vst [vmem:[#allocation176_spill] sm:$0xff] %v7919_v40  ;;  %v7921_v5 = vpop.f32.mrf.mxu0  ;;  %5287 = vmatmul.mubr.msk.f32.gmra.mxu0 %vm415_vm1, %v6155_v24  ;;  %v2533_v24 = vmax.f32 %v2405_v25, 0.0 }
 0x1df   : > { %v7927_v7 = vpop.f32.mrf.mxu1  ;;  %3011 = vmatmul.mubr.f32.gmra.mxu1 %v2531_v38  ;;  %1567 = vmatprep.mubr.f32.mxu0 %v9699_v33 }
 0x1e0   : > { %v7930_v47 = vpop.f32.mrf.mxu0  ;;  %3016 = vmatprep.mubr.f32.mxu1 %v9699_v33 }
 0x1e1   : > { %9837 = vst [vmem:[#allocation177_spill] sm:$0xff] %v7930_v47  ;;  %v7933_v19 = vpop.f32.mrf.mxu1 }
 0x1e2   : > { %9838 = vst [vmem:[#allocation178_spill] sm:$0xff] %v7933_v19  ;;  %v7935_v40 = vpop.f32.mrf.mxu0  ;;  %5288 = vmatmul.mubr.msk.f32.gmra.mxu0 %vm415_vm1, %v6156_v2  ;;  %v2534_v2 = vmax.f32 %v2406_v20, 0.0 }
 0x1e3   : > { %v7941_v23 = vpop.f32.mrf.mxu1  ;;  %3017 = vmatmul.mubr.f32.gmra.mxu1 %v2532_v10  ;;  %1573 = vmatprep.mubr.f32.mxu0 %v9699_v33 }
 0x1e4   : > { %v7944_v38 = vpop.f32.mrf.mxu0  ;;  %3022 = vmatprep.mubr.f32.mxu1 %v9699_v33 }
 0x1e5   : > { %9839 = vst [vmem:[#allocation179_spill] sm:$0xff] %v7944_v38  ;;  %v7947_v47 = vpop.f32.mrf.mxu1 }
 0x1e6   : > { %9840 = vst [vmem:[#allocation180_spill] sm:$0xff] %v7947_v47  ;;  %v7949_v19 = vpop.f32.mrf.mxu0  ;;  %5289 = vmatmul.mubr.msk.f32.gmra.mxu0 %vm415_vm1, %v6157_v18  ;;  %v2535_v18 = vmax.f32 %v2407_v49, 0.0 }
 0x1e7   : > { %v7955_v25 = vpop.f32.mrf.mxu1  ;;  %3023 = vmatmul.mubr.f32.gmra.mxu1 %v2533_v24  ;;  %1579 = vmatprep.mubr.f32.mxu0 %v9699_v33 }
 0x1e8   : > { %v7958_v10 = vpop.f32.mrf.mxu0  ;;  %3028 = vmatprep.mubr.f32.mxu1 %v9699_v33 }
 0x1e9   : > { %9841 = vst [vmem:[#allocation181_spill] sm:$0xff] %v7958_v10  ;;  %v7961_v38 = vpop.f32.mrf.mxu1 }
 0x1ea   : > { %9842 = vst [vmem:[#allocation182_spill] sm:$0xff] %v7961_v38  ;;  %v7963_v47 = vpop.f32.mrf.mxu0  ;;  %5290 = vmatmul.mubr.msk.f32.gmra.mxu0 %vm415_vm1, %v6158_v0  ;;  %v2536_v0 = vmax.f32 %v2408_v16, 0.0 }
 0x1eb   : > { %v7969_v20 = vpop.f32.mrf.mxu1  ;;  %3029 = vmatmul.mubr.f32.gmra.mxu1 %v2534_v2  ;;  %1585 = vmatprep.mubr.f32.mxu0 %v9699_v33 }
 0x1ec   : > { %v7972_v24 = vpop.f32.mrf.mxu0  ;;  %3034 = vmatprep.mubr.f32.mxu1 %v9699_v33 }
 0x1ed   : > { %9843 = vst [vmem:[#allocation183_spill] sm:$0xff] %v7972_v24  ;;  %v7975_v10 = vpop.f32.mrf.mxu1 }
 0x1ee   : > { %9844 = vst [vmem:[#allocation184_spill] sm:$0xff] %v7975_v10  ;;  %v7977_v38 = vpop.f32.mrf.mxu0  ;;  %5291 = vmatmul.mubr.msk.f32.gmra.mxu0 %vm415_vm1, %v6159_v62  ;;  %v2537_v62 = vmax.f32 %v2409_v32, 0.0 }
 0x1ef   : > { %v7983_v49 = vpop.f32.mrf.mxu1  ;;  %3035 = vmatmul.mubr.f32.gmra.mxu1 %v2535_v18  ;;  %1591 = vmatprep.mubr.f32.mxu0 %v9699_v33 }
 0x1f0   : > { %v7986_v2 = vpop.f32.mrf.mxu0  ;;  %3040 = vmatprep.mubr.f32.mxu1 %v9699_v33 }
 0x1f1   : > { %9845 = vst [vmem:[#allocation185_spill] sm:$0xff] %v7986_v2  ;;  %v7989_v24 = vpop.f32.mrf.mxu1 }
 0x1f2   : > { %9846 = vst [vmem:[#allocation186_spill] sm:$0xff] %v7989_v24  ;;  %v7991_v10 = vpop.f32.mrf.mxu0  ;;  %5292 = vmatmul.mubr.msk.f32.gmra.mxu0 %vm415_vm1, %v6160_v61  ;;  %v2538_v61 = vmax.f32 %v2410_v26, 0.0 }
 0x1f3   : > { %v7997_v16 = vpop.f32.mrf.mxu1  ;;  %3041 = vmatmul.mubr.f32.gmra.mxu1 %v2536_v0  ;;  %1597 = vmatprep.mubr.f32.mxu0 %v9699_v33 }
 0x1f4   : > { %v8000_v18 = vpop.f32.mrf.mxu0  ;;  %3046 = vmatprep.mubr.f32.mxu1 %v9699_v33 }
 0x1f5   : > { %9847 = vst [vmem:[#allocation187_spill] sm:$0xff] %v8000_v18  ;;  %v8003_v2 = vpop.f32.mrf.mxu1 }
 0x1f6   : > { %9848 = vst [vmem:[#allocation188_spill] sm:$0xff] %v8003_v2  ;;  %v8005_v24 = vpop.f32.mrf.mxu0  ;;  %5293 = vmatmul.mubr.msk.f32.gmra.mxu0 %vm415_vm1, %v6161_v60  ;;  %v2539_v60 = vmax.f32 %v2411_v37, 0.0 }
 0x1f7   : > { %v8011_v32 = vpop.f32.mrf.mxu1  ;;  %3047 = vmatmul.mubr.f32.gmra.mxu1 %v2537_v62  ;;  %1603 = vmatprep.mubr.f32.mxu0 %v9699_v33 }
 0x1f8   : > { %v8014_v0 = vpop.f32.mrf.mxu0  ;;  %3052 = vmatprep.mubr.f32.mxu1 %v9699_v33 }
 0x1f9   : > { %9849 = vst [vmem:[#allocation189_spill] sm:$0xff] %v8014_v0  ;;  %v8017_v18 = vpop.f32.mrf.mxu1 }
 0x1fa   : > { %9850 = vst [vmem:[#allocation190_spill] sm:$0xff] %v8017_v18  ;;  %v8019_v2 = vpop.f32.mrf.mxu0  ;;  %5294 = vmatmul.mubr.msk.f32.gmra.mxu0 %vm415_vm1, %v6162_v59  ;;  %v2540_v59 = vmax.f32 %v2412_v56, 0.0 }
 0x1fb   : > { %v8025_v26 = vpop.f32.mrf.mxu1  ;;  %3053 = vmatmul.mubr.f32.gmra.mxu1 %v2538_v61  ;;  %1609 = vmatprep.mubr.f32.mxu0 %v9699_v33 }
 0x1fc   : > { %v8028_v62 = vpop.f32.mrf.mxu0  ;;  %3058 = vmatprep.mubr.f32.mxu1 %v9699_v33 }
 0x1fd   : > { %9851 = vst [vmem:[#allocation191_spill] sm:$0xff] %v8028_v62  ;;  %v8031_v0 = vpop.f32.mrf.mxu1 }
 0x1fe   : > { %9852 = vst [vmem:[#allocation192_spill] sm:$0xff] %v8031_v0  ;;  %v8033_v18 = vpop.f32.mrf.mxu0  ;;  %5295 = vmatmul.mubr.msk.f32.gmra.mxu0 %vm415_vm1, %v6163_v13  ;;  %v2541_v13 = vmax.f32 %v2413_v3, 0.0  ;;  %v2542_v3 = vmax.f32 %v2414_v63, 0.0  ;;  %v3475_v63 = vadd.f32 %v7913_v1, %v6961_v11  ;;  %v3476_v11 = vadd.f32 %v7927_v7, %v6976_v34 }
 0x1ff   : > { %v8039_v37 = vpop.f32.mrf.mxu1  ;;  %3059 = vmatmul.mubr.f32.gmra.mxu1 %v2539_v60  ;;  %1615 = vmatprep.mubr.f32.mxu0 %v9699_v33  ;;  %v2417_v34 = vadd.f32 %v7853_v29, %v7893_v58 }
 0x200   : > { %v8042_v61 = vpop.f32.mrf.mxu0  ;;  %3064 = vmatprep.mubr.f32.mxu1 %v9699_v33 }
 0x201   : > { %9853 = vst [vmem:[#allocation193_spill] sm:$0xff] %v8042_v61  ;;  %v8045_v62 = vpop.f32.mrf.mxu1  ;;  %v3473_v61 = vadd.f32 %v7885_v8, %v6928_v15  ;;  %v3474_v15 = vadd.f32 %v7899_v9, %v6943_v27  ;;  %v2416_v27 = vadd.f32 %v7853_v29, %v7879_v6  ;;  %v3477_v6 = vadd.f32 %v7941_v23, %v6991_v12 }
 0x202   : > { %9854 = vst [vmem:[#allocation194_spill] sm:$0xff] %v8045_v62  ;;  %v8047_v0 = vpop.f32.mrf.mxu0  ;;  %5296 = vmatmul.mubr.msk.f32.gmra.mxu0 %vm415_vm1, %v6164_v57  ;;  %v8066_v57 = vld [vmem:[%s9656_s5] ss:$0 sm:$0xff] }
 0x203   : > { %v8053_v56 = vpop.f32.mrf.mxu1  ;;  %3065 = vmatmul.mubr.f32.gmra.mxu1 %v2540_v59  ;;  %1621 = vmatprep.mubr.f32.mxu0 %v9699_v33  ;;  %v6165_v59 = vld [vmem:[%s6249_s13 + $0x3e8] sm:$0xff] }
 0x204   : > { %v8056_v60 = vpop.f32.mrf.mxu0  ;;  %3070 = vmatprep.mubr.f32.mxu1 %v9699_v33 }
 0x205   : > { %9855 = vst [vmem:[#allocation195_spill] sm:$0xff] %v8056_v60  ;;  %v8061_v62 = vpop.f32.mrf.mxu1  ;;  %v2415_v60 = vadd.f32 %v7853_v29, %v7865_v17 }
 0x206   : > { %9856 = vst [vmem:[#allocation196_spill] sm:$0xff] %v8061_v62  ;;  %v8068_v4 = vpop.f32.mrf.mxu0  ;;  %5297 = vmatmul.mubr.msk.f32.gmra.mxu0 %vm415_vm1, %v6165_v59  ;;  %v3608_v62 = vadd.f32 %v8066_v57, %v3473_v61  ;;  %v3609_v61 = vadd.f32 %v8066_v57, %v3474_v15  ;;  %v2544_v15 = vmax.f32 %v2416_v27, 0.0  ;;  %v9863_v27 = vld [vmem:[#allocation16_spill] sm:$0xff] }
 0x207   : > { %v8074_v36 = vpop.f32.mrf.mxu1  ;;  %3071 = vmatmul.mubr.f32.gmra.mxu1 %v2541_v13  ;;  %1627 = vmatprep.mubr.f32.mxu0 %v9699_v33  ;;  %v2543_v13 = vmax.f32 %v2415_v60, 0.0  ;;  %v3479_v58 = vadd.f32 %v7969_v20, %v9863_v27 }
 0x208   : > { %v8079_v8 = vpop.f32.mrf.mxu0  ;;  %3076 = vmatprep.mubr.f32.mxu1 %v9699_v33 }
 0x209   : > { %9857 = vst [vmem:[#allocation197_spill] sm:$0xff] %v8079_v8  ;;  %v8085_v59 = vpop.f32.mrf.mxu1  ;;  %v3736_v8 = vmax.f32 %v3608_v62, 0.0  ;;  %v3737_v62 = vmax.f32 %v3609_v61, 0.0  ;;  %v2418_v61 = vadd.f32 %v7853_v29, %v7907_v22 }
 0x20a   : > { %9858 = vst [vmem:[#allocation198_spill] sm:$0xff] %v8085_v59  ;;  %v8087_v17 = vpop.f32.mrf.mxu0  ;;  %5298 = vmatmul.mubr.msk.f32.gmra.mxu0 %vm415_vm1, %v6166_v55  ;;  %v3610_v55 = vadd.f32 %v8066_v57, %v3475_v63  ;;  %v6167_v59 = vld [vmem:[%s6249_s13 + $0x3f8] sm:$0xff]  ;;  %v3611_v63 = vadd.f32 %v8066_v57, %v3476_v11 }
 0x20b   : > { %v8093_v9 = vpop.f32.mrf.mxu1  ;;  %3077 = vmatmul.mubr.f32.gmra.mxu1 %v2542_v3  ;;  %1633 = vmatprep.mubr.f32.mxu0 %v9699_v33 }
 0x20c   : > { %v8099_v1 = vpop.f32.mrf.mxu0  ;;  %3082 = vmatprep.mubr.f32.mxu1 %v9699_v33  ;;  %v3739_v11 = vmax.f32 %v3611_v63, 0.0  ;;  %v2419_v63 = vadd.f32 %v7853_v29, %v7921_v5 }
 0x20d   : > { %9859 = vst [vmem:[#allocation199_spill] sm:$0xff] %v8099_v1  ;;  %v8105_v60 = vpop.f32.mrf.mxu1  ;;  %v9861_v1 = vld [vmem:[#allocation13_spill] sm:$0xff] }
 0x20e   : > { %9860 = vst [vmem:[#allocation200_spill] sm:$0xff] %v8105_v60  ;;  %v8107_v3 = vpop.f32.mrf.mxu0  ;;  %5299 = vmatmul.mubr.msk.f32.gmra.mxu0 %vm415_vm1, %v6167_v59  ;;  %v3478_v12 = vadd.f32 %v7955_v25, %v9861_v1  ;;  %v3738_v60 = vmax.f32 %v3610_v55, 0.0  ;;  %v3612_v59 = vadd.f32 %v8066_v57, %v3477_v6  ;;  %v9864_v55 = vld [vmem:[#allocation19_spill] sm:$0xff] }
 0x20f   : > { %v8113_v7 = vpop.f32.mrf.mxu1  ;;  %3083 = vmatmul.mubr.f32.gmra.mxu1 %v2543_v13  ;;  %5933 = vmatprep.mubr.f32.mxu0 %v3736_v8  ;;  %v2545_v8 = vmax.f32 %v2417_v34, 0.0  ;;  %v3480_v6 = vadd.f32 %v7983_v49, %v9864_v55  ;;  %v3614_v34 = vadd.f32 %v8066_v57, %v3479_v58  ;;  %v9867_v58 = vld [vmem:[#allocation25_spill] sm:$0xff] }
 0x210   : > { %v8118_v23 = vpop.f32.mrf.mxu0  ;;  %3088 = vmatprep.mubr.f32.mxu1 %v9699_v33  ;;  %v3613_v1 = vadd.f32 %v8066_v57, %v3478_v12  ;;  %v3740_v27 = vmax.f32 %v3612_v59, 0.0  ;;  %v3482_v55 = vadd.f32 %v8011_v32, %v9867_v58  ;;  %v9870_v58 = vld [vmem:[#allocation31_spill] sm:$0xff] }
 0x211   : > { %9862 = vst [vmem:[#allocation13_spill] sm:$0xff] %v8118_v23  ;;  %v8124_v54 = vpop.f32.mrf.mxu1  ;;  %v3615_v59 = vadd.f32 %v8066_v57, %v3480_v6  ;;  %v2420_v6 = vadd.f32 %v7853_v29, %v7935_v40 }
 0x212   : > { %v8126_v13 = vpop.f32.mrf.mxu0  ;;  %5934 = vmatmul.mubr.f32.vlgmr.msra.gmra.mxu0 %v3737_v62  ;;  %v9866_v62 = vld [vmem:[#allocation22_spill] sm:$0xff]  ;;  %v3741_v12 = vmax.f32 %v3613_v1, 0.0  ;;  %v2547_v1 = vmax.f32 %v2419_v63, 0.0 }
 0x213   : > { %v8130_v25 = vpop.f32.mrf.mxu1  ;;  %3089 = vmatmul.mubr.f32.gmra.mxu1 %v2544_v15  ;;  %5936 = vmatprep.mubr.f32.mxu0 %v3738_v60  ;;  %v3481_v22 = vadd.f32 %v7997_v16, %v9866_v62  ;;  %v2546_v60 = vmax.f32 %v2418_v61, 0.0  ;;  %v3742_v62 = vmax.f32 %v3614_v34, 0.0  ;;  %v3617_v34 = vadd.f32 %v8066_v57, %v3482_v55  ;;  %v9872_v63 = vld [vmem:[#allocation34_spill] sm:$0xff] }
 0x214   : > { %v8135_v20 = vpop.f32.mrf.mxu0  ;;  %3094 = vmatprep.mubr.f32.mxu1 %v9699_v33  ;;  %v2421_v55 = vadd.f32 %v7853_v29, %v7949_v19 }
 0x215   : > { %9865 = vst [vmem:[#allocation16_spill] sm:$0xff] %v8135_v20  ;;  %v8141_v23 = vpop.f32.mrf.mxu1  ;;  %v3616_v61 = vadd.f32 %v8066_v57, %v3481_v22  ;;  %v3484_v22 = vadd.f32 %v8039_v37, %v9870_v58  ;;  %v9873_v58 = vld [vmem:[#allocation37_spill] sm:$0xff] }
 0x216   : > { %v8143_v15 = vpop.f32.mrf.mxu0  ;;  %5937 = vmatmul.mubr.f32.gmra.mxu0 %v3739_v11  ;;  %v9869_v11 = vld [vmem:[#allocation28_spill] sm:$0xff] }
 0x217   : > { %v8147_v49 = vpop.f32.mrf.mxu1  ;;  %3095 = vmatmul.mubr.f32.gmra.mxu1 %v2545_v8  ;;  %5939 = vmatprep.mubr.f32.mxu0 %v3740_v27  ;;  %v3483_v5 = vadd.f32 %v8025_v26, %v9869_v11  ;;  %v3743_v27 = vmax.f32 %v3615_v59, 0.0  ;;  %v3744_v26 = vmax.f32 %v3616_v61, 0.0  ;;  %v3485_v11 = vadd.f32 %v8053_v56, %v9872_v63 }
 0x218   : > { %v8152_v16 = vpop.f32.mrf.mxu0  ;;  %3100 = vmatprep.mubr.f32.mxu1 %v9699_v33  ;;  %v2548_v59 = vmax.f32 %v2420_v6, 0.0  ;;  %v3619_v61 = vadd.f32 %v8066_v57, %v3484_v22  ;;  %v3487_v6 = vadd.f32 %v8093_v9, %v7151_v28  ;;  %v2422_v22 = vadd.f32 %v7853_v29, %v7963_v47 }
 0x219   : > { %9868 = vst [vmem:[#allocation19_spill] sm:$0xff] %v8152_v16  ;;  %v8158_v20 = vpop.f32.mrf.mxu1  ;;  %v3488_v63 = vadd.f32 %v8113_v7, %v7167_v30 }
 0x21a   : > { %v8160_v8 = vpop.f32.mrf.mxu0  ;;  %5940 = vmatmul.mubr.f32.gmra.mxu0 %v3741_v12  ;;  %v3618_v12 = vadd.f32 %v8066_v57, %v3483_v5  ;;  %v3486_v5 = vadd.f32 %v8074_v36, %v9873_v58  ;;  %v3622_v9 = vadd.f32 %v8066_v57, %v3487_v6 }
 0x21b   : > { %v2814_v32 = vpop.f32.mrf.mxu1  ;;  %3101 = vmatmul.mubr.f32.gmra.mxu1 %v2546_v60  ;;  %5942 = vmatprep.mubr.f32.mxu0 %v3742_v62  ;;  %v3745_v62 = vmax.f32 %v3617_v34, 0.0  ;;  %v2549_v34 = vmax.f32 %v2421_v55, 0.0  ;;  %v3489_v55 = vadd.f32 %v8130_v25, %v7181_v31  ;;  %v3623_v58 = vadd.f32 %v8066_v57, %v3488_v63 }
 0x21c   : > { %v8167_v16 = vpop.f32.mrf.mxu0  ;;  %3106 = vmatprep.mubr.f32.mxu1 %v9699_v33  ;;  %v3746_v56 = vmax.f32 %v3618_v12, 0.0  ;;  %v3621_v12 = vadd.f32 %v8066_v57, %v3486_v5  ;;  %v9874_v5 = vld [vmem:[#allocation46_spill] sm:$0xff]  ;;  %v3750_v31 = vmax.f32 %v3622_v9, 0.0  ;;  %v3491_v6 = vadd.f32 %v2814_v32, %v7212_v21 }
 0x21d   : > { %9871 = vst [vmem:[#allocation22_spill] sm:$0xff] %v8167_v16  ;;  %v8173_v40 = vpop.f32.mrf.mxu1  ;;  %v3624_v25 = vadd.f32 %v8066_v57, %v3489_v55 }
 0x21e   : > { %v8175_v60 = vpop.f32.mrf.mxu0  ;;  %5943 = vmatmul.mubr.f32.gmra.mxu0 %v3743_v27  ;;  %v3620_v27 = vadd.f32 %v8066_v57, %v3485_v11  ;;  %v3749_v7 = vmax.f32 %v3621_v12, 0.0  ;;  %v3626_v32 = vadd.f32 %v8066_v57, %v3491_v6 }
 0x21f   : > { %v2820_v37 = vpop.f32.mrf.mxu1  ;;  %3107 = vmatmul.mubr.f32.gmra.mxu1 %v2547_v1  ;;  %5945 = vmatprep.mubr.f32.mxu0 %v3744_v26  ;;  %v3747_v26 = vmax.f32 %v3619_v61, 0.0  ;;  %v2423_v61 = vadd.f32 %v7853_v29, %v7977_v38  ;;  %v3752_v21 = vmax.f32 %v3624_v25, 0.0 }
 0x220   : > { %v8182_v16 = vpop.f32.mrf.mxu0  ;;  %3112 = vmatprep.mubr.f32.mxu1 %v9699_v33  ;;  %v3748_v28 = vmax.f32 %v3620_v27, 0.0 }
 0x221   : > { %v8188_v19 = vpop.f32.mrf.mxu1 }
 0x222   : > { %v8190_v1 = vpop.f32.mrf.mxu0  ;;  %5946 = vmatmul.mubr.f32.gmra.mxu0 %v3745_v62  ;;  %v2550_v62 = vmax.f32 %v2422_v22, 0.0 }
 0x223   : > { %v2826_v36 = vpop.f32.mrf.mxu1  ;;  %3113 = vmatmul.mubr.f32.gmra.mxu1 %v2548_v59  ;;  %5948 = vmatprep.mubr.f32.mxu0 %v3746_v56  ;;  %v3490_v56 = vadd.f32 %v8147_v49, %v9874_v5  ;;  %v3751_v49 = vmax.f32 %v3623_v58, 0.0 }
 0x224   : > { %v8197_v11 = vpop.f32.mrf.mxu0  ;;  %3118 = vmatprep.mubr.f32.mxu1 %v9699_v33  ;;  %v3493_v55 = vadd.f32 %v2826_v36, %v7240_v35  ;;  %v3754_v35 = vmax.f32 %v3626_v32, 0.0 }
 0x225   : > { %v8203_v47 = vpop.f32.mrf.mxu1  ;;  %v3625_v63 = vadd.f32 %v8066_v57, %v3490_v56 }
 0x226   : > { %v8205_v59 = vpop.f32.mrf.mxu0  ;;  %5949 = vmatmul.mubr.f32.gmra.mxu0 %v3747_v26  ;;  %v2424_v26 = vadd.f32 %v7853_v29, %v7991_v10  ;;  %v3628_v36 = vadd.f32 %v8066_v57, %v3493_v55  ;;  %v2427_v55 = vadd.f32 %v7853_v29, %v8033_v18 }
 0x227   : > { %v2832_v30 = vpop.f32.mrf.mxu1  ;;  %3119 = vmatmul.mubr.f32.gmra.mxu1 %v2549_v34  ;;  %5951 = vmatprep.mubr.f32.mxu0 %v3748_v28  ;;  %v2551_v34 = vmax.f32 %v2423_v61, 0.0  ;;  %v3492_v28 = vadd.f32 %v2820_v37, %v7226_v39  ;;  %v3753_v39 = vmax.f32 %v3625_v63, 0.0 }
 0x228   : > { %v8212_v27 = vpop.f32.mrf.mxu0  ;;  %3124 = vmatprep.mubr.f32.mxu1 %v9699_v33  ;;  %v3494_v5 = vadd.f32 %v2832_v30, %v7254_v41  ;;  %v2555_v18 = vmax.f32 %v2427_v55, 0.0 }
 0x229   : > { %v8217_v22 = vpop.f32.mrf.mxu1  ;;  %v3627_v37 = vadd.f32 %v8066_v57, %v3492_v28 }
 0x22a   : > { %v8219_v38 = vpop.f32.mrf.mxu0  ;;  %5952 = vmatmul.mubr.f32.gmra.mxu0 %v3749_v7  ;;  %v2425_v7 = vadd.f32 %v7853_v29, %v8005_v24  ;;  %v3629_v30 = vadd.f32 %v8066_v57, %v3494_v5 }
 0x22b   : > { %v2838_v12 = vpop.f32.mrf.mxu1  ;;  %3125 = vmatmul.mubr.f32.gmra.mxu1 %v2550_v62  ;;  %5954 = vmatprep.mubr.f32.mxu0 %v3750_v31  ;;  %v2552_v62 = vmax.f32 %v2424_v26, 0.0  ;;  %v3755_v41 = vmax.f32 %v3627_v37, 0.0 }
 0x22c   : > { %v8225_v9 = vpop.f32.mrf.mxu0  ;;  %3130 = vmatprep.mubr.f32.mxu1 %v9699_v33  ;;  %v3495_v31 = vadd.f32 %v2838_v12, %v7268_v42  ;;  %v2553_v6 = vmax.f32 %v2425_v7, 0.0  ;;  %v3756_v42 = vmax.f32 %v3628_v36, 0.0  ;;  %v2428_v36 = vadd.f32 %v7853_v29, %v8047_v0 }
 0x22d   : > { %v8230_v61 = vpop.f32.mrf.mxu1 }
 0x22e   : > { %v8232_v10 = vpop.f32.mrf.mxu0  ;;  %5955 = vmatmul.mubr.f32.gmra.mxu0 %v3751_v49  ;;  %v3630_v12 = vadd.f32 %v8066_v57, %v3495_v31  ;;  %v2556_v0 = vmax.f32 %v2428_v36, 0.0 }
 0x22f   : > { %v2844_v58 = vpop.f32.mrf.mxu1  ;;  %3131 = vmatmul.mubr.f32.gmra.mxu1 %v2551_v34  ;;  %5957 = vmatprep.mubr.f32.mxu0 %v3752_v21  ;;  %v2426_v34 = vadd.f32 %v7853_v29, %v8019_v2 }
 0x230   : > { %v8238_v56 = vpop.f32.mrf.mxu0  ;;  %3136 = vmatprep.mubr.f32.mxu1 %v9699_v33  ;;  %v3496_v49 = vadd.f32 %v2844_v58, %v7282_v43  ;;  %v3757_v43 = vmax.f32 %v3629_v30, 0.0 }
 0x231   : > { %9875 = vst [vmem:[#allocation25_spill] sm:$0xff] %v8238_v56  ;;  %v8243_v25 = vpop.f32.mrf.mxu1  ;;  %v2554_v32 = vmax.f32 %v2426_v34, 0.0 }
 0x232   : > { %v8245_v24 = vpop.f32.mrf.mxu0  ;;  %5958 = vmatmul.mubr.f32.gmra.mxu0 %v3753_v39  ;;  %v3631_v7 = vadd.f32 %v8066_v57, %v3496_v49 }
 0x233   : > { %v2850_v26 = vpop.f32.mrf.mxu1  ;;  %3137 = vmatmul.mubr.f32.gmra.mxu1 %v2552_v62  ;;  %5960 = vmatprep.mubr.f32.mxu0 %v3754_v35 }
 0x234   : > { %v8251_v63 = vpop.f32.mrf.mxu0  ;;  %3142 = vmatprep.mubr.f32.mxu1 %v9699_v33  ;;  %v3497_v28 = vadd.f32 %v2850_v26, %v7296_v44  ;;  %v3758_v44 = vmax.f32 %v3630_v12, 0.0  ;;  %v2429_v12 = vadd.f32 %v7853_v29, %v8068_v4  ;;  %v2430_v4 = vadd.f32 %v7853_v29, %v8087_v17 }
 0x235   : > { %9876 = vst [vmem:[#allocation28_spill] sm:$0xff] %v8251_v63  ;;  %v8256_v21 = vpop.f32.mrf.mxu1  ;;  %v2431_v17 = vadd.f32 %v7853_v29, %v8107_v3  ;;  %v2432_v3 = vadd.f32 %v7853_v29, %v8126_v13  ;;  %v2433_v13 = vadd.f32 %v7853_v29, %v8143_v15  ;;  %v2434_v15 = vadd.f32 %v7853_v29, %v8160_v8 }
 0x236   : > { %v8258_v2 = vpop.f32.mrf.mxu0  ;;  %5961 = vmatmul.mubr.f32.gmra.mxu0 %v3755_v41  ;;  %v3632_v37 = vadd.f32 %v8066_v57, %v3497_v28  ;;  %v2435_v8 = vadd.f32 %v7853_v29, %v8175_v60  ;;  %v2436_v60 = vadd.f32 %v7853_v29, %v8190_v1  ;;  %v2437_v1 = vadd.f32 %v7853_v29, %v8205_v59 }
 0x237   : > { %v2856_v62 = vpop.f32.mrf.mxu1  ;;  %3143 = vmatmul.mubr.f32.gmra.mxu1 %v2553_v6  ;;  %5963 = vmatprep.mubr.f32.mxu0 %v3756_v42  ;;  %v2438_v59 = vadd.f32 %v7853_v29, %v8219_v38  ;;  %v2439_v38 = vadd.f32 %v7853_v29, %v8232_v10  ;;  %v2440_v10 = vadd.f32 %v7853_v29, %v8245_v24  ;;  %v8419_v29 = vld [vmem:[%s9655_s4] ss:$0 sm:$0xff] }
 0x238   : > { %v3498_v58 = vadd.f32 %v2856_v62, %v7310_v45  ;;  %v8264_v39 = vpop.f32.mrf.mxu0  ;;  %3148 = vmatprep.mubr.f32.mxu1 %v9699_v33  ;;  %v3759_v45 = vmax.f32 %v3631_v7, 0.0  ;;  %v3760_v41 = vmax.f32 %v3632_v37, 0.0  ;;  %v2441_v24 = vadd.f32 %v8419_v29, %v8258_v2 }
 0x239   : > { %9877 = vst [vmem:[#allocation31_spill] sm:$0xff] %v8264_v39  ;;  %v8268_v5 = vpop.f32.mrf.mxu1 }
 0x23a   : > { %v8270_v35 = vpop.f32.mrf.mxu0  ;;  %5964 = vmatmul.mubr.f32.gmra.mxu0 %v3757_v43  ;;  %v3633_v6 = vadd.f32 %v8066_v57, %v3498_v58 }
 0x23b   : > { %v2862_v31 = vpop.f32.mrf.mxu1  ;;  %3149 = vmatmul.mubr.f32.gmra.mxu1 %v2554_v32  ;;  %5966 = vmatprep.mubr.f32.mxu0 %v3758_v44  ;;  %v2557_v44 = vmax.f32 %v2429_v12, 0.0  ;;  %v2442_v2 = vadd.f32 %v8419_v29, %v8270_v35 }
 0x23c   : > { %v3499_v34 = vadd.f32 %v2862_v31, %v7327_v14  ;;  %v8276_v26 = vpop.f32.mrf.mxu0  ;;  %3154 = vmatprep.mubr.f32.mxu1 %v9699_v33  ;;  %v3761_v14 = vmax.f32 %v3633_v6, 0.0 }
 0x23d   : > { %9878 = vst [vmem:[#allocation34_spill] sm:$0xff] %v8276_v26  ;;  %v8279_v30 = vpop.f32.mrf.mxu1 }
 0x23e   : > { %v3634_v49 = vadd.f32 %v8066_v57, %v3499_v34  ;;  %v8282_v42 = vpop.f32.mrf.mxu0  ;;  %5967 = vmatmul.mubr.f32.gmra.mxu0 %v3759_v45  ;;  %v2558_v34 = vmax.f32 %v2430_v4, 0.0 }
 0x23f   : > { %v2868_v28 = vpop.f32.mrf.mxu1  ;;  %3155 = vmatmul.mubr.f32.gmra.mxu1 %v2555_v18  ;;  %5969 = vmatprep.mubr.f32.mxu0 %v3760_v41  ;;  %v2443_v35 = vadd.f32 %v8419_v29, %v8282_v42 }
 0x240   : > { %v3762_v32 = vmax.f32 %v3634_v49, 0.0  ;;  %v3500_v55 = vadd.f32 %v2868_v28, %v7341_v48  ;;  %v8287_v62 = vpop.f32.mrf.mxu0  ;;  %3160 = vmatprep.mubr.f32.mxu1 %v9699_v33 }
 0x241   : > { %9879 = vst [vmem:[#allocation37_spill] sm:$0xff] %v8287_v62  ;;  %v8290_v43 = vpop.f32.mrf.mxu1 }
 0x242   : > { %v3635_v7 = vadd.f32 %v8066_v57, %v3500_v55  ;;  %v8293_v58 = vpop.f32.mrf.mxu0  ;;  %5970 = vmatmul.mubr.f32.gmra.mxu0 %v3761_v14 }
 0x243   : > { %v2874_v37 = vpop.f32.mrf.mxu1  ;;  %3161 = vmatmul.mubr.f32.gmra.mxu1 %v2556_v0  ;;  %5972 = vmatprep.mubr.f32.mxu0 %v3762_v32  ;;  %v2559_v32 = vmax.f32 %v2431_v17, 0.0  ;;  %v2444_v42 = vadd.f32 %v8419_v29, %v8293_v58 }
 0x244   : > { %v3763_v18 = vmax.f32 %v3635_v7, 0.0  ;;  %v3501_v48 = vadd.f32 %v2874_v37, %v7355_v46  ;;  %v8298_v36 = vpop.f32.mrf.mxu0  ;;  %3166 = vmatprep.mubr.f32.mxu1 %v9699_v33 }
 0x245   : > { %9880 = vst [vmem:[#allocation46_spill] sm:$0xff] %v8298_v36  ;;  %v8301_v31 = vpop.f32.mrf.mxu1 }
 0x246   : > { %v3636_v45 = vadd.f32 %v8066_v57, %v3501_v48  ;;  %v8304_v6 = vpop.f32.mrf.mxu0  ;;  %5973 = vmatmul.mubr.f32.gmra.mxu0 %v3763_v18  ;;  %v2560_v48 = vmax.f32 %v2432_v3, 0.0 }
 0x247   : > { %v2880_v41 = vpop.f32.mrf.mxu1  ;;  %3167 = vmatmul.mubr.f32.gmra.mxu1 %v2557_v44  ;;  %v2445_v58 = vadd.f32 %v8419_v29, %v8304_v6 }
 0x248   : > { %v3764_v49 = vmax.f32 %v3636_v45, 0.0  ;;  %v3502_v46 = vadd.f32 %v2880_v41, %v7369_v50  ;;  %v8309_v0 = vpop.f32.mrf.mxu0  ;;  %3172 = vmatprep.mubr.f32.mxu1 %v9699_v33 }
 0x249   : > { %9881 = vst [vmem:[#allocation201_spill] sm:$0xff] %v8309_v0  ;;  %v8312_v12 = vpop.f32.mrf.mxu1 }
 0x24a   : > { %v3637_v28 = vadd.f32 %v8066_v57, %v3502_v46  ;;  %v8315_v14 = vpop.f32.mrf.mxu0  ;;  %5975 = vmatprep.mubr.f32.mxu0 %v3764_v49 }
 0x24b   : > { %v2886_v55 = vpop.f32.mrf.mxu1  ;;  %3173 = vmatmul.mubr.f32.gmra.mxu1 %v2558_v34  ;;  %v2446_v6 = vadd.f32 %v8419_v29, %v8315_v14 }
 0x24c   : > { %v3765_v7 = vmax.f32 %v3637_v28, 0.0  ;;  %v3503_v50 = vadd.f32 %v2886_v55, %v7383_v51  ;;  %v8320_v44 = vpop.f32.mrf.mxu0  ;;  %3178 = vmatprep.mubr.f32.mxu1 %v9699_v33  ;;  %v2561_v28 = vmax.f32 %v2433_v13, 0.0  ;;  %v2562_v13 = vmax.f32 %v2434_v15, 0.0 }
 0x24d   : > { %9882 = vst [vmem:[#allocation202_spill] sm:$0xff] %v8320_v44  ;;  %v8323_v4 = vpop.f32.mrf.mxu1  ;;  %v2563_v15 = vmax.f32 %v2435_v8, 0.0  ;;  %v2564_v8 = vmax.f32 %v2436_v60, 0.0  ;;  %v2565_v60 = vmax.f32 %v2437_v1, 0.0  ;;  %v2566_v1 = vmax.f32 %v2438_v59, 0.0 }
 0x24e   : > { %v3638_v37 = vadd.f32 %v8066_v57, %v3503_v50  ;;  %v8326_v18 = vpop.f32.mrf.mxu0  ;;  %5976 = vmatmul.mubr.f32.gmra.mxu0 %v3765_v7  ;;  %v2567_v59 = vmax.f32 %v2439_v38, 0.0  ;;  %v2568_v38 = vmax.f32 %v2440_v10, 0.0 }
 0x24f   : > { %v2892_v45 = vpop.f32.mrf.mxu1  ;;  %3179 = vmatmul.mubr.f32.gmra.mxu1 %v2559_v32  ;;  %v2447_v14 = vadd.f32 %v8419_v29, %v8326_v18 }
 0x250   : > { %v3766_v34 = vmax.f32 %v3638_v37, 0.0  ;;  %v3504_v51 = vadd.f32 %v2892_v45, %v7397_v52  ;;  %v8331_v17 = vpop.f32.mrf.mxu0  ;;  %3184 = vmatprep.mubr.f32.mxu1 %v9699_v33 }
 0x251   : > { %9883 = vst [vmem:[#allocation203_spill] sm:$0xff] %v8331_v17  ;;  %v8334_v41 = vpop.f32.mrf.mxu1 }
 0x252   : > { %v3639_v49 = vadd.f32 %v8066_v57, %v3504_v51  ;;  %v8337_v46 = vpop.f32.mrf.mxu0  ;;  %5978 = vmatprep.mubr.f32.mxu0 %v3766_v34  ;;  %v9885_v34 = vld [vmem:[#allocation79_spill] sm:$0xff] }
 0x253   : > { %v2898_v3 = vpop.f32.mrf.mxu1  ;;  %3185 = vmatmul.mubr.f32.gmra.mxu1 %v2560_v48  ;;  %v2448_v18 = vadd.f32 %v8419_v29, %v8337_v46 }
 0x254   : > { %v3767_v32 = vmax.f32 %v3639_v49, 0.0  ;;  %v3505_v52 = vadd.f32 %v2898_v3, %v7411_v53  ;;  %v8342_v55 = vpop.f32.mrf.mxu0  ;;  %3190 = vmatprep.mubr.f32.mxu1 %v9699_v33 }
 0x255   : > { %9884 = vst [vmem:[#allocation204_spill] sm:$0xff] %v8342_v55  ;;  %v8345_v7 = vpop.f32.mrf.mxu1 }
 0x256   : > { %v3640_v50 = vadd.f32 %v8066_v57, %v3505_v52  ;;  %v8348_v37 = vpop.f32.mrf.mxu0  ;;  %5979 = vmatmul.mubr.f32.gmra.mxu0 %v3767_v32 }
 0x257   : > { %v2904_v45 = vpop.f32.mrf.mxu1  ;;  %3191 = vmatmul.mubr.f32.gmra.mxu1 %v2561_v28  ;;  %v2449_v46 = vadd.f32 %v8419_v29, %v8348_v37 }
 0x258   : > { %v3768_v48 = vmax.f32 %v3640_v50, 0.0  ;;  %v3506_v53 = vadd.f32 %v2904_v45, %v9885_v34  ;;  %v8353_v51 = vpop.f32.mrf.mxu0  ;;  %3196 = vmatprep.mubr.f32.mxu1 %v9699_v33  ;;  %v9887_v50 = vld [vmem:[#allocation82_spill] sm:$0xff] }
 0x259   : > { %9886 = vst [vmem:[#allocation79_spill] sm:$0xff] %v8353_v51  ;;  %v8356_v49 = vpop.f32.mrf.mxu1 }
 0x25a   : > { %v3641_v3 = vadd.f32 %v8066_v57, %v3506_v53  ;;  %v8359_v52 = vpop.f32.mrf.mxu0  ;;  %5981 = vmatprep.mubr.f32.mxu0 %v3768_v48 }
 0x25b   : > { %v2910_v32 = vpop.f32.mrf.mxu1  ;;  %3197 = vmatmul.mubr.f32.gmra.mxu1 %v2562_v13  ;;  %v2450_v37 = vadd.f32 %v8419_v29, %v8359_v52 }
 0x25c   : > { %v3769_v28 = vmax.f32 %v3641_v3, 0.0  ;;  %v3507_v45 = vadd.f32 %v2910_v32, %v9887_v50  ;;  %v8364_v34 = vpop.f32.mrf.mxu0  ;;  %3202 = vmatprep.mubr.f32.mxu1 %v9699_v33  ;;  %v9889_v3 = vld [vmem:[#allocation85_spill] sm:$0xff] }
 0x25d   : > { %9888 = vst [vmem:[#allocation82_spill] sm:$0xff] %v8364_v34  ;;  %v8367_v51 = vpop.f32.mrf.mxu1 }
 0x25e   : > { %v3642_v53 = vadd.f32 %v8066_v57, %v3507_v45  ;;  %v8370_v55 = vpop.f32.mrf.mxu0  ;;  %5982 = vmatmul.mubr.f32.gmra.mxu0 %v3769_v28 }
 0x25f   : > { %v2916_v48 = vpop.f32.mrf.mxu1  ;;  %3203 = vmatmul.mubr.f32.gmra.mxu1 %v2563_v15  ;;  %v2451_v52 = vadd.f32 %v8419_v29, %v8370_v55 }
 0x260   : > { %v3770_v13 = vmax.f32 %v3642_v53, 0.0  ;;  %v3508_v32 = vadd.f32 %v2916_v48, %v9889_v3  ;;  %v8375_v50 = vpop.f32.mrf.mxu0  ;;  %3208 = vmatprep.mubr.f32.mxu1 %v9699_v33  ;;  %v9891_v53 = vld [vmem:[#allocation88_spill] sm:$0xff] }
 0x261   : > { %9890 = vst [vmem:[#allocation85_spill] sm:$0xff] %v8375_v50  ;;  %v8378_v34 = vpop.f32.mrf.mxu1 }
 0x262   : > { %v3643_v45 = vadd.f32 %v8066_v57, %v3508_v32  ;;  %v8381_v17 = vpop.f32.mrf.mxu0  ;;  %5984 = vmatprep.mubr.f32.mxu0 %v3770_v13 }
 0x263   : > { %v2922_v28 = vpop.f32.mrf.mxu1  ;;  %3209 = vmatmul.mubr.f32.gmra.mxu1 %v2564_v8  ;;  %v2452_v55 = vadd.f32 %v8419_v29, %v8381_v17 }
 0x264   : > { %v3771_v15 = vmax.f32 %v3643_v45, 0.0  ;;  %v3509_v48 = vadd.f32 %v2922_v28, %v9891_v53  ;;  %v8386_v3 = vpop.f32.mrf.mxu0  ;;  %3214 = vmatprep.mubr.f32.mxu1 %v9699_v33  ;;  %v9893_v45 = vld [vmem:[#allocation91_spill] sm:$0xff] }
 0x265   : > { %9892 = vst [vmem:[#allocation88_spill] sm:$0xff] %v8386_v3  ;;  %v8389_v50 = vpop.f32.mrf.mxu1 }
 0x266   : > { %v3644_v32 = vadd.f32 %v8066_v57, %v3509_v48  ;;  %v8392_v44 = vpop.f32.mrf.mxu0  ;;  %5985 = vmatmul.mubr.f32.gmra.mxu0 %v3771_v15 }
 0x267   : > { %v2928_v13 = vpop.f32.mrf.mxu1  ;;  %3215 = vmatmul.mubr.f32.gmra.mxu1 %v2565_v60  ;;  %v2453_v17 = vadd.f32 %v8419_v29, %v8392_v44 }
 0x268   : > { %v3772_v8 = vmax.f32 %v3644_v32, 0.0  ;;  %v3510_v28 = vadd.f32 %v2928_v13, %v9893_v45  ;;  %v8397_v53 = vpop.f32.mrf.mxu0  ;;  %3220 = vmatprep.mubr.f32.mxu1 %v9699_v33  ;;  %v9895_v32 = vld [vmem:[#allocation94_spill] sm:$0xff] }
 0x269   : > { %9894 = vst [vmem:[#allocation91_spill] sm:$0xff] %v8397_v53  ;;  %v8400_v3 = vpop.f32.mrf.mxu1  ;;  %v2581_v44 = vmax.f32 %v2453_v17, 0.0 }
 0x26a   : > { %v3645_v48 = vadd.f32 %v8066_v57, %v3510_v28  ;;  %v8403_v0 = vpop.f32.mrf.mxu0  ;;  %5987 = vmatprep.mubr.f32.mxu0 %v3772_v8 }
 0x26b   : > { %v2934_v15 = vpop.f32.mrf.mxu1  ;;  %3221 = vmatmul.mubr.f32.gmra.mxu1 %v2566_v1 }
 0x26c   : > { %v3773_v60 = vmax.f32 %v3645_v48, 0.0  ;;  %v3511_v13 = vadd.f32 %v2934_v15, %v9895_v32  ;;  %v8408_v45 = vpop.f32.mrf.mxu0  ;;  %3226 = vmatprep.mubr.f32.mxu1 %v9699_v33  ;;  %v9898_v48 = vld [vmem:[#allocation97_spill] sm:$0xff] }
 0x26d   : > { %9896 = vst [vmem:[#allocation94_spill] sm:$0xff] %v8408_v45  ;;  %v8411_v53 = vpop.f32.mrf.mxu1  ;;  %v2569_v45 = vmax.f32 %v2441_v24, 0.0  ;;  %v2570_v24 = vmax.f32 %v2442_v2, 0.0  ;;  %v2571_v2 = vmax.f32 %v2443_v35, 0.0  ;;  %v2572_v35 = vmax.f32 %v2444_v42, 0.0 }
 0x26e   : > { %9897 = vst [vmem:[#allocation205_spill] sm:$0xff] %v8411_v53  ;;  %v3646_v28 = vadd.f32 %v8066_v57, %v3511_v13  ;;  %v8414_v36 = vpop.f32.mrf.mxu0  ;;  %5988 = vmatmul.mubr.f32.gmra.mxu0 %v3773_v60  ;;  %v2573_v42 = vmax.f32 %v2445_v58, 0.0  ;;  %v2574_v58 = vmax.f32 %v2446_v6, 0.0  ;;  %v2575_v6 = vmax.f32 %v2447_v14, 0.0 }
 0x26f   : > { %v2940_v1 = vpop.f32.mrf.mxu1  ;;  %3227 = vmatmul.mubr.f32.gmra.mxu1 %v2567_v59  ;;  %v2576_v14 = vmax.f32 %v2448_v18, 0.0  ;;  %v2577_v18 = vmax.f32 %v2449_v46, 0.0  ;;  %v2578_v46 = vmax.f32 %v2450_v37, 0.0  ;;  %v2579_v37 = vmax.f32 %v2451_v52, 0.0 }
 0x270   : > { %v3774_v8 = vmax.f32 %v3646_v28, 0.0  ;;  %v3512_v15 = vadd.f32 %v2940_v1, %v9898_v48  ;;  %v8424_v32 = vpop.f32.mrf.mxu0  ;;  %3232 = vmatprep.mubr.f32.mxu1 %v9699_v33  ;;  %v9901_v28 = vld [vmem:[#allocation100_spill] sm:$0xff]  ;;  %v2580_v52 = vmax.f32 %v2452_v55, 0.0 }
 0x271   : > { %9899 = vst [vmem:[#allocation97_spill] sm:$0xff] %v8424_v32  ;;  %v8427_v13 = vpop.f32.mrf.mxu1 }
 0x272   : > { %9900 = vst [vmem:[#allocation206_spill] sm:$0xff] %v8427_v13  ;;  %v3647_v10 = vadd.f32 %v8066_v57, %v3512_v15  ;;  %v8430_v60 = vpop.f32.mrf.mxu0  ;;  %5990 = vmatprep.mubr.f32.mxu0 %v3774_v8  ;;  %v9982_v13 = vld [vmem:[#allocation176_spill] sm:$0xff] }
 0x273   : > { %v2946_v62 = vpop.f32.mrf.mxu1  ;;  %3233 = vmatmul.mubr.f32.gmra.mxu1 %v2568_v38 }
 0x274   : > { %v3775_v59 = vmax.f32 %v3647_v10, 0.0  ;;  %v3513_v1 = vadd.f32 %v2946_v62, %v9901_v28  ;;  %v8435_v48 = vpop.f32.mrf.mxu0  ;;  %3238 = vmatprep.mubr.f32.mxu1 %v9699_v33  ;;  %v9904_v10 = vld [vmem:[#allocation103_spill] sm:$0xff] }
 0x275   : > { %9902 = vst [vmem:[#allocation100_spill] sm:$0xff] %v8435_v48  ;;  %v8438_v32 = vpop.f32.mrf.mxu1 }
 0x276   : > { %9903 = vst [vmem:[#allocation207_spill] sm:$0xff] %v8438_v32  ;;  %v3648_v15 = vadd.f32 %v8066_v57, %v3513_v1  ;;  %v8441_v26 = vpop.f32.mrf.mxu0  ;;  %5991 = vmatmul.mubr.f32.gmra.mxu0 %v3775_v59 }
 0x277   : > { %v2952_v8 = vpop.f32.mrf.mxu1  ;;  %3239 = vmatmul.mubr.f32.gmra.mxu1 %v2569_v45 }
 0x278   : > { %v3776_v38 = vmax.f32 %v3648_v15, 0.0  ;;  %v3514_v62 = vadd.f32 %v2952_v8, %v9904_v10  ;;  %v8446_v28 = vpop.f32.mrf.mxu0  ;;  %3244 = vmatprep.mubr.f32.mxu1 %v9699_v33  ;;  %v9907_v15 = vld [vmem:[#allocation106_spill] sm:$0xff] }
 0x279   : > { %9905 = vst [vmem:[#allocation103_spill] sm:$0xff] %v8446_v28  ;;  %v8449_v48 = vpop.f32.mrf.mxu1 }
 0x27a   : > { %9906 = vst [vmem:[#allocation208_spill] sm:$0xff] %v8449_v48  ;;  %v3649_v1 = vadd.f32 %v8066_v57, %v3514_v62  ;;  %v8452_v32 = vpop.f32.mrf.mxu0  ;;  %5993 = vmatprep.mubr.f32.mxu0 %v3776_v38 }
 0x27b   : > { %v2958_v59 = vpop.f32.mrf.mxu1  ;;  %3245 = vmatmul.mubr.f32.gmra.mxu1 %v2570_v24 }
 0x27c   : > { %v3777_v45 = vmax.f32 %v3649_v1, 0.0  ;;  %v3515_v8 = vadd.f32 %v2958_v59, %v9907_v15  ;;  %v8457_v10 = vpop.f32.mrf.mxu0  ;;  %3250 = vmatprep.mubr.f32.mxu1 %v9699_v33  ;;  %v9910_v1 = vld [vmem:[#allocation109_spill] sm:$0xff] }
 0x27d   : > { %9908 = vst [vmem:[#allocation106_spill] sm:$0xff] %v8457_v10  ;;  %v8460_v28 = vpop.f32.mrf.mxu1 }
 0x27e   : > { %9909 = vst [vmem:[#allocation209_spill] sm:$0xff] %v8460_v28  ;;  %v3650_v62 = vadd.f32 %v8066_v57, %v3515_v8  ;;  %v8463_v48 = vpop.f32.mrf.mxu0  ;;  %5994 = vmatmul.mubr.f32.gmra.mxu0 %v3777_v45 }
 0x27f   : > { %v2964_v38 = vpop.f32.mrf.mxu1  ;;  %3251 = vmatmul.mubr.f32.gmra.mxu1 %v2571_v2 }
 0x280   : > { %v3778_v24 = vmax.f32 %v3650_v62, 0.0  ;;  %v3516_v59 = vadd.f32 %v2964_v38, %v9910_v1  ;;  %v8468_v15 = vpop.f32.mrf.mxu0  ;;  %3256 = vmatprep.mubr.f32.mxu1 %v9699_v33  ;;  %v9913_v62 = vld [vmem:[#allocation112_spill] sm:$0xff] }
 0x281   : > { %9911 = vst [vmem:[#allocation109_spill] sm:$0xff] %v8468_v15  ;;  %v8471_v10 = vpop.f32.mrf.mxu1 }
 0x282   : > { %9912 = vst [vmem:[#allocation210_spill] sm:$0xff] %v8471_v10  ;;  %v3651_v8 = vadd.f32 %v8066_v57, %v3516_v59  ;;  %v8474_v28 = vpop.f32.mrf.mxu0  ;;  %5996 = vmatprep.mubr.f32.mxu0 %v3778_v24 }
 0x283   : > { %v2970_v45 = vpop.f32.mrf.mxu1  ;;  %3257 = vmatmul.mubr.f32.gmra.mxu1 %v2572_v35 }
 0x284   : > { %v3779_v2 = vmax.f32 %v3651_v8, 0.0  ;;  %v3517_v38 = vadd.f32 %v2970_v45, %v9913_v62  ;;  %v8479_v1 = vpop.f32.mrf.mxu0  ;;  %3262 = vmatprep.mubr.f32.mxu1 %v9699_v33  ;;  %v9916_v8 = vld [vmem:[#allocation115_spill] sm:$0xff] }
 0x285   : > { %9914 = vst [vmem:[#allocation112_spill] sm:$0xff] %v8479_v1  ;;  %v8482_v15 = vpop.f32.mrf.mxu1 }
 0x286   : > { %9915 = vst [vmem:[#allocation211_spill] sm:$0xff] %v8482_v15  ;;  %v3652_v59 = vadd.f32 %v8066_v57, %v3517_v38  ;;  %v8485_v10 = vpop.f32.mrf.mxu0  ;;  %5997 = vmatmul.mubr.f32.gmra.mxu0 %v3779_v2 }
 0x287   : > { %v2976_v24 = vpop.f32.mrf.mxu1  ;;  %3263 = vmatmul.mubr.f32.gmra.mxu1 %v2573_v42 }
 0x288   : > { %v3780_v35 = vmax.f32 %v3652_v59, 0.0  ;;  %v3518_v45 = vadd.f32 %v2976_v24, %v9916_v8  ;;  %v8490_v62 = vpop.f32.mrf.mxu0  ;;  %3268 = vmatprep.mubr.f32.mxu1 %v9699_v33  ;;  %v9919_v59 = vld [vmem:[#allocation118_spill] sm:$0xff] }
 0x289   : > { %9917 = vst [vmem:[#allocation115_spill] sm:$0xff] %v8490_v62  ;;  %v8493_v1 = vpop.f32.mrf.mxu1 }
 0x28a   : > { %9918 = vst [vmem:[#allocation212_spill] sm:$0xff] %v8493_v1  ;;  %v3653_v38 = vadd.f32 %v8066_v57, %v3518_v45  ;;  %v8496_v15 = vpop.f32.mrf.mxu0  ;;  %5999 = vmatprep.mubr.f32.mxu0 %v3780_v35 }
 0x28b   : > { %v2982_v2 = vpop.f32.mrf.mxu1  ;;  %3269 = vmatmul.mubr.f32.gmra.mxu1 %v2574_v58 }
 0x28c   : > { %v3781_v42 = vmax.f32 %v3653_v38, 0.0  ;;  %v3519_v24 = vadd.f32 %v2982_v2, %v9919_v59  ;;  %v8501_v8 = vpop.f32.mrf.mxu0  ;;  %3274 = vmatprep.mubr.f32.mxu1 %v9699_v33  ;;  %v9922_v38 = vld [vmem:[#allocation121_spill] sm:$0xff] }
 0x28d   : > { %9920 = vst [vmem:[#allocation118_spill] sm:$0xff] %v8501_v8  ;;  %v8504_v62 = vpop.f32.mrf.mxu1 }
 0x28e   : > { %9921 = vst [vmem:[#allocation213_spill] sm:$0xff] %v8504_v62  ;;  %v3654_v45 = vadd.f32 %v8066_v57, %v3519_v24  ;;  %v8507_v1 = vpop.f32.mrf.mxu0  ;;  %6000 = vmatmul.mubr.f32.gmra.mxu0 %v3781_v42 }
 0x28f   : > { %v2988_v35 = vpop.f32.mrf.mxu1  ;;  %3275 = vmatmul.mubr.f32.gmra.mxu1 %v2575_v6 }
 0x290   : > { %v3782_v58 = vmax.f32 %v3654_v45, 0.0  ;;  %v3520_v2 = vadd.f32 %v2988_v35, %v9922_v38  ;;  %v8512_v59 = vpop.f32.mrf.mxu0  ;;  %3280 = vmatprep.mubr.f32.mxu1 %v9699_v33  ;;  %v9925_v45 = vld [vmem:[#allocation124_spill] sm:$0xff] }
 0x291   : > { %9923 = vst [vmem:[#allocation121_spill] sm:$0xff] %v8512_v59  ;;  %v8515_v8 = vpop.f32.mrf.mxu1 }
 0x292   : > { %9924 = vst [vmem:[#allocation214_spill] sm:$0xff] %v8515_v8  ;;  %v3655_v24 = vadd.f32 %v8066_v57, %v3520_v2  ;;  %v8518_v62 = vpop.f32.mrf.mxu0  ;;  %6002 = vmatprep.mubr.f32.mxu0 %v3782_v58 }
 0x293   : > { %v2994_v42 = vpop.f32.mrf.mxu1  ;;  %3281 = vmatmul.mubr.f32.gmra.mxu1 %v2576_v14 }
 0x294   : > { %v3783_v6 = vmax.f32 %v3655_v24, 0.0  ;;  %v3521_v35 = vadd.f32 %v2994_v42, %v9925_v45  ;;  %v8523_v38 = vpop.f32.mrf.mxu0  ;;  %3286 = vmatprep.mubr.f32.mxu1 %v9699_v33  ;;  %v9928_v24 = vld [vmem:[#allocation127_spill] sm:$0xff] }
 0x295   : > { %9926 = vst [vmem:[#allocation124_spill] sm:$0xff] %v8523_v38  ;;  %v8526_v59 = vpop.f32.mrf.mxu1 }
 0x296   : > { %9927 = vst [vmem:[#allocation215_spill] sm:$0xff] %v8526_v59  ;;  %v3656_v2 = vadd.f32 %v8066_v57, %v3521_v35  ;;  %v8529_v8 = vpop.f32.mrf.mxu0  ;;  %6003 = vmatmul.mubr.f32.gmra.mxu0 %v3783_v6 }
 0x297   : > { %v3000_v58 = vpop.f32.mrf.mxu1  ;;  %3287 = vmatmul.mubr.f32.gmra.mxu1 %v2577_v18 }
 0x298   : > { %v3784_v14 = vmax.f32 %v3656_v2, 0.0  ;;  %v3522_v42 = vadd.f32 %v3000_v58, %v9928_v24  ;;  %v8534_v45 = vpop.f32.mrf.mxu0  ;;  %3292 = vmatprep.mubr.f32.mxu1 %v9699_v33  ;;  %v9931_v2 = vld [vmem:[#allocation130_spill] sm:$0xff] }
 0x299   : > { %9929 = vst [vmem:[#allocation127_spill] sm:$0xff] %v8534_v45  ;;  %v8537_v38 = vpop.f32.mrf.mxu1 }
 0x29a   : > { %9930 = vst [vmem:[#allocation216_spill] sm:$0xff] %v8537_v38  ;;  %v3657_v35 = vadd.f32 %v8066_v57, %v3522_v42  ;;  %v8540_v59 = vpop.f32.mrf.mxu0  ;;  %6005 = vmatprep.mubr.f32.mxu0 %v3784_v14 }
 0x29b   : > { %v3006_v6 = vpop.f32.mrf.mxu1  ;;  %3293 = vmatmul.mubr.f32.gmra.mxu1 %v2578_v46 }
 0x29c   : > { %v3785_v18 = vmax.f32 %v3657_v35, 0.0  ;;  %v3523_v58 = vadd.f32 %v3006_v6, %v9931_v2  ;;  %v8545_v24 = vpop.f32.mrf.mxu0  ;;  %3298 = vmatprep.mubr.f32.mxu1 %v9699_v33  ;;  %v9934_v35 = vld [vmem:[#allocation133_spill] sm:$0xff] }
 0x29d   : > { %9932 = vst [vmem:[#allocation130_spill] sm:$0xff] %v8545_v24  ;;  %v8548_v45 = vpop.f32.mrf.mxu1 }
 0x29e   : > { %9933 = vst [vmem:[#allocation217_spill] sm:$0xff] %v8548_v45  ;;  %v3658_v42 = vadd.f32 %v8066_v57, %v3523_v58  ;;  %v8551_v38 = vpop.f32.mrf.mxu0  ;;  %6006 = vmatmul.mubr.f32.gmra.mxu0 %v3785_v18  ;;  %v8564_v57 = vld [vmem:[%s9656_s5] ss:$0 sm:$0xff] }
 0x29f   : > { %v3012_v14 = vpop.f32.mrf.mxu1  ;;  %3299 = vmatmul.mubr.f32.gmra.mxu1 %v2579_v37  ;;  %v2454_v37 = vadd.f32 %v8419_v29, %v8403_v0  ;;  %v2455_v0 = vadd.f32 %v8419_v29, %v8414_v36  ;;  %v2456_v36 = vadd.f32 %v8419_v29, %v8430_v60  ;;  %v2457_v60 = vadd.f32 %v8419_v29, %v8441_v26 }
 0x2a0   : > { %v3786_v46 = vmax.f32 %v3658_v42, 0.0  ;;  %v3524_v6 = vadd.f32 %v3012_v14, %v9934_v35  ;;  %v8556_v2 = vpop.f32.mrf.mxu0  ;;  %3304 = vmatprep.mubr.f32.mxu1 %v9699_v33  ;;  %v9937_v14 = vld [vmem:[#allocation136_spill] sm:$0xff]  ;;  %v2458_v26 = vadd.f32 %v8419_v29, %v8452_v32  ;;  %v2459_v32 = vadd.f32 %v8419_v29, %v8463_v48 }
 0x2a1   : > { %9935 = vst [vmem:[#allocation133_spill] sm:$0xff] %v8556_v2  ;;  %v8559_v24 = vpop.f32.mrf.mxu1  ;;  %v2582_v17 = vmax.f32 %v2454_v37, 0.0  ;;  %v2583_v37 = vmax.f32 %v2455_v0, 0.0  ;;  %v2584_v0 = vmax.f32 %v2456_v36, 0.0  ;;  %v2585_v36 = vmax.f32 %v2457_v60, 0.0 }
 0x2a2   : > { %9936 = vst [vmem:[#allocation218_spill] sm:$0xff] %v8559_v24  ;;  %v3659_v55 = vadd.f32 %v8564_v57, %v3524_v6  ;;  %v8567_v18 = vpop.f32.mrf.mxu0  ;;  %6008 = vmatprep.mubr.f32.mxu0 %v3786_v46  ;;  %v2586_v60 = vmax.f32 %v2458_v26, 0.0  ;;  %v2587_v26 = vmax.f32 %v2459_v32, 0.0  ;;  %v2460_v48 = vadd.f32 %v8419_v29, %v8474_v28 }
 0x2a3   : > { %v3018_v58 = vpop.f32.mrf.mxu1  ;;  %3305 = vmatmul.mubr.f32.gmra.mxu1 %v2580_v52  ;;  %v2461_v28 = vadd.f32 %v8419_v29, %v8485_v10  ;;  %v2462_v10 = vadd.f32 %v8419_v29, %v8496_v15  ;;  %v2463_v15 = vadd.f32 %v8419_v29, %v8507_v1  ;;  %v2464_v1 = vadd.f32 %v8419_v29, %v8518_v62 }
 0x2a4   : > { %v3787_v42 = vmax.f32 %v3659_v55, 0.0  ;;  %v3525_v35 = vadd.f32 %v3018_v58, %v9937_v14  ;;  %v8572_v2 = vpop.f32.mrf.mxu0  ;;  %3310 = vmatprep.mubr.f32.mxu1 %v9699_v33  ;;  %v9940_v55 = vld [vmem:[#allocation139_spill] sm:$0xff]  ;;  %v2588_v32 = vmax.f32 %v2460_v48, 0.0  ;;  %v2465_v62 = vadd.f32 %v8419_v29, %v8529_v8  ;;  %v8704_v8 = vld [vmem:[%s9657_s6] ss:$0 sm:$0xff] }
 0x2a5   : > { %9938 = vst [vmem:[#allocation136_spill] sm:$0xff] %v8572_v2  ;;  %v8575_v45 = vpop.f32.mrf.mxu1  ;;  %v2589_v48 = vmax.f32 %v2461_v28, 0.0  ;;  %v2590_v28 = vmax.f32 %v2462_v10, 0.0  ;;  %v2591_v10 = vmax.f32 %v2463_v15, 0.0  ;;  %v2592_v15 = vmax.f32 %v2464_v1, 0.0 }
 0x2a6   : > { %9939 = vst [vmem:[#allocation219_spill] sm:$0xff] %v8575_v45  ;;  %v3660_v6 = vadd.f32 %v8564_v57, %v3525_v35  ;;  %v8578_v24 = vpop.f32.mrf.mxu0  ;;  %6009 = vmatmul.mubr.f32.gmra.mxu0 %v3787_v42 }
 0x2a7   : > { %v3024_v46 = vpop.f32.mrf.mxu1  ;;  %3311 = vmatmul.mubr.f32.gmra.mxu1 %v2581_v44 }
 0x2a8   : > { %v3788_v52 = vmax.f32 %v3660_v6, 0.0  ;;  %v3526_v58 = vadd.f32 %v3024_v46, %v9940_v55  ;;  %v8583_v14 = vpop.f32.mrf.mxu0  ;;  %3316 = vmatprep.mubr.f32.mxu1 %v9699_v33  ;;  %v9943_v6 = vld [vmem:[#allocation142_spill] sm:$0xff] }
 0x2a9   : > { %9941 = vst [vmem:[#allocation139_spill] sm:$0xff] %v8583_v14  ;;  %v8586_v2 = vpop.f32.mrf.mxu1 }
 0x2aa   : > { %9942 = vst [vmem:[#allocation220_spill] sm:$0xff] %v8586_v2  ;;  %v3661_v35 = vadd.f32 %v8564_v57, %v3526_v58  ;;  %v8589_v45 = vpop.f32.mrf.mxu0  ;;  %6011 = vmatprep.mubr.f32.mxu0 %v3788_v52 }
 0x2ab   : > { %v3030_v42 = vpop.f32.mrf.mxu1  ;;  %3317 = vmatmul.mubr.f32.gmra.mxu1 %v2582_v17 }
 0x2ac   : > { %v3789_v44 = vmax.f32 %v3661_v35, 0.0  ;;  %v3527_v46 = vadd.f32 %v3030_v42, %v9943_v6  ;;  %v8594_v55 = vpop.f32.mrf.mxu0  ;;  %3322 = vmatprep.mubr.f32.mxu1 %v9699_v33  ;;  %v9946_v35 = vld [vmem:[#allocation145_spill] sm:$0xff] }
 0x2ad   : > { %9944 = vst [vmem:[#allocation142_spill] sm:$0xff] %v8594_v55  ;;  %v8597_v14 = vpop.f32.mrf.mxu1 }
 0x2ae   : > { %9945 = vst [vmem:[#allocation221_spill] sm:$0xff] %v8597_v14  ;;  %v3662_v58 = vadd.f32 %v8564_v57, %v3527_v46  ;;  %v8600_v2 = vpop.f32.mrf.mxu0  ;;  %6012 = vmatmul.mubr.f32.gmra.mxu0 %v3789_v44 }
 0x2af   : > { %v3036_v52 = vpop.f32.mrf.mxu1  ;;  %3323 = vmatmul.mubr.f32.gmra.mxu1 %v2583_v37 }
 0x2b0   : > { %v3790_v17 = vmax.f32 %v3662_v58, 0.0  ;;  %v3528_v42 = vadd.f32 %v3036_v52, %v9946_v35  ;;  %v8605_v6 = vpop.f32.mrf.mxu0  ;;  %3328 = vmatprep.mubr.f32.mxu1 %v9699_v33  ;;  %v9949_v58 = vld [vmem:[#allocation148_spill] sm:$0xff] }
 0x2b1   : > { %9947 = vst [vmem:[#allocation145_spill] sm:$0xff] %v8605_v6  ;;  %v8608_v55 = vpop.f32.mrf.mxu1 }
 0x2b2   : > { %9948 = vst [vmem:[#allocation222_spill] sm:$0xff] %v8608_v55  ;;  %v3663_v46 = vadd.f32 %v8564_v57, %v3528_v42  ;;  %v8611_v14 = vpop.f32.mrf.mxu0  ;;  %6014 = vmatprep.mubr.f32.mxu0 %v3790_v17 }
 0x2b3   : > { %v3042_v44 = vpop.f32.mrf.mxu1  ;;  %3329 = vmatmul.mubr.f32.gmra.mxu1 %v2584_v0 }
 0x2b4   : > { %v3791_v37 = vmax.f32 %v3663_v46, 0.0  ;;  %v3529_v52 = vadd.f32 %v3042_v44, %v9949_v58  ;;  %v8616_v35 = vpop.f32.mrf.mxu0  ;;  %3334 = vmatprep.mubr.f32.mxu1 %v9699_v33  ;;  %v9952_v46 = vld [vmem:[#allocation151_spill] sm:$0xff] }
 0x2b5   : > { %9950 = vst [vmem:[#allocation148_spill] sm:$0xff] %v8616_v35  ;;  %v8619_v6 = vpop.f32.mrf.mxu1 }
 0x2b6   : > { %9951 = vst [vmem:[#allocation223_spill] sm:$0xff] %v8619_v6  ;;  %v3664_v42 = vadd.f32 %v8564_v57, %v3529_v52  ;;  %v8622_v55 = vpop.f32.mrf.mxu0  ;;  %6015 = vmatmul.mubr.f32.gmra.mxu0 %v3791_v37 }
 0x2b7   : > { %v3048_v17 = vpop.f32.mrf.mxu1  ;;  %3335 = vmatmul.mubr.f32.gmra.mxu1 %v2585_v36 }
 0x2b8   : > { %v3792_v0 = vmax.f32 %v3664_v42, 0.0  ;;  %v3530_v44 = vadd.f32 %v3048_v17, %v9952_v46  ;;  %v8627_v58 = vpop.f32.mrf.mxu0  ;;  %3340 = vmatprep.mubr.f32.mxu1 %v9699_v33  ;;  %v9955_v42 = vld [vmem:[#allocation154_spill] sm:$0xff] }
 0x2b9   : > { %9953 = vst [vmem:[#allocation151_spill] sm:$0xff] %v8627_v58  ;;  %v8630_v35 = vpop.f32.mrf.mxu1 }
 0x2ba   : > { %9954 = vst [vmem:[#allocation224_spill] sm:$0xff] %v8630_v35  ;;  %v3665_v52 = vadd.f32 %v8564_v57, %v3530_v44  ;;  %v8633_v6 = vpop.f32.mrf.mxu0  ;;  %6017 = vmatprep.mubr.f32.mxu0 %v3792_v0 }
 0x2bb   : > { %v3054_v37 = vpop.f32.mrf.mxu1  ;;  %3341 = vmatmul.mubr.f32.gmra.mxu1 %v2586_v60 }
 0x2bc   : > { %v3793_v36 = vmax.f32 %v3665_v52, 0.0  ;;  %v3531_v17 = vadd.f32 %v3054_v37, %v9955_v42  ;;  %v8638_v46 = vpop.f32.mrf.mxu0  ;;  %3346 = vmatprep.mubr.f32.mxu1 %v9699_v33  ;;  %v9958_v52 = vld [vmem:[#allocation157_spill] sm:$0xff] }
 0x2bd   : > { %9956 = vst [vmem:[#allocation154_spill] sm:$0xff] %v8638_v46  ;;  %v8641_v58 = vpop.f32.mrf.mxu1 }
 0x2be   : > { %9957 = vst [vmem:[#allocation225_spill] sm:$0xff] %v8641_v58  ;;  %v3666_v44 = vadd.f32 %v8564_v57, %v3531_v17  ;;  %v8644_v35 = vpop.f32.mrf.mxu0  ;;  %6018 = vmatmul.mubr.f32.gmra.mxu0 %v3793_v36 }
 0x2bf   : > { %v3060_v0 = vpop.f32.mrf.mxu1  ;;  %3347 = vmatmul.mubr.f32.gmra.mxu1 %v2587_v26 }
 0x2c0   : > { %v3794_v60 = vmax.f32 %v3666_v44, 0.0  ;;  %v3532_v37 = vadd.f32 %v3060_v0, %v9958_v52  ;;  %v8649_v42 = vpop.f32.mrf.mxu0  ;;  %3352 = vmatprep.mubr.f32.mxu1 %v9699_v33  ;;  %v9961_v44 = vld [vmem:[#allocation160_spill] sm:$0xff] }
 0x2c1   : > { %9959 = vst [vmem:[#allocation157_spill] sm:$0xff] %v8649_v42  ;;  %v8652_v46 = vpop.f32.mrf.mxu1 }
 0x2c2   : > { %9960 = vst [vmem:[#allocation226_spill] sm:$0xff] %v8652_v46  ;;  %v3667_v17 = vadd.f32 %v8564_v57, %v3532_v37  ;;  %v8655_v58 = vpop.f32.mrf.mxu0  ;;  %6020 = vmatprep.mubr.f32.mxu0 %v3794_v60 }
 0x2c3   : > { %v3066_v36 = vpop.f32.mrf.mxu1  ;;  %3353 = vmatmul.mubr.f32.gmra.mxu1 %v2588_v32 }
 0x2c4   : > { %v3795_v26 = vmax.f32 %v3667_v17, 0.0  ;;  %v3533_v0 = vadd.f32 %v3066_v36, %v9961_v44  ;;  %v8660_v52 = vpop.f32.mrf.mxu0  ;;  %3358 = vmatprep.mubr.f32.mxu1 %v9699_v33  ;;  %v9964_v17 = vld [vmem:[#allocation163_spill] sm:$0xff] }
 0x2c5   : > { %9962 = vst [vmem:[#allocation160_spill] sm:$0xff] %v8660_v52  ;;  %v8663_v42 = vpop.f32.mrf.mxu1 }
 0x2c6   : > { %9963 = vst [vmem:[#allocation227_spill] sm:$0xff] %v8663_v42  ;;  %v3668_v37 = vadd.f32 %v8564_v57, %v3533_v0  ;;  %v8666_v46 = vpop.f32.mrf.mxu0  ;;  %6021 = vmatmul.mubr.f32.gmra.mxu0 %v3795_v26 }
 0x2c7   : > { %v3072_v60 = vpop.f32.mrf.mxu1  ;;  %3359 = vmatmul.mubr.f32.gmra.mxu1 %v2589_v48 }
 0x2c8   : > { %v3796_v32 = vmax.f32 %v3668_v37, 0.0  ;;  %v3534_v36 = vadd.f32 %v3072_v60, %v9964_v17  ;;  %v8671_v44 = vpop.f32.mrf.mxu0  ;;  %3364 = vmatprep.mubr.f32.mxu1 %v9699_v33  ;;  %v9967_v37 = vld [vmem:[#allocation166_spill] sm:$0xff] }
 0x2c9   : > { %9965 = vst [vmem:[#allocation163_spill] sm:$0xff] %v8671_v44  ;;  %v8674_v52 = vpop.f32.mrf.mxu1 }
 0x2ca   : > { %9966 = vst [vmem:[#allocation228_spill] sm:$0xff] %v8674_v52  ;;  %v3669_v0 = vadd.f32 %v8564_v57, %v3534_v36  ;;  %v8677_v42 = vpop.f32.mrf.mxu0  ;;  %6023 = vmatprep.mubr.f32.mxu0 %v3796_v32 }
 0x2cb   : > { %v3078_v26 = vpop.f32.mrf.mxu1  ;;  %3365 = vmatmul.mubr.f32.gmra.mxu1 %v2590_v28 }
 0x2cc   : > { %v3797_v48 = vmax.f32 %v3669_v0, 0.0  ;;  %v3535_v60 = vadd.f32 %v3078_v26, %v9967_v37  ;;  %v8682_v17 = vpop.f32.mrf.mxu0  ;;  %3370 = vmatprep.mubr.f32.mxu1 %v9699_v33  ;;  %v9970_v0 = vld [vmem:[#allocation169_spill] sm:$0xff] }
 0x2cd   : > { %9968 = vst [vmem:[#allocation166_spill] sm:$0xff] %v8682_v17  ;;  %v8685_v44 = vpop.f32.mrf.mxu1  ;;  %v9972_v17 = vld [vmem:[#allocation174_spill] sm:$0xff] }
 0x2ce   : > { %9969 = vst [vmem:[#allocation229_spill] sm:$0xff] %v8685_v44  ;;  %v3670_v36 = vadd.f32 %v8564_v57, %v3535_v60  ;;  %v8688_v52 = vpop.f32.mrf.mxu0  ;;  %6024 = vmatmul.mubr.f32.gmra.mxu0 %v3797_v48  ;;  %v9973_v44 = vld [vmem:[#allocation2_spill] sm:$0xff] }
 0x2cf   : > { %v3084_v32 = vpop.f32.mrf.mxu1  ;;  %3371 = vmatmul.mubr.f32.gmra.mxu1 %v2591_v10  ;;  %v3865_v60 = vadd.f32 %v9973_v44, %v9972_v17  ;;  %v9975_v10 = vld [vmem:[#allocation3_spill] sm:$0xff] }
 0x2d0   : > { %v3798_v28 = vmax.f32 %v3670_v36, 0.0  ;;  %v3536_v26 = vadd.f32 %v3084_v32, %v9970_v0  ;;  %v8693_v37 = vpop.f32.mrf.mxu0  ;;  %3376 = vmatprep.mubr.f32.mxu1 %v9699_v33  ;;  %v9976_v36 = vld [vmem:[#allocation172_spill] sm:$0xff]  ;;  %v2593_v0 = vmax.f32 %v2465_v62, 0.0  ;;  %v9978_v62 = vld [vmem:[#allocation178_spill] sm:$0xff] }
 0x2d1   : > { %9971 = vst [vmem:[#allocation169_spill] sm:$0xff] %v8693_v37  ;;  %v8698_v39 = vpop.f32.mrf.mxu1  ;;  %v3864_v32 = vadd.f32 %v9976_v36, %v9975_v10  ;;  %v2466_v37 = vadd.f32 %v8419_v29, %v8540_v59  ;;  %v9979_v10 = vld [vmem:[#allocation4_spill] sm:$0xff]  ;;  %v9981_v36 = vld [vmem:[#allocation5_spill] sm:$0xff] }
 0x2d2   : > { %9974 = vst [vmem:[#allocation174_spill] sm:$0xff] %v8698_v39  ;;  %v3671_v1 = vadd.f32 %v8564_v57, %v3536_v26  ;;  %v5935_v48 = vpop.f32.mrf.mxu0  ;;  %6026 = vmatprep.mubr.f32.mxu0 %v3798_v28  ;;  %v9977_v28 = vld [vmem:[#allocation171_spill] sm:$0xff]  ;;  %v3867_v59 = vadd.f32 %v9979_v10, %v9978_v62  ;;  %v3866_v63 = vadd.f32 %v9982_v13, %v9981_v36  ;;  %v9983_v10 = vld [vmem:[#allocation173_spill] sm:$0xff] }
 0x2d3   : > { %v4714_v53 = vadd.f32 %v5935_v48, %v3865_v60  ;;  %v3090_v44 = vpop.f32.mrf.mxu1  ;;  %3377 = vmatmul.mubr.f32.gmra.mxu1 %v2592_v15 }
 0x2d4   : > { %v3799_v17 = vmax.f32 %v3671_v1, 0.0  ;;  %v3537_v26 = vadd.f32 %v3090_v44, %v9977_v28  ;;  %v4074_v39 = vpop.f32.mrf.mxu0  ;;  %3382 = vmatprep.mubr.f32.mxu1 %v9699_v33  ;;  %v2594_v44 = vmax.f32 %v2466_v37, 0.0  ;;  %v2467_v28 = vadd.f32 %v8419_v29, %v8551_v38 }
 0x2d5   : > { %v4849_v60 = vadd.f32 %v8704_v8, %v4714_v53  ;;  %v4713_v15 = vadd.f32 %v4074_v39, %v3864_v32  ;;  %v8722_v48 = vpop.f32.mrf.mxu1 }
 0x2d6   : > { %9980 = vst [vmem:[#allocation2_spill] sm:$0xff] %v8722_v48  ;;  %v3672_v1 = vadd.f32 %v8564_v57, %v3537_v26  ;;  %v5938_v56 = vpop.f32.mrf.mxu0  ;;  %6027 = vmatmul.mubr.f32.gmra.mxu0 %v3799_v17  ;;  %v9984_v26 = vld [vmem:[#allocation182_spill] sm:$0xff] }
 0x2d7   : > { %4978 = vst.msk [vmem:[%s8715_s27 + $0x8] sm:$0xff] %vm4976_vm2, %v4849_v60  ;;  %v4848_v62 = vadd.f32 %v8704_v8, %v4713_v15  ;;  %v4716_v53 = vadd.f32 %v5938_v56, %v3867_v59  ;;  %v3096_v39 = vpop.f32.mrf.mxu1  ;;  %3383 = vmatmul.mubr.f32.gmra.mxu1 %v2593_v0  ;;  %v9985_v17 = vld [vmem:[#allocation6_spill] sm:$0xff]  ;;  %v9986_v56 = vld [vmem:[#allocation7_spill] sm:$0xff]  ;;  %v9987_v59 = vld [vmem:[#allocation180_spill] sm:$0xff] }
 0x2d8   : > { %v3800_v32 = vmax.f32 %v3672_v1, 0.0  ;;  %v3538_v13 = vadd.f32 %v3096_v39, %v9983_v10  ;;  %v4084_v36 = vpop.f32.mrf.mxu0  ;;  %3388 = vmatprep.mubr.f32.mxu1 %v9699_v33  ;;  %v3869_v37 = vadd.f32 %v9985_v17, %v9984_v26  ;;  %v3868_v0 = vadd.f32 %v9987_v59, %v9986_v56  ;;  %v9988_v26 = vld [vmem:[#allocation175_spill] sm:$0xff] }
 0x2d9   : > { %4977 = vst.msk [vmem:[%s8715_s27] sm:$0xff] %vm4976_vm2, %v4848_v62  ;;  %v4851_v38 = vadd.f32 %v8704_v8, %v4716_v53  ;;  %v4715_v60 = vadd.f32 %v4084_v36, %v3866_v63  ;;  %v8739_v48 = vpop.f32.mrf.mxu1  ;;  %v2595_v39 = vmax.f32 %v2467_v28, 0.0  ;;  %v2468_v10 = vadd.f32 %v8419_v29, %v8567_v18 }
 0x2da   : > { %v3673_v15 = vadd.f32 %v8564_v57, %v3538_v13  ;;  %v5941_v1 = vpop.f32.mrf.mxu0  ;;  %6029 = vmatprep.mubr.f32.mxu0 %v3800_v32  ;;  %v9989_v13 = vld [vmem:[#allocation186_spill] sm:$0xff]  ;;  %v9990_v32 = vld [vmem:[#allocation8_spill] sm:$0xff] }
 0x2db   : > { %4980 = vst.msk [vmem:[%s8715_s27 + $0x18] sm:$0xff] %vm4976_vm2, %v4851_v38  ;;  %v4850_v62 = vadd.f32 %v8704_v8, %v4715_v60  ;;  %v4718_v53 = vadd.f32 %v5941_v1, %v3869_v37  ;;  %v3102_v63 = vpop.f32.mrf.mxu1  ;;  %3389 = vmatmul.mubr.f32.gmra.mxu1 %v2594_v44  ;;  %v3871_v28 = vadd.f32 %v9990_v32, %v9989_v13  ;;  %v9991_v37 = vld [vmem:[#allocation9_spill] sm:$0xff]  ;;  %v9992_v60 = vld [vmem:[#allocation184_spill] sm:$0xff] }
 0x2dc   : > { %v3801_v36 = vmax.f32 %v3673_v15, 0.0  ;;  %v3539_v17 = vadd.f32 %v3102_v63, %v9988_v26  ;;  %v4094_v56 = vpop.f32.mrf.mxu0  ;;  %3394 = vmatprep.mubr.f32.mxu1 %v9699_v33  ;;  %v3870_v44 = vadd.f32 %v9992_v60, %v9991_v37  ;;  %v2596_v63 = vmax.f32 %v2468_v10, 0.0  ;;  %v9993_v13 = vld [vmem:[#allocation177_spill] sm:$0xff] }
 0x2dd   : > { %4979 = vst.msk [vmem:[%s8715_s27 + $0x10] sm:$0xff] %vm4976_vm2, %v4850_v62  ;;  %v4853_v18 = vadd.f32 %v8704_v8, %v4718_v53  ;;  %v4717_v38 = vadd.f32 %v4094_v56, %v3868_v0  ;;  %v8756_v59 = vpop.f32.mrf.mxu1  ;;  %v2469_v26 = vadd.f32 %v8419_v29, %v8578_v24 }
 0x2de   : > { %v3674_v15 = vadd.f32 %v8564_v57, %v3539_v17  ;;  %v5944_v1 = vpop.f32.mrf.mxu0  ;;  %6030 = vmatmul.mubr.f32.gmra.mxu0 %v3801_v36  ;;  %v9994_v17 = vld [vmem:[#allocation190_spill] sm:$0xff] }
 0x2df   : > { %4982 = vst.msk [vmem:[%s8715_s27 + $0x28] sm:$0xff] %vm4976_vm2, %v4853_v18  ;;  %v4852_v62 = vadd.f32 %v8704_v8, %v4717_v38  ;;  %v4720_v53 = vadd.f32 %v5944_v1, %v3871_v28  ;;  %v3108_v0 = vpop.f32.mrf.mxu1  ;;  %3395 = vmatmul.mubr.f32.gmra.mxu1 %v2595_v39  ;;  %v9995_v36 = vld [vmem:[#allocation10_spill] sm:$0xff]  ;;  %v9996_v28 = vld [vmem:[#allocation11_spill] sm:$0xff]  ;;  %v9997_v38 = vld [vmem:[#allocation188_spill] sm:$0xff] }
 0x2e0   : > { %v3802_v56 = vmax.f32 %v3674_v15, 0.0  ;;  %v3540_v32 = vadd.f32 %v3108_v0, %v9993_v13  ;;  %v4104_v37 = vpop.f32.mrf.mxu0  ;;  %3400 = vmatprep.mubr.f32.mxu1 %v9699_v33  ;;  %v3873_v10 = vadd.f32 %v9995_v36, %v9994_v17  ;;  %v3872_v39 = vadd.f32 %v9997_v38, %v9996_v28  ;;  %v9998_v17 = vld [vmem:[#allocation179_spill] sm:$0xff] }
 0x2e1   : > { %4981 = vst.msk [vmem:[%s8715_s27 + $0x20] sm:$0xff] %vm4976_vm2, %v4852_v62  ;;  %v4855_v24 = vadd.f32 %v8704_v8, %v4720_v53  ;;  %v4719_v18 = vadd.f32 %v4104_v37, %v3870_v44  ;;  %v8773_v60 = vpop.f32.mrf.mxu1  ;;  %v2597_v0 = vmax.f32 %v2469_v26, 0.0  ;;  %v2470_v13 = vadd.f32 %v8419_v29, %v8589_v45 }
 0x2e2   : > { %v3675_v15 = vadd.f32 %v8564_v57, %v3540_v32  ;;  %v5947_v1 = vpop.f32.mrf.mxu0  ;;  %6032 = vmatprep.mubr.f32.mxu0 %v3802_v56  ;;  %v9999_v32 = vld [vmem:[#allocation194_spill] sm:$0xff]  ;;  %v10000_v56 = vld [vmem:[#allocation12_spill] sm:$0xff] }
 0x2e3   : > { %4984 = vst.msk [vmem:[%s8715_s27 + $0x38] sm:$0xff] %vm4976_vm2, %v4855_v24  ;;  %v4854_v62 = vadd.f32 %v8704_v8, %v4719_v18  ;;  %v4722_v53 = vadd.f32 %v5947_v1, %v3873_v10  ;;  %v3114_v44 = vpop.f32.mrf.mxu1  ;;  %3401 = vmatmul.mubr.f32.gmra.mxu1 %v2596_v63  ;;  %v3875_v26 = vadd.f32 %v10000_v56, %v9999_v32  ;;  %v10001_v10 = vld [vmem:[#allocation14_spill] sm:$0xff]  ;;  %v10002_v18 = vld [vmem:[#allocation192_spill] sm:$0xff]  ;;  %v10003_v32 = vld [vmem:[#allocation181_spill] sm:$0xff] }
 0x2e4   : > { %v3803_v37 = vmax.f32 %v3675_v15, 0.0  ;;  %v3541_v36 = vadd.f32 %v3114_v44, %v9998_v17  ;;  %v4114_v28 = vpop.f32.mrf.mxu0  ;;  %3406 = vmatprep.mubr.f32.mxu1 %v9699_v33  ;;  %v3874_v63 = vadd.f32 %v10002_v18, %v10001_v10  ;;  %v2598_v44 = vmax.f32 %v2470_v13, 0.0 }
 0x2e5   : > { %4983 = vst.msk [vmem:[%s8715_s27 + $0x30] sm:$0xff] %vm4976_vm2, %v4854_v62  ;;  %v4857_v45 = vadd.f32 %v8704_v8, %v4722_v53  ;;  %v4721_v24 = vadd.f32 %v4114_v28, %v3872_v39  ;;  %v8790_v38 = vpop.f32.mrf.mxu1  ;;  %v2471_v17 = vadd.f32 %v8419_v29, %v8600_v2 }
 0x2e6   : > { %v3676_v15 = vadd.f32 %v8564_v57, %v3541_v36  ;;  %v5950_v1 = vpop.f32.mrf.mxu0  ;;  %6033 = vmatmul.mubr.f32.gmra.mxu0 %v3803_v37  ;;  %v10004_v36 = vld [vmem:[#allocation198_spill] sm:$0xff]  ;;  %v10005_v37 = vld [vmem:[#allocation15_spill] sm:$0xff] }
 0x2e7   : > { %4986 = vst.msk [vmem:[%s8715_s27 + $0x48] sm:$0xff] %vm4976_vm2, %v4857_v45  ;;  %v4856_v62 = vadd.f32 %v8704_v8, %v4721_v24  ;;  %v4724_v53 = vadd.f32 %v5950_v1, %v3875_v26  ;;  %v3120_v39 = vpop.f32.mrf.mxu1  ;;  %3407 = vmatmul.mubr.f32.gmra.mxu1 %v2597_v0  ;;  %v3877_v13 = vadd.f32 %v10005_v37, %v10004_v36  ;;  %v10006_v26 = vld [vmem:[#allocation17_spill] sm:$0xff]  ;;  %v10007_v24 = vld [vmem:[#allocation196_spill] sm:$0xff]  ;;  %v10008_v36 = vld [vmem:[#allocation183_spill] sm:$0xff] }
 0x2e8   : > { %v3804_v28 = vmax.f32 %v3676_v15, 0.0  ;;  %v3542_v56 = vadd.f32 %v3120_v39, %v10003_v32  ;;  %v4124_v10 = vpop.f32.mrf.mxu0  ;;  %3412 = vmatprep.mubr.f32.mxu1 %v9699_v33  ;;  %v3876_v0 = vadd.f32 %v10007_v24, %v10006_v26  ;;  %v2599_v39 = vmax.f32 %v2471_v17, 0.0 }
 0x2e9   : > { %4985 = vst.msk [vmem:[%s8715_s27 + $0x40] sm:$0xff] %vm4976_vm2, %v4856_v62  ;;  %v4859_v2 = vadd.f32 %v8704_v8, %v4724_v53  ;;  %v4723_v45 = vadd.f32 %v4124_v10, %v3874_v63  ;;  %v8807_v18 = vpop.f32.mrf.mxu1  ;;  %v2472_v32 = vadd.f32 %v8419_v29, %v8611_v14 }
 0x2ea   : > { %v3677_v15 = vadd.f32 %v8564_v57, %v3542_v56  ;;  %v5953_v1 = vpop.f32.mrf.mxu0  ;;  %6035 = vmatprep.mubr.f32.mxu0 %v3804_v28  ;;  %v10009_v28 = vld [vmem:[#allocation18_spill] sm:$0xff] }
 0x2eb   : > { %4988 = vst.msk [vmem:[%s8715_s27 + $0x58] sm:$0xff] %vm4976_vm2, %v4859_v2  ;;  %v4858_v62 = vadd.f32 %v8704_v8, %v4723_v45  ;;  %v4726_v53 = vadd.f32 %v5953_v1, %v3877_v13  ;;  %v3126_v63 = vpop.f32.mrf.mxu1  ;;  %3413 = vmatmul.mubr.f32.gmra.mxu1 %v2598_v44  ;;  %v3879_v17 = vadd.f32 %v10009_v28, %v8124_v54  ;;  %v10010_v13 = vld [vmem:[#allocation20_spill] sm:$0xff]  ;;  %v2600_v1 = vmax.f32 %v2472_v32, 0.0 }
 0x2ec   : > { %v3805_v10 = vmax.f32 %v3677_v15, 0.0  ;;  %v3543_v37 = vadd.f32 %v3126_v63, %v10008_v36  ;;  %v4134_v26 = vpop.f32.mrf.mxu0  ;;  %3418 = vmatprep.mubr.f32.mxu1 %v9699_v33  ;;  %v10011_v45 = vld [vmem:[#allocation200_spill] sm:$0xff]  ;;  %v2473_v63 = vadd.f32 %v8419_v29, %v8622_v55  ;;  %v10012_v36 = vld [vmem:[#allocation185_spill] sm:$0xff] }
 0x2ed   : > { %4987 = vst.msk [vmem:[%s8715_s27 + $0x50] sm:$0xff] %vm4976_vm2, %v4858_v62  ;;  %v4861_v14 = vadd.f32 %v8704_v8, %v4726_v53  ;;  %v4725_v56 = vadd.f32 %v4134_v26, %v3876_v0  ;;  %v8824_v2 = vpop.f32.mrf.mxu1  ;;  %v3878_v44 = vadd.f32 %v10011_v45, %v10010_v13 }
 0x2ee   : > { %v3678_v24 = vadd.f32 %v8564_v57, %v3543_v37  ;;  %v5956_v15 = vpop.f32.mrf.mxu0  ;;  %6036 = vmatmul.mubr.f32.gmra.mxu0 %v3805_v10  ;;  %v10013_v10 = vld [vmem:[#allocation21_spill] sm:$0xff]  ;;  %v2601_v45 = vmax.f32 %v2473_v63, 0.0 }
 0x2ef   : > { %4990 = vst.msk [vmem:[%s8715_s27 + $0x68] sm:$0xff] %vm4976_vm2, %v4861_v14  ;;  %v4860_v54 = vadd.f32 %v8704_v8, %v4725_v56  ;;  %v4728_v62 = vadd.f32 %v5956_v15, %v3879_v17  ;;  %v3132_v0 = vpop.f32.mrf.mxu1  ;;  %3419 = vmatmul.mubr.f32.gmra.mxu1 %v2599_v39  ;;  %v3881_v32 = vadd.f32 %v10013_v10, %v8158_v20  ;;  %v10014_v17 = vld [vmem:[#allocation23_spill] sm:$0xff] }
 0x2f0   : > { %v3806_v53 = vmax.f32 %v3678_v24, 0.0  ;;  %v3544_v26 = vadd.f32 %v3132_v0, %v10012_v36  ;;  %v4144_v28 = vpop.f32.mrf.mxu0  ;;  %3424 = vmatprep.mubr.f32.mxu1 %v9699_v33  ;;  %v3880_v39 = vadd.f32 %v8141_v23, %v10014_v17  ;;  %v2474_v24 = vadd.f32 %v8419_v29, %v8633_v6 }
 0x2f1   : > { %4989 = vst.msk [vmem:[%s8715_s27 + $0x60] sm:$0xff] %vm4976_vm2, %v4860_v54  ;;  %v4863_v55 = vadd.f32 %v8704_v8, %v4728_v62  ;;  %v4727_v37 = vadd.f32 %v4144_v28, %v3878_v44  ;;  %v8841_v14 = vpop.f32.mrf.mxu1  ;;  %v10015_v62 = vld [vmem:[#allocation187_spill] sm:$0xff]  ;;  %v10017_v28 = vld [vmem:[#allocation26_spill] sm:$0xff] }
 0x2f2   : > { %v3679_v56 = vadd.f32 %v8564_v57, %v3544_v26  ;;  %v5959_v13 = vpop.f32.mrf.mxu0  ;;  %6038 = vmatprep.mubr.f32.mxu0 %v3806_v53  ;;  %v10016_v53 = vld [vmem:[#allocation24_spill] sm:$0xff] }
 0x2f3   : > { %4992 = vst.msk [vmem:[%s8715_s27 + $0x78] sm:$0xff] %vm4976_vm2, %v4863_v55  ;;  %v4862_v20 = vadd.f32 %v8704_v8, %v4727_v37  ;;  %v4730_v15 = vadd.f32 %v5959_v13, %v3881_v32  ;;  %v3138_v44 = vpop.f32.mrf.mxu1  ;;  %3425 = vmatmul.mubr.f32.gmra.mxu1 %v2600_v1  ;;  %v3883_v63 = vadd.f32 %v10016_v53, %v8188_v19  ;;  %v2602_v55 = vmax.f32 %v2474_v24, 0.0  ;;  %v10018_v13 = vld [vmem:[#allocation189_spill] sm:$0xff] }
 0x2f4   : > { %v3807_v54 = vmax.f32 %v3679_v56, 0.0  ;;  %v3545_v23 = vadd.f32 %v3138_v44, %v10015_v62  ;;  %v4154_v0 = vpop.f32.mrf.mxu0  ;;  %3430 = vmatprep.mubr.f32.mxu1 %v9699_v33  ;;  %v3882_v1 = vadd.f32 %v8173_v40, %v10017_v28  ;;  %v2475_v37 = vadd.f32 %v8419_v29, %v8644_v35  ;;  %v10020_v62 = vld [vmem:[#allocation29_spill] sm:$0xff] }
 0x2f5   : > { %4991 = vst.msk [vmem:[%s8715_s27 + $0x70] sm:$0xff] %vm4976_vm2, %v4862_v20  ;;  %v4865_v6 = vadd.f32 %v8704_v8, %v4730_v15  ;;  %v4729_v36 = vadd.f32 %v4154_v0, %v3880_v39  ;;  %v8858_v26 = vpop.f32.mrf.mxu1  ;;  %v10019_v15 = vld [vmem:[#allocation27_spill] sm:$0xff] }
 0x2f6   : > { %v3680_v10 = vadd.f32 %v8564_v57, %v3545_v23  ;;  %v5962_v32 = vpop.f32.mrf.mxu0  ;;  %6039 = vmatmul.mubr.f32.gmra.mxu0 %v3807_v54  ;;  %v3885_v24 = vadd.f32 %v10019_v15, %v8217_v22  ;;  %v2603_v53 = vmax.f32 %v2475_v37, 0.0 }
 0x2f7   : > { %4994 = vst.msk [vmem:[%s8715_s27 + $0x88] sm:$0xff] %vm4976_vm2, %v4865_v6  ;;  %v4864_v19 = vadd.f32 %v8704_v8, %v4729_v36  ;;  %v4732_v17 = vadd.f32 %v5962_v32, %v3883_v63  ;;  %v3144_v39 = vpop.f32.mrf.mxu1  ;;  %3431 = vmatmul.mubr.f32.gmra.mxu1 %v2601_v45  ;;  %v3884_v45 = vadd.f32 %v8203_v47, %v10020_v62  ;;  %v10022_v32 = vld [vmem:[#allocation30_spill] sm:$0xff] }
 0x2f8   : > { %v3808_v56 = vmax.f32 %v3680_v10, 0.0  ;;  %v3546_v40 = vadd.f32 %v3144_v39, %v10018_v13  ;;  %v4164_v20 = vpop.f32.mrf.mxu0  ;;  %3436 = vmatprep.mubr.f32.mxu1 %v9699_v33  ;;  %v2476_v63 = vadd.f32 %v8419_v29, %v8655_v58  ;;  %v3887_v37 = vadd.f32 %v10022_v32, %v8243_v25  ;;  %v6170_v25 = vld [vmem:[%s9655_s4] ss:$0 sm:$0xff] }
 0x2f9   : > { %4993 = vst.msk [vmem:[%s8715_s27 + $0x80] sm:$0xff] %vm4976_vm2, %v4864_v19  ;;  %v4867_v35 = vadd.f32 %v8704_v8, %v4732_v17  ;;  %v4731_v44 = vadd.f32 %v4164_v20, %v3882_v1  ;;  %v8875_v54 = vpop.f32.mrf.mxu1  ;;  %v10021_v1 = vld [vmem:[#allocation191_spill] sm:$0xff]  ;;  %v10023_v17 = vld [vmem:[#allocation32_spill] sm:$0xff] }
 0x2fa   : > { %v3681_v23 = vadd.f32 %v8564_v57, %v3546_v40  ;;  %v5965_v0 = vpop.f32.mrf.mxu0  ;;  %6041 = vmatprep.mubr.f32.mxu0 %v3808_v56  ;;  %v2604_v13 = vmax.f32 %v2476_v63, 0.0  ;;  %v2477_v40 = vadd.f32 %v6170_v25, %v8666_v46 }
 0x2fb   : > { %4996 = vst.msk [vmem:[%s8715_s27 + $0x98] sm:$0xff] %vm4976_vm2, %v4867_v35  ;;  %v4866_v22 = vadd.f32 %v8704_v8, %v4731_v44  ;;  %v4734_v6 = vadd.f32 %v5965_v0, %v3885_v24  ;;  %v3150_v36 = vpop.f32.mrf.mxu1  ;;  %3437 = vmatmul.mubr.f32.gmra.mxu1 %v2602_v55  ;;  %v3886_v55 = vadd.f32 %v8230_v61, %v10023_v17  ;;  %v10024_v35 = vld [vmem:[#allocation193_spill] sm:$0xff] }
 0x2fc   : > { %v3809_v28 = vmax.f32 %v3681_v23, 0.0  ;;  %v3547_v47 = vadd.f32 %v3150_v36, %v10021_v1  ;;  %v4174_v10 = vpop.f32.mrf.mxu0  ;;  %3442 = vmatprep.mubr.f32.mxu1 %v9699_v33  ;;  %v2478_v1 = vadd.f32 %v6170_v25, %v8677_v42 }
 0x2fd   : > { %4995 = vst.msk [vmem:[%s8715_s27 + $0x90] sm:$0xff] %vm4976_vm2, %v4866_v22  ;;  %v4869_v29 = vadd.f32 %v8704_v8, %v4734_v6  ;;  %v4733_v58 = vadd.f32 %v4174_v10, %v3884_v45  ;;  %v8892_v19 = vpop.f32.mrf.mxu1  ;;  %v10025_v45 = vld [vmem:[#allocation33_spill] sm:$0xff]  ;;  %v10026_v22 = vld [vmem:[#allocation35_spill] sm:$0xff] }
 0x2fe   : > { %v3682_v39 = vadd.f32 %v8564_v57, %v3547_v47  ;;  %v5968_v56 = vpop.f32.mrf.mxu0  ;;  %6042 = vmatmul.mubr.f32.gmra.mxu0 %v3809_v28  ;;  %v3889_v23 = vadd.f32 %v10025_v45, %v8268_v5  ;;  %v2605_v28 = vmax.f32 %v2477_v40, 0.0 }
 0x2ff   : > { %4998 = vst.msk [vmem:[%s8715_s27 + $0xa8] sm:$0xff] %vm4976_vm2, %v4869_v29  ;;  %v4868_v20 = vadd.f32 %v8704_v8, %v4733_v58  ;;  %v4736_v15 = vadd.f32 %v5968_v56, %v3887_v37  ;;  %v3156_v24 = vpop.f32.mrf.mxu1  ;;  %3443 = vmatmul.mubr.f32.gmra.mxu1 %v2603_v53  ;;  %v3888_v53 = vadd.f32 %v8256_v21, %v10026_v22  ;;  %v10027_v37 = vld [vmem:[#allocation195_spill] sm:$0xff]  ;;  %v10028_v58 = vld [vmem:[#allocation36_spill] sm:$0xff]  ;;  %v10029_v56 = vld [vmem:[#allocation38_spill] sm:$0xff] }
 0x300   : > { %v3810_v61 = vmax.f32 %v3682_v39, 0.0  ;;  %v3548_v44 = vadd.f32 %v3156_v24, %v10024_v35  ;;  %v4184_v62 = vpop.f32.mrf.mxu0  ;;  %3448 = vmatprep.mubr.f32.mxu1 %v9699_v33  ;;  %v3891_v17 = vadd.f32 %v10028_v58, %v8290_v43  ;;  %v2479_v24 = vadd.f32 %v6170_v25, %v8688_v52 }
 0x301   : > { %4997 = vst.msk [vmem:[%s8715_s27 + $0xa0] sm:$0xff] %vm4976_vm2, %v4868_v20  ;;  %v4871_v46 = vadd.f32 %v8704_v8, %v4736_v15  ;;  %v4735_v0 = vadd.f32 %v4184_v62, %v3886_v55  ;;  %v8911_v63 = vpop.f32.mrf.mxu1  ;;  %v2606_v15 = vmax.f32 %v2478_v1, 0.0  ;;  %v10030_v62 = vld [vmem:[#allocation197_spill] sm:$0xff]  ;;  %v10032_v1 = vld [vmem:[#allocation39_spill] sm:$0xff] }
 0x302   : > { %v3683_v6 = vadd.f32 %v8564_v57, %v3548_v44  ;;  %v5971_v36 = vpop.f32.mrf.mxu0  ;;  %6044 = vmatprep.mubr.f32.mxu0 %v3810_v61 }
 0x303   : > { %5000 = vst.msk [vmem:[%s8715_s27 + $0xb8] sm:$0xff] %vm4976_vm2, %v4871_v46  ;;  %v4870_v5 = vadd.f32 %v8704_v8, %v4735_v0  ;;  %v4738_v47 = vadd.f32 %v5971_v36, %v3889_v23  ;;  %v3162_v10 = vpop.f32.mrf.mxu1  ;;  %3449 = vmatmul.mubr.f32.gmra.mxu1 %v2604_v13  ;;  %v3890_v13 = vadd.f32 %v8279_v30, %v10029_v56  ;;  %v2607_v0 = vmax.f32 %v2479_v24, 0.0  ;;  %v10031_v36 = vld [vmem:[#allocation199_spill] sm:$0xff]  ;;  %v10035_v24 = vld [vmem:[#allocation16_spill] sm:$0xff] }
 0x304   : > { %v3811_v32 = vmax.f32 %v3683_v6, 0.0  ;;  %v3549_v29 = vadd.f32 %v3162_v10, %v10027_v37  ;;  %v4194_v21 = vpop.f32.mrf.mxu0  ;;  %3454 = vmatprep.mubr.f32.mxu1 %v9699_v33  ;;  %v10033_v37 = vld [vmem:[#allocation40_spill] sm:$0xff] }
 0x305   : > { %4999 = vst.msk [vmem:[%s8715_s27 + $0xb0] sm:$0xff] %vm4976_vm2, %v4870_v5  ;;  %v4873_v42 = vadd.f32 %v8704_v8, %v4738_v47  ;;  %v4737_v55 = vadd.f32 %v4194_v21, %v3888_v53  ;;  %v8927_v39 = vpop.f32.mrf.mxu1  ;;  %v3893_v5 = vadd.f32 %v10032_v1, %v8312_v12 }
 0x306   : > { %v3684_v40 = vadd.f32 %v8564_v57, %v3549_v29  ;;  %v5974_v20 = vpop.f32.mrf.mxu0  ;;  %6045 = vmatmul.mubr.f32.gmra.mxu0 %v3811_v32  ;;  %v3892_v29 = vadd.f32 %v8301_v31, %v10033_v37 }
 0x307   : > { %5002 = vst.msk [vmem:[%s8715_s27 + $0xc8] sm:$0xff] %vm4976_vm2, %v4873_v42  ;;  %v4872_v43 = vadd.f32 %v8704_v8, %v4737_v55  ;;  %v4740_v61 = vadd.f32 %v5974_v20, %v3891_v17  ;;  %v3168_v35 = vpop.f32.mrf.mxu1  ;;  %3455 = vmatmul.mubr.f32.gmra.mxu1 %v2605_v28  ;;  %v10034_v17 = vld [vmem:[#allocation13_spill] sm:$0xff] }
 0x308   : > { %v3812_v44 = vmax.f32 %v3684_v40, 0.0  ;;  %v3550_v45 = vadd.f32 %v3168_v35, %v10030_v62  ;;  %v4204_v23 = vpop.f32.mrf.mxu0  ;;  %3460 = vmatprep.mubr.f32.mxu1 %v9699_v33 }
 0x309   : > { %5001 = vst.msk [vmem:[%s8715_s27 + $0xc0] sm:$0xff] %vm4976_vm2, %v4872_v43  ;;  %v4875_v30 = vadd.f32 %v8704_v8, %v4740_v61  ;;  %v4739_v52 = vadd.f32 %v4204_v23, %v3890_v13  ;;  %v8941_v25 = vpop.f32.mrf.mxu1  ;;  %v10036_v61 = vld [vmem:[#allocation41_spill] sm:$0xff]  ;;  %v10037_v23 = vld [vmem:[#allocation42_spill] sm:$0xff] }
 0x30a   : > { %v3685_v46 = vadd.f32 %v8564_v57, %v3550_v45  ;;  %6047 = vmatprep.mubr.f32.mxu0 %v3812_v44  ;;  %v3895_v35 = vadd.f32 %v10036_v61, %v8334_v41 }
 0x30b   : > { %5004 = vst.msk [vmem:[%s8715_s27 + $0xd8] sm:$0xff] %vm4976_vm2, %v4875_v30  ;;  %v4874_v22 = vadd.f32 %v8704_v8, %v4739_v52  ;;  %v3174_v53 = vpop.f32.mrf.mxu1  ;;  %3461 = vmatmul.mubr.f32.gmra.mxu1 %v2606_v15  ;;  %v3894_v30 = vadd.f32 %v8323_v4, %v10037_v23 }
 0x30c   : > { %v3813_v6 = vmax.f32 %v3685_v46, 0.0  ;;  %v3551_v28 = vadd.f32 %v3174_v53, %v10031_v36  ;;  %3466 = vmatprep.mubr.f32.mxu1 %v9699_v33 }
 0x30d   : > { %5003 = vst.msk [vmem:[%s8715_s27 + $0xd0] sm:$0xff] %vm4976_vm2, %v4874_v22  ;;  %v8953_v47 = vpop.f32.mrf.mxu1  ;;  %v10038_v22 = vld [vmem:[#allocation19_spill] sm:$0xff] }
 0x30e   : > { %v3686_v10 = vadd.f32 %v8564_v57, %v3551_v28  ;;  %v5977_v32 = vpop.f32.mrf.mxu0  ;;  %6048 = vmatmul.mubr.f32.gmra.mxu0 %v3813_v6 }
 0x30f   : > { %v4742_v21 = vadd.f32 %v5977_v32, %v3893_v5  ;;  %v3180_v58 = vpop.f32.mrf.mxu1  ;;  %3467 = vmatmul.mubr.f32.gmra.mxu1 %v2607_v0  ;;  %v10039_v32 = vld [vmem:[#allocation22_spill] sm:$0xff] }
 0x310   : > { %v3814_v33 = vmax.f32 %v3686_v10, 0.0  ;;  %v3552_v42 = vadd.f32 %v3180_v58, %v10034_v17  ;;  %v4214_v12 = vpop.f32.mrf.mxu0 }
 0x311   : > { %v4877_v55 = vadd.f32 %v8704_v8, %v4742_v21  ;;  %v4741_v56 = vadd.f32 %v4214_v12, %v3892_v29  ;;  %v8960_v13 = vpop.f32.mrf.mxu1  ;;  %v10040_v29 = vld [vmem:[#allocation43_spill] sm:$0xff] }
 0x312   : > { %v3687_v40 = vadd.f32 %v8564_v57, %v3552_v42  ;;  %6050 = vmatprep.mubr.f32.mxu0 %v3814_v33  ;;  %v3897_v21 = vadd.f32 %v10040_v29, %v8356_v49  ;;  %v10041_v42 = vld [vmem:[#allocation44_spill] sm:$0xff] }
 0x313   : > { %5006 = vst.msk [vmem:[%s8715_s27 + $0xe8] sm:$0xff] %vm4976_vm2, %v4877_v55  ;;  %v4876_v31 = vadd.f32 %v8704_v8, %v4741_v56  ;;  %v3186_v20 = vpop.f32.mrf.mxu1  ;;  %v3896_v12 = vadd.f32 %v8345_v7, %v10041_v42 }
 0x314   : > { %v3815_v15 = vmax.f32 %v3687_v40, 0.0  ;;  %v3553_v43 = vadd.f32 %v3186_v20, %v10035_v24 }
 0x315   : > { %5005 = vst.msk [vmem:[%s8715_s27 + $0xe0] sm:$0xff] %vm4976_vm2, %v4876_v31  ;;  %v8971_v44 = vpop.f32.mrf.mxu1 }
 0x316   : > { %v3688_v62 = vadd.f32 %v8564_v57, %v3553_v43  ;;  %v5980_v45 = vpop.f32.mrf.mxu0  ;;  %6051 = vmatmul.mubr.f32.gmra.mxu0 %v3815_v15 }
 0x317   : > { %v4744_v52 = vadd.f32 %v5980_v45, %v3895_v35  ;;  %v3192_v46 = vpop.f32.mrf.mxu1  ;;  %v10042_v45 = vld [vmem:[#allocation45_spill] sm:$0xff] }
 0x318   : > { %v3816_v0 = vmax.f32 %v3688_v62, 0.0  ;;  %v3554_v53 = vadd.f32 %v3192_v46, %v10038_v22  ;;  %v4224_v6 = vpop.f32.mrf.mxu0  ;;  %v10043_v46 = vld [vmem:[#allocation47_spill] sm:$0xff] }
 0x319   : > { %v4879_v41 = vadd.f32 %v8704_v8, %v4744_v52  ;;  %v4743_v36 = vadd.f32 %v4224_v6, %v3894_v30  ;;  %v8978_v28 = vpop.f32.mrf.mxu1 }
 0x31a   : > { %v3689_v1 = vadd.f32 %v8564_v57, %v3554_v53  ;;  %6053 = vmatprep.mubr.f32.mxu0 %v3816_v0  ;;  %v3898_v0 = vadd.f32 %v8367_v51, %v10043_v46 }
 0x31b   : > { %5008 = vst.msk [vmem:[%s8715_s27 + $0xf8] sm:$0xff] %vm4976_vm2, %v4879_v41  ;;  %v4878_v5 = vadd.f32 %v8704_v8, %v4743_v36  ;;  %v3198_v4 = vpop.f32.mrf.mxu1 }
 0x31c   : > { %v3817_v10 = vmax.f32 %v3689_v1, 0.0  ;;  %v3555_v37 = vadd.f32 %v3198_v4, %v10039_v32  ;;  %v10044_v32 = vld [vmem:[#allocation48_spill] sm:$0xff] }
 0x31d   : > { %5007 = vst.msk [vmem:[%s8715_s27 + $0xf0] sm:$0xff] %vm4976_vm2, %v4878_v5  ;;  %v8989_v58 = vpop.f32.mrf.mxu1 }
 0x31e   : > { %v3690_v33 = vadd.f32 %v8564_v57, %v3555_v37  ;;  %v5983_v17 = vpop.f32.mrf.mxu0  ;;  %6054 = vmatmul.mubr.f32.gmra.mxu0 %v3817_v10  ;;  %v3901_v37 = vadd.f32 %v10044_v32, %v8400_v3 }
 0x31f   : > { %v4746_v55 = vadd.f32 %v5983_v17, %v3897_v21  ;;  %v3204_v56 = vpop.f32.mrf.mxu1  ;;  %v10045_v17 = vld [vmem:[#allocation49_spill] sm:$0xff] }
 0x320   : > { %v3818_v40 = vmax.f32 %v3690_v33, 0.0  ;;  %v3556_v31 = vadd.f32 %v3204_v56, %v8182_v16  ;;  %v4234_v20 = vpop.f32.mrf.mxu0  ;;  %v3899_v16 = vadd.f32 %v10042_v45, %v8378_v34  ;;  %v3900_v42 = vadd.f32 %v8389_v50, %v10045_v17  ;;  %v10049_v45 = vld [vmem:[#allocation50_spill] sm:$0xff] }
 0x321   : > { %v4881_v49 = vadd.f32 %v8704_v8, %v4746_v55  ;;  %v4745_v15 = vadd.f32 %v4234_v20, %v3896_v12  ;;  %v8996_v24 = vpop.f32.mrf.mxu1 }
 0x322   : > { %v3691_v43 = vadd.f32 %v8564_v57, %v3556_v31  ;;  %6056 = vmatprep.mubr.f32.mxu0 %v3818_v40 }
 0x323   : > { %5010 = vst.msk [vmem:[%s8715_s27 + $0x108] sm:$0xff] %vm4976_vm2, %v4881_v49  ;;  %v4880_v61 = vadd.f32 %v8704_v8, %v4745_v15  ;;  %v3210_v7 = vpop.f32.mrf.mxu1 }
 0x324   : > { %v3819_v35 = vmax.f32 %v3691_v43, 0.0  ;;  %v3557_v62 = vadd.f32 %v3210_v7, %v8197_v11  ;;  %v10047_v7 = vld [vmem:[#allocation28_spill] sm:$0xff] }
 0x325   : > { %5009 = vst.msk [vmem:[%s8715_s27 + $0x100] sm:$0xff] %vm4976_vm2, %v4880_v61  ;;  %v9007_v23 = vpop.f32.mrf.mxu1 }
 0x326   : > { %v3692_v30 = vadd.f32 %v8564_v57, %v3557_v62  ;;  %v5986_v52 = vpop.f32.mrf.mxu0  ;;  %6057 = vmatmul.mubr.f32.gmra.mxu0 %v3819_v35  ;;  %v9019_v57 = vld [vmem:[%s9656_s5] ss:$0 sm:$0xff] }
 0x327   : > { %v4748_v22 = vadd.f32 %v5986_v52, %v3899_v16  ;;  %v3216_v53 = vpop.f32.mrf.mxu1  ;;  %v10048_v62 = vld [vmem:[#allocation206_spill] sm:$0xff] }
 0x328   : > { %v3820_v6 = vmax.f32 %v3692_v30, 0.0  ;;  %v3558_v11 = vadd.f32 %v3216_v53, %v8212_v27  ;;  %v4244_v41 = vpop.f32.mrf.mxu0  ;;  %v3903_v16 = vadd.f32 %v10049_v45, %v10048_v62 }
 0x329   : > { %v4883_v34 = vadd.f32 %v8704_v8, %v4748_v22  ;;  %v4747_v36 = vadd.f32 %v4244_v41, %v3898_v0  ;;  %v9014_v1 = vpop.f32.mrf.mxu1  ;;  %v10050_v0 = vld [vmem:[#allocation51_spill] sm:$0xff]  ;;  %v10051_v22 = vld [vmem:[#allocation205_spill] sm:$0xff] }
 0x32a   : > { %v3693_v5 = vadd.f32 %v9019_v57, %v3558_v11  ;;  %6059 = vmatprep.mubr.f32.mxu0 %v3820_v6  ;;  %v3902_v53 = vadd.f32 %v10051_v22, %v10050_v0 }
 0x32b   : > { %5012 = vst.msk [vmem:[%s8715_s27 + $0x118] sm:$0xff] %vm4976_vm2, %v4883_v34  ;;  %v4882_v51 = vadd.f32 %v8704_v8, %v4747_v36  ;;  %v3222_v4 = vpop.f32.mrf.mxu1  ;;  %v10052_v34 = vld [vmem:[#allocation31_spill] sm:$0xff] }
 0x32c   : > { %v3821_v27 = vmax.f32 %v3693_v5, 0.0  ;;  %v3559_v10 = vadd.f32 %v3222_v4, %v8225_v9  ;;  %v10046_v9 = vld [vmem:[#allocation25_spill] sm:$0xff] }
 0x32d   : > { %5011 = vst.msk [vmem:[%s8715_s27 + $0x110] sm:$0xff] %vm4976_vm2, %v4882_v51  ;;  %v9030_v29 = vpop.f32.mrf.mxu1 }
 0x32e   : > { %v3694_v21 = vadd.f32 %v9019_v57, %v3559_v10  ;;  %v5989_v33 = vpop.f32.mrf.mxu0  ;;  %6060 = vmatmul.mubr.f32.gmra.mxu0 %v3821_v27 }
 0x32f   : > { %v4750_v12 = vadd.f32 %v5989_v33, %v3901_v37  ;;  %v3228_v55 = vpop.f32.mrf.mxu1  ;;  %v10053_v33 = vld [vmem:[#allocation34_spill] sm:$0xff] }
 0x330   : > { %v3822_v56 = vmax.f32 %v3694_v21, 0.0  ;;  %v3560_v40 = vadd.f32 %v3228_v55, %v10046_v9  ;;  %v4254_v31 = vpop.f32.mrf.mxu0 }
 0x331   : > { %v4885_v3 = vadd.f32 %v8704_v8, %v4750_v12  ;;  %v4749_v20 = vadd.f32 %v4254_v31, %v3900_v42  ;;  %v9037_v49 = vpop.f32.mrf.mxu1  ;;  %v10054_v42 = vld [vmem:[#allocation208_spill] sm:$0xff]  ;;  %v10056_v31 = vld [vmem:[#allocation53_spill] sm:$0xff] }
 0x332   : > { %v3695_v15 = vadd.f32 %v9019_v57, %v3560_v40  ;;  %6062 = vmatprep.mubr.f32.mxu0 %v3822_v56  ;;  %v10055_v12 = vld [vmem:[#allocation52_spill] sm:$0xff] }
 0x333   : > { %5014 = vst.msk [vmem:[%s8715_s27 + $0x128] sm:$0xff] %vm4976_vm2, %v4885_v3  ;;  %v4884_v43 = vadd.f32 %v8704_v8, %v4749_v20  ;;  %v3234_v50 = vpop.f32.mrf.mxu1  ;;  %v3905_v55 = vadd.f32 %v10055_v12, %v10054_v42  ;;  %v10057_v3 = vld [vmem:[#allocation207_spill] sm:$0xff] }
 0x334   : > { %v3823_v61 = vmax.f32 %v3695_v15, 0.0  ;;  %v3561_v35 = vadd.f32 %v3234_v50, %v10047_v7  ;;  %v3904_v20 = vadd.f32 %v10057_v3, %v10056_v31 }
 0x335   : > { %5013 = vst.msk [vmem:[%s8715_s27 + $0x120] sm:$0xff] %vm4976_vm2, %v4884_v43  ;;  %v9048_v30 = vpop.f32.mrf.mxu1 }
 0x336   : > { %v3696_v52 = vadd.f32 %v9019_v57, %v3561_v35  ;;  %v5992_v46 = vpop.f32.mrf.mxu0  ;;  %6063 = vmatmul.mubr.f32.gmra.mxu0 %v3823_v61  ;;  %v10058_v61 = vld [vmem:[#allocation37_spill] sm:$0xff] }
 0x337   : > { %v4752_v6 = vadd.f32 %v5992_v46, %v3903_v16  ;;  %v3240_v11 = vpop.f32.mrf.mxu1 }
 0x338   : > { %v3824_v41 = vmax.f32 %v3696_v52, 0.0  ;;  %v3562_v36 = vadd.f32 %v3240_v11, %v10052_v34  ;;  %v4264_v5 = vpop.f32.mrf.mxu0  ;;  %v10060_v11 = vld [vmem:[#allocation210_spill] sm:$0xff] }
 0x339   : > { %v4887_v51 = vadd.f32 %v8704_v8, %v4752_v6  ;;  %v4751_v4 = vadd.f32 %v4264_v5, %v3902_v53  ;;  %v9055_v27 = vpop.f32.mrf.mxu1  ;;  %v10059_v53 = vld [vmem:[#allocation46_spill] sm:$0xff] }
 0x33a   : > { %v3697_v10 = vadd.f32 %v9019_v57, %v3562_v36  ;;  %6065 = vmatprep.mubr.f32.mxu0 %v3824_v41  ;;  %v10061_v41 = vld [vmem:[#allocation54_spill] sm:$0xff] }
 0x33b   : > { %5016 = vst.msk [vmem:[%s8715_s27 + $0x138] sm:$0xff] %vm4976_vm2, %v4887_v51  ;;  %v4886_v32 = vadd.f32 %v8704_v8, %v4751_v4  ;;  %v3246_v37 = vpop.f32.mrf.mxu1  ;;  %v3907_v34 = vadd.f32 %v10061_v41, %v10060_v11  ;;  %v10062_v4 = vld [vmem:[#allocation55_spill] sm:$0xff] }
 0x33c   : > { %v3825_v21 = vmax.f32 %v3697_v10, 0.0  ;;  %v3563_v17 = vadd.f32 %v3246_v37, %v10053_v33  ;;  %v10063_v10 = vld [vmem:[#allocation209_spill] sm:$0xff]  ;;  %v10070_v41 = vld [vmem:[#allocation203_spill] sm:$0xff] }
 0x33d   : > { %5015 = vst.msk [vmem:[%s8715_s27 + $0x130] sm:$0xff] %vm4976_vm2, %v4886_v32  ;;  %v9066_v56 = vpop.f32.mrf.mxu1  ;;  %v3906_v32 = vadd.f32 %v10063_v10, %v10062_v4 }
 0x33e   : > { %v3698_v9 = vadd.f32 %v9019_v57, %v3563_v17  ;;  %v5995_v40 = vpop.f32.mrf.mxu0  ;;  %6066 = vmatmul.mubr.f32.gmra.mxu0 %v3825_v21  ;;  %v10064_v17 = vld [vmem:[#allocation201_spill] sm:$0xff] }
 0x33f   : > { %v4754_v15 = vadd.f32 %v5995_v40, %v3905_v55  ;;  %v3252_v43 = vpop.f32.mrf.mxu1 }
 0x340   : > { %v3826_v50 = vmax.f32 %v3698_v9, 0.0  ;;  %v3564_v7 = vadd.f32 %v3252_v43, %v10058_v61  ;;  %v4274_v35 = vpop.f32.mrf.mxu0  ;;  %v10065_v43 = vld [vmem:[#allocation202_spill] sm:$0xff]  ;;  %v10066_v61 = vld [vmem:[#allocation212_spill] sm:$0xff] }
 0x341   : > { %v4889_v62 = vadd.f32 %v8704_v8, %v4754_v15  ;;  %v4753_v45 = vadd.f32 %v4274_v35, %v3904_v20  ;;  %v9073_v16 = vpop.f32.mrf.mxu1 }
 0x342   : > { %v3699_v52 = vadd.f32 %v9019_v57, %v3564_v7  ;;  %6068 = vmatprep.mubr.f32.mxu0 %v3826_v50  ;;  %v10067_v7 = vld [vmem:[#allocation56_spill] sm:$0xff] }
 0x343   : > { %5018 = vst.msk [vmem:[%s8715_s27 + $0x148] sm:$0xff] %vm4976_vm2, %v4889_v62  ;;  %v4888_v46 = vadd.f32 %v8704_v8, %v4753_v45  ;;  %v3258_v0 = vpop.f32.mrf.mxu1  ;;  %v3909_v35 = vadd.f32 %v10067_v7, %v10066_v61 }
 0x344   : > { %v3827_v22 = vmax.f32 %v3699_v52, 0.0  ;;  %v3565_v6 = vadd.f32 %v3258_v0, %v10059_v53  ;;  %v10069_v0 = vld [vmem:[#allocation211_spill] sm:$0xff] }
 0x345   : > { %5017 = vst.msk [vmem:[%s8715_s27 + $0x140] sm:$0xff] %vm4976_vm2, %v4888_v46  ;;  %v9084_v36 = vpop.f32.mrf.mxu1  ;;  %v10068_v46 = vld [vmem:[#allocation57_spill] sm:$0xff] }
 0x346   : > { %v3700_v5 = vadd.f32 %v9019_v57, %v3565_v6  ;;  %v5998_v51 = vpop.f32.mrf.mxu0  ;;  %6069 = vmatmul.mubr.f32.gmra.mxu0 %v3827_v22  ;;  %v3908_v22 = vadd.f32 %v10069_v0, %v10068_v46 }
 0x347   : > { %v4756_v37 = vadd.f32 %v5998_v51, %v3907_v34  ;;  %v3264_v21 = vpop.f32.mrf.mxu1 }
 0x348   : > { %v3828_v33 = vmax.f32 %v3700_v5, 0.0  ;;  %v3566_v42 = vadd.f32 %v3264_v21, %v10064_v17  ;;  %v4284_v12 = vpop.f32.mrf.mxu0  ;;  %v10071_v17 = vld [vmem:[#allocation204_spill] sm:$0xff] }
 0x349   : > { %v4891_v55 = vadd.f32 %v8704_v8, %v4756_v37  ;;  %v4755_v9 = vadd.f32 %v4284_v12, %v3906_v32  ;;  %v9091_v40 = vpop.f32.mrf.mxu1  ;;  %v10072_v12 = vld [vmem:[#allocation214_spill] sm:$0xff] }
 0x34a   : > { %v3701_v31 = vadd.f32 %v9019_v57, %v3566_v42  ;;  %6071 = vmatprep.mubr.f32.mxu0 %v3828_v33 }
 0x34b   : > { %5020 = vst.msk [vmem:[%s8715_s27 + $0x158] sm:$0xff] %vm4976_vm2, %v4891_v55  ;;  %v4890_v3 = vadd.f32 %v8704_v8, %v4755_v9  ;;  %v3270_v20 = vpop.f32.mrf.mxu1  ;;  %v10073_v55 = vld [vmem:[#allocation58_spill] sm:$0xff] }
 0x34c   : > { %v3829_v15 = vmax.f32 %v3701_v31, 0.0  ;;  %v3567_v50 = vadd.f32 %v3270_v20, %v10065_v43  ;;  %v3911_v9 = vadd.f32 %v10073_v55, %v10072_v12  ;;  %v10075_v43 = vld [vmem:[#allocation213_spill] sm:$0xff]  ;;  %v10081_v12 = vld [vmem:[#allocation215_spill] sm:$0xff] }
 0x34d   : > { %5019 = vst.msk [vmem:[%s8715_s27 + $0x150] sm:$0xff] %vm4976_vm2, %v4890_v3  ;;  %v9102_v62 = vpop.f32.mrf.mxu1 }
 0x34e   : > { %v3702_v45 = vadd.f32 %v9019_v57, %v3567_v50  ;;  %v6001_v52 = vpop.f32.mrf.mxu0  ;;  %6072 = vmatmul.mubr.f32.gmra.mxu0 %v3829_v15  ;;  %v10074_v15 = vld [vmem:[#allocation59_spill] sm:$0xff] }
 0x34f   : > { %v4758_v53 = vadd.f32 %v6001_v52, %v3909_v35  ;;  %v3276_v6 = vpop.f32.mrf.mxu1  ;;  %v3910_v50 = vadd.f32 %v10075_v43, %v10074_v15 }
 0x350   : > { %v3830_v11 = vmax.f32 %v3702_v45, 0.0  ;;  %v3568_v34 = vadd.f32 %v3276_v6, %v10070_v41  ;;  %v4294_v5 = vpop.f32.mrf.mxu0  ;;  %v10076_v45 = vld [vmem:[#allocation79_spill] sm:$0xff] }
 0x351   : > { %v4893_v51 = vadd.f32 %v8704_v8, %v4758_v53  ;;  %v4757_v4 = vadd.f32 %v4294_v5, %v3908_v22  ;;  %v9109_v10 = vpop.f32.mrf.mxu1  ;;  %v10077_v5 = vld [vmem:[#allocation82_spill] sm:$0xff] }
 0x352   : > { %v3703_v32 = vadd.f32 %v9019_v57, %v3568_v34  ;;  %6074 = vmatprep.mubr.f32.mxu0 %v3830_v11 }
 0x353   : > { %5022 = vst.msk [vmem:[%s8715_s27 + $0x168] sm:$0xff] %vm4976_vm2, %v4893_v51  ;;  %v4892_v37 = vadd.f32 %v8704_v8, %v4757_v4  ;;  %v3282_v21 = vpop.f32.mrf.mxu1  ;;  %v10078_v4 = vld [vmem:[#allocation216_spill] sm:$0xff] }
 0x354   : > { %v3831_v33 = vmax.f32 %v3703_v32, 0.0  ;;  %v3569_v42 = vadd.f32 %v3282_v21, %v10071_v17  ;;  %v10079_v32 = vld [vmem:[#allocation60_spill] sm:$0xff] }
 0x355   : > { %5021 = vst.msk [vmem:[%s8715_s27 + $0x160] sm:$0xff] %vm4976_vm2, %v4892_v37  ;;  %v9120_v31 = vpop.f32.mrf.mxu1  ;;  %v3913_v37 = vadd.f32 %v10079_v32, %v10078_v4  ;;  %v10086_v32 = vld [vmem:[#allocation63_spill] sm:$0xff] }
 0x356   : > { %v3704_v3 = vadd.f32 %v9019_v57, %v3569_v42  ;;  %v6004_v20 = vpop.f32.mrf.mxu0  ;;  %6075 = vmatmul.mubr.f32.gmra.mxu0 %v3831_v33  ;;  %v10080_v42 = vld [vmem:[#allocation61_spill] sm:$0xff] }
 0x357   : > { %v4760_v61 = vadd.f32 %v6004_v20, %v3911_v9  ;;  %v3288_v7 = vpop.f32.mrf.mxu1  ;;  %v3912_v55 = vadd.f32 %v10081_v12, %v10080_v42  ;;  %v10082_v20 = vld [vmem:[#allocation85_spill] sm:$0xff] }
 0x358   : > { %v3832_v35 = vmax.f32 %v3704_v3, 0.0  ;;  %v3570_v52 = vadd.f32 %v3288_v7, %v10076_v45  ;;  %v4304_v46 = vpop.f32.mrf.mxu0 }
 0x359   : > { %v4895_v0 = vadd.f32 %v8704_v8, %v4760_v61  ;;  %v4759_v22 = vadd.f32 %v4304_v46, %v3910_v50  ;;  %v9127_v53 = vpop.f32.mrf.mxu1  ;;  %v9147_v50 = vld [vmem:[%s9657_s6] ss:$0 sm:$0xff] }
 0x35a   : > { %v3705_v6 = vadd.f32 %v9019_v57, %v3570_v52  ;;  %6077 = vmatprep.mubr.f32.mxu0 %v3832_v35 }
 0x35b   : > { %5024 = vst.msk [vmem:[%s8715_s27 + $0x178] sm:$0xff] %vm4976_vm2, %v4895_v0  ;;  %v4894_v11 = vadd.f32 %v8704_v8, %v4759_v22  ;;  %v3294_v41 = vpop.f32.mrf.mxu1  ;;  %v10083_v22 = vld [vmem:[#allocation88_spill] sm:$0xff] }
 0x35c   : > { %v3833_v34 = vmax.f32 %v3705_v6, 0.0  ;;  %v3571_v51 = vadd.f32 %v3294_v41, %v10077_v5  ;;  %v10085_v41 = vld [vmem:[#allocation62_spill] sm:$0xff] }
 0x35d   : > { %5023 = vst.msk [vmem:[%s8715_s27 + $0x170] sm:$0xff] %vm4976_vm2, %v4894_v11  ;;  %v9138_v21 = vpop.f32.mrf.mxu1  ;;  %v10084_v11 = vld [vmem:[#allocation218_spill] sm:$0xff] }
 0x35e   : > { %v3706_v33 = vadd.f32 %v9019_v57, %v3571_v51  ;;  %v6007_v17 = vpop.f32.mrf.mxu0  ;;  %6078 = vmatmul.mubr.f32.gmra.mxu0 %v3833_v34  ;;  %v3915_v34 = vadd.f32 %v10085_v41, %v10084_v11 }
 0x35f   : > { %v4762_v8 = vadd.f32 %v6007_v17, %v3913_v37  ;;  %v3300_v9 = vpop.f32.mrf.mxu1  ;;  %v10087_v37 = vld [vmem:[#allocation217_spill] sm:$0xff] }
 0x360   : > { %v3834_v3 = vmax.f32 %v3706_v33, 0.0  ;;  %v3572_v15 = vadd.f32 %v3300_v9, %v10082_v20  ;;  %v4314_v43 = vpop.f32.mrf.mxu0  ;;  %v3914_v33 = vadd.f32 %v10087_v37, %v10086_v32 }
 0x361   : > { %v4897_v61 = vadd.f32 %v9147_v50, %v4762_v8  ;;  %v4761_v7 = vadd.f32 %v4314_v43, %v3912_v55  ;;  %v9150_v35 = vpop.f32.mrf.mxu1  ;;  %v10088_v55 = vld [vmem:[#allocation91_spill] sm:$0xff] }
 0x362   : > { %v3707_v45 = vadd.f32 %v9019_v57, %v3572_v15  ;;  %6080 = vmatprep.mubr.f32.mxu0 %v3834_v3 }
 0x363   : > { %5026 = vst.msk [vmem:[%s8715_s27 + $0x188] sm:$0xff] %vm4976_vm2, %v4897_v61  ;;  %v4896_v52 = vadd.f32 %v9147_v50, %v4761_v7  ;;  %v3306_v46 = vpop.f32.mrf.mxu1 }
 0x364   : > { %v3835_v0 = vmax.f32 %v3707_v45, 0.0  ;;  %v3573_v6 = vadd.f32 %v3306_v46, %v10083_v22  ;;  %v10091_v22 = vld [vmem:[#allocation64_spill] sm:$0xff] }
 0x365   : > { %5025 = vst.msk [vmem:[%s8715_s27 + $0x180] sm:$0xff] %vm4976_vm2, %v4896_v52  ;;  %v9161_v5 = vpop.f32.mrf.mxu1  ;;  %v10089_v52 = vld [vmem:[#allocation94_spill] sm:$0xff] }
 0x366   : > { %v3708_v51 = vadd.f32 %v9019_v57, %v3573_v6  ;;  %v6010_v4 = vpop.f32.mrf.mxu0  ;;  %6081 = vmatmul.mubr.f32.gmra.mxu0 %v3835_v0  ;;  %v10090_v0 = vld [vmem:[#allocation220_spill] sm:$0xff] }
 0x367   : > { %v4764_v17 = vadd.f32 %v6010_v4, %v3915_v34  ;;  %v3312_v42 = vpop.f32.mrf.mxu1  ;;  %v3917_v6 = vadd.f32 %v10091_v22, %v10090_v0  ;;  %v10093_v4 = vld [vmem:[#allocation219_spill] sm:$0xff]  ;;  %v10097_v0 = vld [vmem:[#allocation66_spill] sm:$0xff] }
 0x368   : > { %v3836_v12 = vmax.f32 %v3708_v51, 0.0  ;;  %v3574_v8 = vadd.f32 %v3312_v42, %v10088_v55  ;;  %v4324_v9 = vpop.f32.mrf.mxu0  ;;  %v10092_v51 = vld [vmem:[#allocation65_spill] sm:$0xff] }
 0x369   : > { %v4899_v3 = vadd.f32 %v9147_v50, %v4764_v17  ;;  %v4763_v20 = vadd.f32 %v4324_v9, %v3914_v33  ;;  %v9168_v15 = vpop.f32.mrf.mxu1  ;;  %v3916_v32 = vadd.f32 %v10093_v4, %v10092_v51  ;;  %v10094_v42 = vld [vmem:[#allocation97_spill] sm:$0xff]  ;;  %v10098_v51 = vld [vmem:[#allocation67_spill] sm:$0xff] }
 0x36a   : > { %v3709_v43 = vadd.f32 %v9019_v57, %v3574_v8  ;;  %6083 = vmatprep.mubr.f32.mxu0 %v3836_v12  ;;  %v10099_v4 = vld [vmem:[#allocation221_spill] sm:$0xff] }
 0x36b   : > { %5028 = vst.msk [vmem:[%s8715_s27 + $0x198] sm:$0xff] %vm4976_vm2, %v4899_v3  ;;  %v4898_v61 = vadd.f32 %v9147_v50, %v4763_v20  ;;  %v3318_v7 = vpop.f32.mrf.mxu1 }
 0x36c   : > { %v3837_v45 = vmax.f32 %v3709_v43, 0.0  ;;  %v3575_v46 = vadd.f32 %v3318_v7, %v10089_v52 }
 0x36d   : > { %5027 = vst.msk [vmem:[%s8715_s27 + $0x190] sm:$0xff] %vm4976_vm2, %v4898_v61  ;;  %v9179_v11 = vpop.f32.mrf.mxu1 }
 0x36e   : > { %v3710_v41 = vadd.f32 %v9019_v57, %v3575_v46  ;;  %v6013_v34 = vpop.f32.mrf.mxu0  ;;  %6084 = vmatmul.mubr.f32.gmra.mxu0 %v3837_v45  ;;  %v10095_v45 = vld [vmem:[#allocation100_spill] sm:$0xff]  ;;  %v10096_v46 = vld [vmem:[#allocation222_spill] sm:$0xff] }
 0x36f   : > { %v4766_v37 = vadd.f32 %v6013_v34, %v3917_v6  ;;  %v3324_v33 = vpop.f32.mrf.mxu1  ;;  %v3919_v22 = vadd.f32 %v10097_v0, %v10096_v46  ;;  %v10102_v0 = vld [vmem:[#allocation224_spill] sm:$0xff] }
 0x370   : > { %v3838_v17 = vmax.f32 %v3710_v41, 0.0  ;;  %v3576_v12 = vadd.f32 %v3324_v33, %v10094_v42  ;;  %v4334_v55 = vpop.f32.mrf.mxu0  ;;  %v10100_v42 = vld [vmem:[#allocation103_spill] sm:$0xff] }
 0x371   : > { %v4901_v8 = vadd.f32 %v9147_v50, %v4766_v37  ;;  %v4765_v9 = vadd.f32 %v4334_v55, %v3916_v32  ;;  %v9186_v3 = vpop.f32.mrf.mxu1  ;;  %v3918_v32 = vadd.f32 %v10099_v4, %v10098_v51 }
 0x372   : > { %v3711_v20 = vadd.f32 %v9019_v57, %v3576_v12  ;;  %6086 = vmatprep.mubr.f32.mxu0 %v3838_v17 }
 0x373   : > { %5030 = vst.msk [vmem:[%s8715_s27 + $0x1a8] sm:$0xff] %vm4976_vm2, %v4901_v8  ;;  %v4900_v43 = vadd.f32 %v9147_v50, %v4765_v9  ;;  %v3330_v61 = vpop.f32.mrf.mxu1 }
 0x374   : > { %v3839_v7 = vmax.f32 %v3711_v20, 0.0  ;;  %v3577_v52 = vadd.f32 %v3330_v61, %v10095_v45 }
 0x375   : > { %5029 = vst.msk [vmem:[%s8715_s27 + $0x1a0] sm:$0xff] %vm4976_vm2, %v4900_v43  ;;  %v9197_v6 = vpop.f32.mrf.mxu1 }
 0x376   : > { %v3712_v41 = vadd.f32 %v9019_v57, %v3577_v52  ;;  %v6016_v34 = vpop.f32.mrf.mxu0  ;;  %6087 = vmatmul.mubr.f32.gmra.mxu0 %v3839_v7  ;;  %v10101_v52 = vld [vmem:[#allocation106_spill] sm:$0xff] }
 0x377   : > { %v4768_v37 = vadd.f32 %v6016_v34, %v3919_v22  ;;  %v3336_v33 = vpop.f32.mrf.mxu1  ;;  %v10103_v22 = vld [vmem:[#allocation68_spill] sm:$0xff] }
 0x378   : > { %v3840_v17 = vmax.f32 %v3712_v41, 0.0  ;;  %v3578_v12 = vadd.f32 %v3336_v33, %v10100_v42  ;;  %v4344_v55 = vpop.f32.mrf.mxu0  ;;  %v3921_v41 = vadd.f32 %v10103_v22, %v10102_v0  ;;  %v10107_v22 = vld [vmem:[#allocation112_spill] sm:$0xff] }
 0x379   : > { %v4903_v8 = vadd.f32 %v9147_v50, %v4768_v37  ;;  %v4767_v9 = vadd.f32 %v4344_v55, %v3918_v32  ;;  %v9204_v20 = vpop.f32.mrf.mxu1  ;;  %v10104_v32 = vld [vmem:[#allocation69_spill] sm:$0xff]  ;;  %v10105_v37 = vld [vmem:[#allocation223_spill] sm:$0xff] }
 0x37a   : > { %v3713_v43 = vadd.f32 %v9019_v57, %v3578_v12  ;;  %6089 = vmatprep.mubr.f32.mxu0 %v3840_v17  ;;  %v3920_v33 = vadd.f32 %v10105_v37, %v10104_v32  ;;  %v10106_v55 = vld [vmem:[#allocation109_spill] sm:$0xff] }
 0x37b   : > { %5032 = vst.msk [vmem:[%s8715_s27 + $0x1b8] sm:$0xff] %vm4976_vm2, %v4903_v8  ;;  %v4902_v61 = vadd.f32 %v9147_v50, %v4767_v9  ;;  %v3342_v7 = vpop.f32.mrf.mxu1 }
 0x37c   : > { %v3841_v45 = vmax.f32 %v3713_v43, 0.0  ;;  %v3579_v46 = vadd.f32 %v3342_v7, %v10101_v52 }
 0x37d   : > { %5031 = vst.msk [vmem:[%s8715_s27 + $0x1b0] sm:$0xff] %vm4976_vm2, %v4902_v61  ;;  %v9215_v34 = vpop.f32.mrf.mxu1 }
 0x37e   : > { %v3714_v51 = vadd.f32 %v9019_v57, %v3579_v46  ;;  %v6019_v4 = vpop.f32.mrf.mxu0  ;;  %6090 = vmatmul.mubr.f32.gmra.mxu0 %v3841_v45 }
 0x37f   : > { %v4770_v17 = vadd.f32 %v6019_v4, %v3921_v41  ;;  %v3348_v42 = vpop.f32.mrf.mxu1  ;;  %v10109_v4 = vld [vmem:[#allocation70_spill] sm:$0xff] }
 0x380   : > { %v3842_v12 = vmax.f32 %v3714_v51, 0.0  ;;  %v3580_v8 = vadd.f32 %v3348_v42, %v10106_v55  ;;  %v4354_v9 = vpop.f32.mrf.mxu0  ;;  %v10108_v51 = vld [vmem:[#allocation226_spill] sm:$0xff]  ;;  %v10111_v42 = vld [vmem:[#allocation71_spill] sm:$0xff] }
 0x381   : > { %v4905_v43 = vadd.f32 %v9147_v50, %v4770_v17  ;;  %v4769_v61 = vadd.f32 %v4354_v9, %v3920_v33  ;;  %v9222_v7 = vpop.f32.mrf.mxu1  ;;  %v3923_v32 = vadd.f32 %v10109_v4, %v10108_v51 }
 0x382   : > { %v3715_v52 = vadd.f32 %v9019_v57, %v3580_v8  ;;  %6092 = vmatprep.mubr.f32.mxu0 %v3842_v12  ;;  %v10112_v12 = vld [vmem:[#allocation225_spill] sm:$0xff] }
 0x383   : > { %5034 = vst.msk [vmem:[%s8715_s27 + $0x1c8] sm:$0xff] %vm4976_vm2, %v4905_v43  ;;  %v4904_v45 = vadd.f32 %v9147_v50, %v4769_v61  ;;  %v3354_v46 = vpop.f32.mrf.mxu1  ;;  %v3922_v55 = vadd.f32 %v10112_v12, %v10111_v42  ;;  %v10113_v61 = vld [vmem:[#allocation115_spill] sm:$0xff]  ;;  %v10116_v12 = vld [vmem:[#allocation72_spill] sm:$0xff] }
 0x384   : > { %v3843_v0 = vmax.f32 %v3715_v52, 0.0  ;;  %v3581_v41 = vadd.f32 %v3354_v46, %v10107_v22 }
 0x385   : > { %5033 = vst.msk [vmem:[%s8715_s27 + $0x1c0] sm:$0xff] %vm4976_vm2, %v4904_v45  ;;  %v9233_v37 = vpop.f32.mrf.mxu1 }
 0x386   : > { %10110 = vst [vmem:[#allocation3_spill] sm:$0xff] %v9233_v37  ;;  %v3716_v33 = vadd.f32 %v9019_v57, %v3581_v41  ;;  %v6022_v17 = vpop.f32.mrf.mxu0  ;;  %6093 = vmatmul.mubr.f32.gmra.mxu0 %v3843_v0 }
 0x387   : > { %v4772_v8 = vadd.f32 %v6022_v17, %v3923_v32  ;;  %v3360_v9 = vpop.f32.mrf.mxu1  ;;  %v10114_v17 = vld [vmem:[#allocation118_spill] sm:$0xff] }
 0x388   : > { %v3844_v43 = vmax.f32 %v3716_v33, 0.0  ;;  %v3582_v52 = vadd.f32 %v3360_v9, %v10113_v61  ;;  %v4364_v46 = vpop.f32.mrf.mxu0  ;;  %v10115_v33 = vld [vmem:[#allocation228_spill] sm:$0xff] }
 0x389   : > { %v4907_v22 = vadd.f32 %v9147_v50, %v4772_v8  ;;  %v4771_v45 = vadd.f32 %v4364_v46, %v3922_v55  ;;  %v9240_v51 = vpop.f32.mrf.mxu1  ;;  %v3925_v9 = vadd.f32 %v10116_v12, %v10115_v33 }
 0x38a   : > { %v3717_v4 = vadd.f32 %v9019_v57, %v3582_v52  ;;  %6095 = vmatprep.mubr.f32.mxu0 %v3844_v43  ;;  %v10118_v43 = vld [vmem:[#allocation73_spill] sm:$0xff]  ;;  %v10119_v52 = vld [vmem:[#allocation227_spill] sm:$0xff] }
 0x38b   : > { %5036 = vst.msk [vmem:[%s8715_s27 + $0x1d8] sm:$0xff] %vm4976_vm2, %v4907_v22  ;;  %v4906_v0 = vadd.f32 %v9147_v50, %v4771_v45  ;;  %v3366_v41 = vpop.f32.mrf.mxu1  ;;  %v3924_v46 = vadd.f32 %v10119_v52, %v10118_v43  ;;  %v10124_v52 = vld [vmem:[#allocation74_spill] sm:$0xff] }
 0x38c   : > { %v3845_v32 = vmax.f32 %v3717_v4, 0.0  ;;  %v3583_v42 = vadd.f32 %v3366_v41, %v10114_v17  ;;  %v10120_v41 = vld [vmem:[#allocation121_spill] sm:$0xff] }
 0x38d   : > { %5035 = vst.msk [vmem:[%s8715_s27 + $0x1d0] sm:$0xff] %vm4976_vm2, %v4906_v0  ;;  %v9251_v55 = vpop.f32.mrf.mxu1 }
 0x38e   : > { %10117 = vst [vmem:[#allocation172_spill] sm:$0xff] %v9251_v55  ;;  %v3718_v8 = vadd.f32 %v9019_v57, %v3583_v42  ;;  %v6025_v61 = vpop.f32.mrf.mxu0  ;;  %6096 = vmatmul.mubr.f32.gmra.mxu0 %v3845_v32 }
 0x38f   : > { %v4774_v22 = vadd.f32 %v6025_v61, %v3925_v9  ;;  %v3372_v45 = vpop.f32.mrf.mxu1  ;;  %v10122_v61 = vld [vmem:[#allocation124_spill] sm:$0xff] }
 0x390   : > { %v3846_v4 = vmax.f32 %v3718_v8, 0.0  ;;  %v3584_v17 = vadd.f32 %v3372_v45, %v10120_v41  ;;  %v4374_v37 = vpop.f32.mrf.mxu0  ;;  %v10123_v8 = vld [vmem:[#allocation174_spill] sm:$0xff]  ;;  %v10127_v41 = vld [vmem:[#allocation229_spill] sm:$0xff] }
 0x391   : > { %v4909_v33 = vadd.f32 %v9147_v50, %v4774_v22  ;;  %v4773_v0 = vadd.f32 %v4374_v37, %v3924_v46  ;;  %v9258_v12 = vpop.f32.mrf.mxu1  ;;  %v3927_v45 = vadd.f32 %v10124_v52, %v10123_v8 }
 0x392   : > { %10121 = vst [vmem:[#allocation171_spill] sm:$0xff] %v9258_v12  ;;  %v3719_v55 = vadd.f32 %v9019_v57, %v3584_v17  ;;  %6098 = vmatprep.mubr.f32.mxu0 %v3846_v4  ;;  %v10126_v4 = vld [vmem:[#allocation75_spill] sm:$0xff] }
 0x393   : > { %5038 = vst.msk [vmem:[%s8715_s27 + $0x1e8] sm:$0xff] %vm4976_vm2, %v4909_v33  ;;  %v4908_v32 = vadd.f32 %v9147_v50, %v4773_v0  ;;  %v3378_v42 = vpop.f32.mrf.mxu1  ;;  %v3926_v17 = vadd.f32 %v10127_v41, %v10126_v4 }
 0x394   : > { %v3847_v9 = vmax.f32 %v3719_v55, 0.0  ;;  %v3585_v43 = vadd.f32 %v3378_v42, %v10122_v61  ;;  %v10128_v42 = vld [vmem:[#allocation127_spill] sm:$0xff] }
 0x395   : > { %5037 = vst.msk [vmem:[%s8715_s27 + $0x1e0] sm:$0xff] %vm4976_vm2, %v4908_v32  ;;  %v9269_v37 = vpop.f32.mrf.mxu1 }
 0x396   : > { %10125 = vst [vmem:[#allocation178_spill] sm:$0xff] %v9269_v37  ;;  %v3720_v46 = vadd.f32 %v9019_v57, %v3585_v43  ;;  %v6028_v22 = vpop.f32.mrf.mxu0  ;;  %6099 = vmatmul.mubr.f32.gmra.mxu0 %v3847_v9 }
 0x397   : > { %v4776_v33 = vadd.f32 %v6028_v22, %v3927_v45  ;;  %v3384_v55 = vpop.f32.mrf.mxu1  ;;  %v10129_v22 = vld [vmem:[#allocation130_spill] sm:$0xff] }
 0x398   : > { %v3848_v0 = vmax.f32 %v3720_v46, 0.0  ;;  %v3586_v61 = vadd.f32 %v3384_v55, %v10128_v42  ;;  %v4384_v12 = vpop.f32.mrf.mxu0  ;;  %v10130_v46 = vld [vmem:[#allocation76_spill] sm:$0xff]  ;;  %v10132_v55 = vld [vmem:[#allocation77_spill] sm:$0xff] }
 0x399   : > { %v4911_v8 = vadd.f32 %v9147_v50, %v4776_v33  ;;  %v4775_v32 = vadd.f32 %v4384_v12, %v3926_v17  ;;  %v9276_v52 = vpop.f32.mrf.mxu1  ;;  %v3929_v41 = vadd.f32 %v10130_v46, %v8739_v48 }
 0x39a   : > { %v3721_v37 = vadd.f32 %v9019_v57, %v3586_v61  ;;  %6101 = vmatprep.mubr.f32.mxu0 %v3848_v0  ;;  %v10133_v0 = vld [vmem:[#allocation2_spill] sm:$0xff] }
 0x39b   : > { %5040 = vst.msk [vmem:[%s8715_s27 + $0x1f8] sm:$0xff] %vm4976_vm2, %v4911_v8  ;;  %v4910_v9 = vadd.f32 %v9147_v50, %v4775_v32  ;;  %v3390_v43 = vpop.f32.mrf.mxu1  ;;  %v3928_v42 = vadd.f32 %v10133_v0, %v10132_v55  ;;  %v10134_v32 = vld [vmem:[#allocation133_spill] sm:$0xff] }
 0x39c   : > { %v3849_v45 = vmax.f32 %v3721_v37, 0.0  ;;  %v3587_v4 = vadd.f32 %v3390_v43, %v10129_v22 }
 0x39d   : > { %5039 = vst.msk [vmem:[%s8715_s27 + $0x1f0] sm:$0xff] %vm4976_vm2, %v4910_v9  ;;  %v9287_v12 = vpop.f32.mrf.mxu1 }
 0x39e   : > { %10131 = vst [vmem:[#allocation4_spill] sm:$0xff] %v9287_v12  ;;  %v3722_v17 = vadd.f32 %v9019_v57, %v3587_v4  ;;  %v6031_v33 = vpop.f32.mrf.mxu0  ;;  %6102 = vmatmul.mubr.f32.gmra.mxu0 %v3849_v45 }
 0x39f   : > { %v4778_v61 = vadd.f32 %v6031_v33, %v3929_v41  ;;  %v3396_v37 = vpop.f32.mrf.mxu1  ;;  %v10135_v33 = vld [vmem:[#allocation136_spill] sm:$0xff] }
 0x3a0   : > { %v3850_v8 = vmax.f32 %v3722_v17, 0.0  ;;  %v3588_v43 = vadd.f32 %v3396_v37, %v10134_v32  ;;  %v4394_v22 = vpop.f32.mrf.mxu0  ;;  %v10136_v17 = vld [vmem:[#allocation78_spill] sm:$0xff] }
 0x3a1   : > { %v4913_v48 = vadd.f32 %v9147_v50, %v4778_v61  ;;  %v4777_v9 = vadd.f32 %v4394_v22, %v3928_v42  ;;  %v9294_v46 = vpop.f32.mrf.mxu1  ;;  %v3931_v0 = vadd.f32 %v10136_v17, %v8773_v60 }
 0x3a2   : > { %v3723_v12 = vadd.f32 %v9019_v57, %v3588_v43  ;;  %6104 = vmatprep.mubr.f32.mxu0 %v3850_v8  ;;  %v10137_v8 = vld [vmem:[#allocation80_spill] sm:$0xff] }
 0x3a3   : > { %5042 = vst.msk [vmem:[%s8715_s27 + $0x208] sm:$0xff] %vm4976_vm2, %v4913_v48  ;;  %v4912_v45 = vadd.f32 %v9147_v50, %v4777_v9  ;;  %v3402_v4 = vpop.f32.mrf.mxu1  ;;  %v3930_v32 = vadd.f32 %v8756_v59, %v10137_v8  ;;  %v10138_v48 = vld [vmem:[#allocation139_spill] sm:$0xff] }
 0x3a4   : > { %v3851_v41 = vmax.f32 %v3723_v12, 0.0  ;;  %v3589_v55 = vadd.f32 %v3402_v4, %v10135_v33 }
 0x3a5   : > { %5041 = vst.msk [vmem:[%s8715_s27 + $0x200] sm:$0xff] %vm4976_vm2, %v4912_v45  ;;  %v9305_v42 = vpop.f32.mrf.mxu1 }
 0x3a6   : > { %v3724_v61 = vadd.f32 %v9019_v57, %v3589_v55  ;;  %v6034_v37 = vpop.f32.mrf.mxu0  ;;  %6105 = vmatmul.mubr.f32.gmra.mxu0 %v3851_v41 }
 0x3a7   : > { %v4780_v43 = vadd.f32 %v6034_v37, %v3931_v0  ;;  %v3408_v12 = vpop.f32.mrf.mxu1  ;;  %v10139_v0 = vld [vmem:[#allocation142_spill] sm:$0xff] }
 0x3a8   : > { %v3852_v22 = vmax.f32 %v3724_v61, 0.0  ;;  %v3590_v9 = vadd.f32 %v3408_v12, %v10138_v48  ;;  %v4404_v4 = vpop.f32.mrf.mxu0  ;;  %v10140_v61 = vld [vmem:[#allocation81_spill] sm:$0xff] }
 0x3a9   : > { %v4915_v60 = vadd.f32 %v9147_v50, %v4780_v43  ;;  %v4779_v45 = vadd.f32 %v4404_v4, %v3930_v32  ;;  %v9312_v33 = vpop.f32.mrf.mxu1  ;;  %v3933_v8 = vadd.f32 %v10140_v61, %v8807_v18 }
 0x3aa   : > { %v3725_v17 = vadd.f32 %v9019_v57, %v3590_v9  ;;  %6107 = vmatprep.mubr.f32.mxu0 %v3852_v22  ;;  %v10141_v22 = vld [vmem:[#allocation83_spill] sm:$0xff] }
 0x3ab   : > { %5044 = vst.msk [vmem:[%s8715_s27 + $0x218] sm:$0xff] %vm4976_vm2, %v4915_v60  ;;  %v4914_v41 = vadd.f32 %v9147_v50, %v4779_v45  ;;  %v3414_v59 = vpop.f32.mrf.mxu1  ;;  %v3932_v48 = vadd.f32 %v8790_v38, %v10141_v22  ;;  %v10142_v45 = vld [vmem:[#allocation145_spill] sm:$0xff] }
 0x3ac   : > { %v3853_v55 = vmax.f32 %v3725_v17, 0.0  ;;  %v3591_v37 = vadd.f32 %v3414_v59, %v10139_v0 }
 0x3ad   : > { %5043 = vst.msk [vmem:[%s8715_s27 + $0x210] sm:$0xff] %vm4976_vm2, %v4914_v41  ;;  %v9323_v32 = vpop.f32.mrf.mxu1 }
 0x3ae   : > { %v3726_v43 = vadd.f32 %v9019_v57, %v3591_v37  ;;  %v6037_v12 = vpop.f32.mrf.mxu0  ;;  %6108 = vmatmul.mubr.f32.gmra.mxu0 %v3853_v55 }
 0x3af   : > { %v4782_v9 = vadd.f32 %v6037_v12, %v3933_v8  ;;  %v3420_v4 = vpop.f32.mrf.mxu1  ;;  %v10143_v8 = vld [vmem:[#allocation148_spill] sm:$0xff] }
 0x3b0   : > { %v3854_v60 = vmax.f32 %v3726_v43, 0.0  ;;  %v3592_v17 = vadd.f32 %v3420_v4, %v10142_v45  ;;  %v4414_v59 = vpop.f32.mrf.mxu0  ;;  %v10144_v43 = vld [vmem:[#allocation84_spill] sm:$0xff] }
 0x3b1   : > { %v4917_v18 = vadd.f32 %v9147_v50, %v4782_v9  ;;  %v4781_v41 = vadd.f32 %v4414_v59, %v3932_v48  ;;  %v9330_v0 = vpop.f32.mrf.mxu1  ;;  %v3935_v22 = vadd.f32 %v10144_v43, %v8841_v14 }
 0x3b2   : > { %v3727_v61 = vadd.f32 %v9019_v57, %v3592_v17  ;;  %6110 = vmatprep.mubr.f32.mxu0 %v3854_v60  ;;  %v10145_v60 = vld [vmem:[#allocation86_spill] sm:$0xff] }
 0x3b3   : > { %5046 = vst.msk [vmem:[%s8715_s27 + $0x228] sm:$0xff] %vm4976_vm2, %v4917_v18  ;;  %v4916_v55 = vadd.f32 %v9147_v50, %v4781_v41  ;;  %v3426_v38 = vpop.f32.mrf.mxu1  ;;  %v3934_v45 = vadd.f32 %v8824_v2, %v10145_v60  ;;  %v10146_v41 = vld [vmem:[#allocation151_spill] sm:$0xff] }
 0x3b4   : > { %v3855_v37 = vmax.f32 %v3727_v61, 0.0  ;;  %v3593_v12 = vadd.f32 %v3426_v38, %v10143_v8 }
 0x3b5   : > { %5045 = vst.msk [vmem:[%s8715_s27 + $0x220] sm:$0xff] %vm4976_vm2, %v4916_v55  ;;  %v9341_v48 = vpop.f32.mrf.mxu1 }
 0x3b6   : > { %v3728_v9 = vadd.f32 %v9019_v57, %v3593_v12  ;;  %v6040_v4 = vpop.f32.mrf.mxu0  ;;  %6111 = vmatmul.mubr.f32.gmra.mxu0 %v3855_v37 }
 0x3b7   : > { %v4784_v17 = vadd.f32 %v6040_v4, %v3935_v22  ;;  %v3432_v59 = vpop.f32.mrf.mxu1  ;;  %v10147_v22 = vld [vmem:[#allocation154_spill] sm:$0xff] }
 0x3b8   : > { %v3856_v18 = vmax.f32 %v3728_v9, 0.0  ;;  %v3594_v61 = vadd.f32 %v3432_v59, %v10146_v41  ;;  %v4424_v38 = vpop.f32.mrf.mxu0  ;;  %v10148_v9 = vld [vmem:[#allocation87_spill] sm:$0xff] }
 0x3b9   : > { %v4919_v14 = vadd.f32 %v9147_v50, %v4784_v17  ;;  %v4783_v55 = vadd.f32 %v4424_v38, %v3934_v45  ;;  %v9348_v8 = vpop.f32.mrf.mxu1  ;;  %v3937_v60 = vadd.f32 %v10148_v9, %v8875_v54 }
 0x3ba   : > { %v3729_v43 = vadd.f32 %v9019_v57, %v3594_v61  ;;  %6113 = vmatprep.mubr.f32.mxu0 %v3856_v18  ;;  %v10149_v18 = vld [vmem:[#allocation89_spill] sm:$0xff] }
 0x3bb   : > { %5048 = vst.msk [vmem:[%s8715_s27 + $0x238] sm:$0xff] %vm4976_vm2, %v4919_v14  ;;  %v4918_v37 = vadd.f32 %v9147_v50, %v4783_v55  ;;  %v3438_v2 = vpop.f32.mrf.mxu1  ;;  %v3936_v41 = vadd.f32 %v8858_v26, %v10149_v18  ;;  %v10150_v55 = vld [vmem:[#allocation157_spill] sm:$0xff] }
 0x3bc   : > { %v3857_v12 = vmax.f32 %v3729_v43, 0.0  ;;  %v3595_v4 = vadd.f32 %v3438_v2, %v10147_v22 }
 0x3bd   : > { %5047 = vst.msk [vmem:[%s8715_s27 + $0x230] sm:$0xff] %vm4976_vm2, %v4918_v37  ;;  %v9359_v45 = vpop.f32.mrf.mxu1 }
 0x3be   : > { %v3730_v17 = vadd.f32 %v9019_v57, %v3595_v4  ;;  %v6043_v59 = vpop.f32.mrf.mxu0  ;;  %6114 = vmatmul.mubr.f32.gmra.mxu0 %v3857_v12 }
 0x3bf   : > { %v4786_v61 = vadd.f32 %v6043_v59, %v3937_v60  ;;  %v3444_v38 = vpop.f32.mrf.mxu1  ;;  %v10151_v60 = vld [vmem:[#allocation160_spill] sm:$0xff] }
 0x3c0   : > { %v3858_v14 = vmax.f32 %v3730_v17, 0.0  ;;  %v3596_v43 = vadd.f32 %v3444_v38, %v10150_v55  ;;  %v4434_v2 = vpop.f32.mrf.mxu0  ;;  %v10152_v17 = vld [vmem:[#allocation90_spill] sm:$0xff] }
 0x3c1   : > { %v4921_v54 = vadd.f32 %v9147_v50, %v4786_v61  ;;  %v4785_v37 = vadd.f32 %v4434_v2, %v3936_v41  ;;  %v9366_v22 = vpop.f32.mrf.mxu1  ;;  %v3939_v18 = vadd.f32 %v10152_v17, %v8911_v63 }
 0x3c2   : > { %v3731_v9 = vadd.f32 %v9019_v57, %v3596_v43  ;;  %6116 = vmatprep.mubr.f32.mxu0 %v3858_v14  ;;  %v10153_v14 = vld [vmem:[#allocation92_spill] sm:$0xff] }
 0x3c3   : > { %5050 = vst.msk [vmem:[%s8715_s27 + $0x248] sm:$0xff] %vm4976_vm2, %v4921_v54  ;;  %v4920_v12 = vadd.f32 %v9147_v50, %v4785_v37  ;;  %v3450_v26 = vpop.f32.mrf.mxu1  ;;  %v3938_v55 = vadd.f32 %v8892_v19, %v10153_v14  ;;  %v10154_v37 = vld [vmem:[#allocation163_spill] sm:$0xff] }
 0x3c4   : > { %v3859_v4 = vmax.f32 %v3731_v9, 0.0  ;;  %v3597_v59 = vadd.f32 %v3450_v26, %v10151_v60 }
 0x3c5   : > { %5049 = vst.msk [vmem:[%s8715_s27 + $0x240] sm:$0xff] %vm4976_vm2, %v4920_v12  ;;  %v9377_v41 = vpop.f32.mrf.mxu1 }
 0x3c6   : > { %v3732_v61 = vadd.f32 %v9019_v57, %v3597_v59  ;;  %v6046_v38 = vpop.f32.mrf.mxu0  ;;  %6117 = vmatmul.mubr.f32.gmra.mxu0 %v3859_v4 }
 0x3c7   : > { %v4788_v43 = vadd.f32 %v6046_v38, %v3939_v18  ;;  %v3456_v2 = vpop.f32.mrf.mxu1  ;;  %v10155_v18 = vld [vmem:[#allocation166_spill] sm:$0xff] }
 0x3c8   : > { %v3860_v54 = vmax.f32 %v3732_v61, 0.0  ;;  %v3598_v9 = vadd.f32 %v3456_v2, %v10154_v37  ;;  %v4444_v26 = vpop.f32.mrf.mxu0  ;;  %v10156_v61 = vld [vmem:[#allocation93_spill] sm:$0xff] }
 0x3c9   : > { %v4923_v63 = vadd.f32 %v9147_v50, %v4788_v43  ;;  %v4787_v12 = vadd.f32 %v4444_v26, %v3938_v55  ;;  %v9384_v60 = vpop.f32.mrf.mxu1  ;;  %v3941_v14 = vadd.f32 %v10156_v61, %v8941_v25 }
 0x3ca   : > { %v3733_v17 = vadd.f32 %v9019_v57, %v3598_v9  ;;  %6119 = vmatprep.mubr.f32.mxu0 %v3860_v54  ;;  %v10157_v54 = vld [vmem:[#allocation95_spill] sm:$0xff] }
 0x3cb   : > { %5052 = vst.msk [vmem:[%s8715_s27 + $0x258] sm:$0xff] %vm4976_vm2, %v4923_v63  ;;  %v4922_v4 = vadd.f32 %v9147_v50, %v4787_v12  ;;  %v3462_v19 = vpop.f32.mrf.mxu1  ;;  %v3940_v37 = vadd.f32 %v8927_v39, %v10157_v54  ;;  %v10158_v12 = vld [vmem:[#allocation169_spill] sm:$0xff]  ;;  %v10159_v39 = vld [vmem:[#allocation96_spill] sm:$0xff] }
 0x3cc   : > { %v3861_v59 = vmax.f32 %v3733_v17, 0.0  ;;  %v3599_v38 = vadd.f32 %v3462_v19, %v10155_v18  ;;  %v3943_v61 = vadd.f32 %v10159_v39, %v8960_v13  ;;  %v10161_v13 = vld [vmem:[#allocation99_spill] sm:$0xff] }
 0x3cd   : > { %5051 = vst.msk [vmem:[%s8715_s27 + $0x250] sm:$0xff] %vm4976_vm2, %v4922_v4  ;;  %v9395_v55 = vpop.f32.mrf.mxu1 }
 0x3ce   : > { %v3734_v43 = vadd.f32 %v9019_v57, %v3599_v38  ;;  %v6049_v2 = vpop.f32.mrf.mxu0  ;;  %6120 = vmatmul.mubr.f32.gmra.mxu0 %v3861_v59 }
 0x3cf   : > { %v4790_v9 = vadd.f32 %v6049_v2, %v3941_v14  ;;  %v3468_v26 = vpop.f32.mrf.mxu1 }
 0x3d0   : > { %v3862_v63 = vmax.f32 %v3734_v43, 0.0  ;;  %v3600_v17 = vadd.f32 %v3468_v26, %v10158_v12  ;;  %v4454_v19 = vpop.f32.mrf.mxu0  ;;  %v10160_v43 = vld [vmem:[#allocation98_spill] sm:$0xff] }
 0x3d1   : > { %v4925_v25 = vadd.f32 %v9147_v50, %v4790_v9  ;;  %v4789_v4 = vadd.f32 %v4454_v19, %v3940_v37  ;;  %v3942_v2 = vadd.f32 %v8953_v47, %v10160_v43 }
 0x3d2   : > { %v3735_v18 = vadd.f32 %v9019_v57, %v3600_v17  ;;  %6122 = vmatprep.mubr.f32.mxu0 %v3862_v63  ;;  %v3945_v63 = vadd.f32 %v10161_v13, %v8978_v28  ;;  %v10162_v17 = vld [vmem:[#allocation101_spill] sm:$0xff] }
 0x3d3   : > { %5054 = vst.msk [vmem:[%s8715_s27 + $0x268] sm:$0xff] %vm4976_vm2, %v4925_v25  ;;  %v4924_v59 = vadd.f32 %v9147_v50, %v4789_v4  ;;  %v3944_v47 = vadd.f32 %v8971_v44, %v10162_v17 }
 0x3d4   : > { %v3863_v38 = vmax.f32 %v3735_v18, 0.0 }
 0x3d5   : > { %5053 = vst.msk [vmem:[%s8715_s27 + $0x260] sm:$0xff] %vm4976_vm2, %v4924_v59 }
 0x3d6   : > { %v6052_v14 = vpop.f32.mrf.mxu0  ;;  %6123 = vmatmul.mubr.f32.gmra.mxu0 %v3863_v38  ;;  %v10163_v38 = vld [vmem:[#allocation102_spill] sm:$0xff] }
 0x3d7   : > { %v4792_v54 = vadd.f32 %v6052_v14, %v3943_v61  ;;  %v3947_v28 = vadd.f32 %v10163_v38, %v8996_v24  ;;  %v10164_v61 = vld [vmem:[#allocation104_spill] sm:$0xff] }
 0x3d8   : > { %v4464_v57 = vpop.f32.mrf.mxu0  ;;  %v3946_v44 = vadd.f32 %v8989_v58, %v10164_v61  ;;  %v10169_v61 = vld [vmem:[#allocation111_spill] sm:$0xff] }
 0x3d9   : > { %v4927_v37 = vadd.f32 %v9147_v50, %v4792_v54  ;;  %v4791_v9 = vadd.f32 %v4464_v57, %v3942_v2 }
 0x3db   : > { %5056 = vst.msk [vmem:[%s8715_s27 + $0x278] sm:$0xff] %vm4976_vm2, %v4927_v37  ;;  %v4926_v26 = vadd.f32 %v9147_v50, %v4791_v9  ;;  %v10165_v37 = vld [vmem:[#allocation105_spill] sm:$0xff] }
 0x3dc   : > { %v3949_v24 = vadd.f32 %v10165_v37, %v9014_v1 }
 0x3dd   : > { %5055 = vst.msk [vmem:[%s8715_s27 + $0x270] sm:$0xff] %vm4976_vm2, %v4926_v26  ;;  %v10166_v26 = vld [vmem:[#allocation107_spill] sm:$0xff] }
 0x3de   : > { %v6055_v12 = vpop.f32.mrf.mxu0  ;;  %v3948_v58 = vadd.f32 %v9007_v23, %v10166_v26  ;;  %v10172_v26 = vld [vmem:[#allocation116_spill] sm:$0xff] }
 0x3df   : > { %v4794_v19 = vadd.f32 %v6055_v12, %v3945_v63 }
 0x3e0   : > { %v4474_v25 = vpop.f32.mrf.mxu0 }
 0x3e1   : > { %v4929_v4 = vadd.f32 %v9147_v50, %v4794_v19  ;;  %v4793_v18 = vadd.f32 %v4474_v25, %v3944_v47  ;;  %v10167_v19 = vld [vmem:[#allocation108_spill] sm:$0xff] }
 0x3e2   : > { %v3951_v1 = vadd.f32 %v10167_v19, %v9037_v49  ;;  %v3953_v49 = vadd.f32 %v10169_v61, %v9055_v27 }
 0x3e3   : > { %5058 = vst.msk [vmem:[%s8715_s27 + $0x288] sm:$0xff] %vm4976_vm2, %v4929_v4  ;;  %v4928_v59 = vadd.f32 %v9147_v50, %v4793_v18  ;;  %v10168_v4 = vld [vmem:[#allocation110_spill] sm:$0xff] }
 0x3e4   : > { %v3950_v23 = vadd.f32 %v9030_v29, %v10168_v4 }
 0x3e5   : > { %5057 = vst.msk [vmem:[%s8715_s27 + $0x280] sm:$0xff] %vm4976_vm2, %v4928_v59 }
 0x3e6   : > { %v6058_v39 = vpop.f32.mrf.mxu0 }
 0x3e7   : > { %v4796_v14 = vadd.f32 %v6058_v39, %v3947_v28 }
 0x3e8   : > { %v4484_v43 = vpop.f32.mrf.mxu0 }
 0x3e9   : > { %v4931_v2 = vadd.f32 %v9147_v50, %v4796_v14  ;;  %v4795_v54 = vadd.f32 %v4484_v43, %v3946_v44  ;;  %v10170_v14 = vld [vmem:[#allocation113_spill] sm:$0xff] }
 0x3ea   : > { %v3952_v29 = vadd.f32 %v9048_v30, %v10170_v14  ;;  %v3954_v30 = vadd.f32 %v9066_v56, %v10172_v26  ;;  %v10179_v26 = vld [vmem:[#allocation126_spill] sm:$0xff] }
 0x3eb   : > { %5060 = vst.msk [vmem:[%s8715_s27 + $0x298] sm:$0xff] %vm4976_vm2, %v4931_v2  ;;  %v4930_v57 = vadd.f32 %v9147_v50, %v4795_v54 }
 0x3ed   : > { %5059 = vst.msk [vmem:[%s8715_s27 + $0x290] sm:$0xff] %vm4976_vm2, %v4930_v57 }
 0x3ee   : > { %v6061_v9 = vpop.f32.mrf.mxu0 }
 0x3ef   : > { %v4798_v13 = vadd.f32 %v6061_v9, %v3949_v24  ;;  %v10171_v24 = vld [vmem:[#allocation114_spill] sm:$0xff] }
 0x3f0   : > { %v4494_v63 = vpop.f32.mrf.mxu0  ;;  %v3955_v27 = vadd.f32 %v10171_v24, %v9073_v16 }
 0x3f1   : > { %v4933_v12 = vadd.f32 %v9147_v50, %v4798_v13  ;;  %v4797_v17 = vadd.f32 %v4494_v63, %v3948_v58 }
 0x3f3   : > { %5062 = vst.msk [vmem:[%s8715_s27 + $0x2a8] sm:$0xff] %vm4976_vm2, %v4933_v12  ;;  %v4932_v47 = vadd.f32 %v9147_v50, %v4797_v17 }
 0x3f5   : > { %5061 = vst.msk [vmem:[%s8715_s27 + $0x2a0] sm:$0xff] %vm4976_vm2, %v4932_v47  ;;  %v10173_v47 = vld [vmem:[#allocation117_spill] sm:$0xff] }
 0x3f6   : > { %v6064_v25 = vpop.f32.mrf.mxu0  ;;  %v3957_v16 = vadd.f32 %v10173_v47, %v9091_v40 }
 0x3f7   : > { %v4800_v18 = vadd.f32 %v6064_v25, %v3951_v1  ;;  %v10174_v1 = vld [vmem:[#allocation119_spill] sm:$0xff] }
 0x3f8   : > { %v4504_v59 = vpop.f32.mrf.mxu0  ;;  %v3956_v56 = vadd.f32 %v9084_v36, %v10174_v1  ;;  %v10182_v1 = vld [vmem:[#allocation131_spill] sm:$0xff] }
 0x3f9   : > { %v4935_v38 = vadd.f32 %v9147_v50, %v4800_v18  ;;  %v4799_v28 = vadd.f32 %v4504_v59, %v3950_v23 }
 0x3fb   : > { %5064 = vst.msk [vmem:[%s8715_s27 + $0x2b8] sm:$0xff] %vm4976_vm2, %v4935_v38  ;;  %v4934_v39 = vadd.f32 %v9147_v50, %v4799_v28  ;;  %v10175_v38 = vld [vmem:[#allocation120_spill] sm:$0xff] }
 0x3fc   : > { %v3959_v40 = vadd.f32 %v10175_v38, %v9109_v10 }
 0x3fd   : > { %5063 = vst.msk [vmem:[%s8715_s27 + $0x2b0] sm:$0xff] %vm4976_vm2, %v4934_v39  ;;  %v10176_v39 = vld [vmem:[#allocation122_spill] sm:$0xff] }
 0x3fe   : > { %v6067_v44 = vpop.f32.mrf.mxu0  ;;  %v3958_v36 = vadd.f32 %v9102_v62, %v10176_v39 }
 0x3ff   : > { %v4802_v43 = vadd.f32 %v6067_v44, %v3953_v49 }
 0x400   : > { %v4514_v2 = vpop.f32.mrf.mxu0 }
 0x401   : > { %v4937_v54 = vadd.f32 %v9147_v50, %v4802_v43  ;;  %v4801_v57 = vadd.f32 %v4514_v2, %v3952_v29  ;;  %v10177_v43 = vld [vmem:[#allocation123_spill] sm:$0xff] }
 0x402   : > { %v3961_v10 = vadd.f32 %v10177_v43, %v9127_v53  ;;  %v3963_v53 = vadd.f32 %v10179_v26, %v9150_v35 }
 0x403   : > { %5066 = vst.msk [vmem:[%s8715_s27 + $0x2c8] sm:$0xff] %vm4976_vm2, %v4937_v54  ;;  %v4936_v37 = vadd.f32 %v9147_v50, %v4801_v57  ;;  %v10178_v54 = vld [vmem:[#allocation125_spill] sm:$0xff] }
 0x404   : > { %v3960_v62 = vadd.f32 %v9120_v31, %v10178_v54 }
 0x405   : > { %5065 = vst.msk [vmem:[%s8715_s27 + $0x2c0] sm:$0xff] %vm4976_vm2, %v4936_v37 }
 0x406   : > { %v6070_v9 = vpop.f32.mrf.mxu0 }
 0x407   : > { %v4804_v58 = vadd.f32 %v6070_v9, %v3955_v27 }
 0x408   : > { %v4524_v13 = vpop.f32.mrf.mxu0 }
 0x409   : > { %v4939_v63 = vadd.f32 %v9147_v50, %v4804_v58  ;;  %v4803_v12 = vadd.f32 %v4524_v13, %v3954_v30  ;;  %v10180_v58 = vld [vmem:[#allocation128_spill] sm:$0xff] }
 0x40a   : > { %v3962_v31 = vadd.f32 %v9138_v21, %v10180_v58  ;;  %v3964_v21 = vadd.f32 %v9161_v5, %v10182_v1  ;;  %v10189_v58 = vld [vmem:[#allocation141_spill] sm:$0xff]  ;;  %v10193_v1 = vld [vmem:[#allocation144_spill] sm:$0xff] }
 0x40b   : > { %5068 = vst.msk [vmem:[%s8715_s27 + $0x2d8] sm:$0xff] %vm4976_vm2, %v4939_v63  ;;  %v4938_v17 = vadd.f32 %v9147_v50, %v4803_v12 }
 0x40d   : > { %5067 = vst.msk [vmem:[%s8715_s27 + $0x2d0] sm:$0xff] %vm4976_vm2, %v4938_v17 }
 0x40e   : > { %v6073_v19 = vpop.f32.mrf.mxu0 }
 0x40f   : > { %v4806_v25 = vadd.f32 %v6073_v19, %v3957_v16  ;;  %v10181_v16 = vld [vmem:[#allocation129_spill] sm:$0xff] }
 0x410   : > { %v4534_v4 = vpop.f32.mrf.mxu0  ;;  %v3965_v35 = vadd.f32 %v10181_v16, %v9168_v15 }
 0x411   : > { %v4941_v23 = vadd.f32 %v9147_v50, %v4806_v25  ;;  %v4805_v18 = vadd.f32 %v4534_v4, %v3956_v56 }
 0x413   : > { %5070 = vst.msk [vmem:[%s8715_s27 + $0x2e8] sm:$0xff] %vm4976_vm2, %v4941_v23  ;;  %v4940_v59 = vadd.f32 %v9147_v50, %v4805_v18 }
 0x415   : > { %5069 = vst.msk [vmem:[%s8715_s27 + $0x2e0] sm:$0xff] %vm4976_vm2, %v4940_v59  ;;  %v10183_v59 = vld [vmem:[#allocation132_spill] sm:$0xff] }
 0x416   : > { %v6076_v28 = vpop.f32.mrf.mxu0  ;;  %v3967_v15 = vadd.f32 %v10183_v59, %v9186_v3 }
 0x417   : > { %v4808_v61 = vadd.f32 %v6076_v28, %v3959_v40  ;;  %v10184_v40 = vld [vmem:[#allocation134_spill] sm:$0xff] }
 0x418   : > { %v4544_v49 = vpop.f32.mrf.mxu0  ;;  %v3966_v5 = vadd.f32 %v9179_v11, %v10184_v40  ;;  %v10196_v40 = vld [vmem:[#allocation147_spill] sm:$0xff] }
 0x419   : > { %v4943_v44 = vadd.f32 %v9147_v50, %v4808_v61  ;;  %v4807_v14 = vadd.f32 %v4544_v49, %v3958_v36 }
 0x41b   : > { %5072 = vst.msk [vmem:[%s8715_s27 + $0x2f8] sm:$0xff] %vm4976_vm2, %v4943_v44  ;;  %v4942_v29 = vadd.f32 %v9147_v50, %v4807_v14  ;;  %v10185_v44 = vld [vmem:[#allocation135_spill] sm:$0xff] }
 0x41c   : > { %v3969_v3 = vadd.f32 %v10185_v44, %v9204_v20 }
 0x41d   : > { %5071 = vst.msk [vmem:[%s8715_s27 + $0x2f0] sm:$0xff] %vm4976_vm2, %v4942_v29  ;;  %v10186_v29 = vld [vmem:[#allocation137_spill] sm:$0xff] }
 0x41e   : > { %v6079_v2 = vpop.f32.mrf.mxu0  ;;  %v3968_v11 = vadd.f32 %v9197_v6, %v10186_v29 }
 0x41f   : > { %v4810_v57 = vadd.f32 %v6079_v2, %v3961_v10 }
 0x420   : > { %v4554_v37 = vpop.f32.mrf.mxu0 }
 0x421   : > { %v4945_v24 = vadd.f32 %v9147_v50, %v4810_v57  ;;  %v4809_v27 = vadd.f32 %v4554_v37, %v3960_v62  ;;  %v10187_v57 = vld [vmem:[#allocation138_spill] sm:$0xff] }
 0x422   : > { %v3971_v20 = vadd.f32 %v10187_v57, %v9222_v7  ;;  %v3973_v7 = vadd.f32 %v10189_v58, %v9240_v51  ;;  %v6173_v58 = vld [vmem:[%s9657_s6] ss:$0 sm:$0xff] }
 0x423   : > { %5074 = vst.msk [vmem:[%s8715_s27 + $0x308] sm:$0xff] %vm4976_vm2, %v4945_v24  ;;  %v4944_v9 = vadd.f32 %v9147_v50, %v4809_v27  ;;  %v10188_v24 = vld [vmem:[#allocation140_spill] sm:$0xff] }
 0x424   : > { %v3970_v6 = vadd.f32 %v9215_v34, %v10188_v24 }
 0x425   : > { %5073 = vst.msk [vmem:[%s8715_s27 + $0x300] sm:$0xff] %vm4976_vm2, %v4944_v9 }
 0x426   : > { %v6082_v30 = vpop.f32.mrf.mxu0 }
 0x427   : > { %v4812_v13 = vadd.f32 %v6082_v30, %v3963_v53 }
 0x428   : > { %v4564_v63 = vpop.f32.mrf.mxu0 }
 0x429   : > { %v4947_v12 = vadd.f32 %v9147_v50, %v4812_v13  ;;  %v4811_v17 = vadd.f32 %v4564_v63, %v3962_v31  ;;  %v10190_v13 = vld [vmem:[#allocation143_spill] sm:$0xff] }
 0x42a   : > { %v10191_v63 = vld [vmem:[#allocation3_spill] sm:$0xff] }
 0x42b   : > { %5076 = vst.msk [vmem:[%s8715_s27 + $0x318] sm:$0xff] %vm4976_vm2, %v4947_v12  ;;  %v4946_v47 = vadd.f32 %v9147_v50, %v4811_v17  ;;  %v3972_v34 = vadd.f32 %v10191_v63, %v10190_v13 }
 0x42d   : > { %5075 = vst.msk [vmem:[%s8715_s27 + $0x310] sm:$0xff] %vm4976_vm2, %v4946_v47 }
 0x42e   : > { %v6085_v19 = vpop.f32.mrf.mxu0 }
 0x42f   : > { %v4814_v56 = vadd.f32 %v6085_v19, %v3965_v35  ;;  %v10192_v19 = vld [vmem:[#allocation171_spill] sm:$0xff] }
 0x430   : > { %v4574_v25 = vpop.f32.mrf.mxu0  ;;  %v3975_v51 = vadd.f32 %v10193_v1, %v10192_v19  ;;  %v10206_v19 = vld [vmem:[#allocation159_spill] sm:$0xff] }
 0x431   : > { %v4949_v4 = vadd.f32 %v9147_v50, %v4814_v56  ;;  %v4813_v23 = vadd.f32 %v4574_v25, %v3964_v21  ;;  %v10194_v56 = vld [vmem:[#allocation146_spill] sm:$0xff]  ;;  %v10195_v25 = vld [vmem:[#allocation172_spill] sm:$0xff]  ;;  %v3985_v1 = vadd.f32 %v10206_v19, %v9348_v8 }
 0x433   : > { %5078 = vst.msk [vmem:[%s8715_s27 + $0x328] sm:$0xff] %vm4976_vm2, %v4949_v4  ;;  %v4948_v18 = vadd.f32 %v9147_v50, %v4813_v23  ;;  %v3974_v4 = vadd.f32 %v10195_v25, %v10194_v56 }
 0x435   : > { %5077 = vst.msk [vmem:[%s8715_s27 + $0x320] sm:$0xff] %vm4976_vm2, %v4948_v18 }
 0x436   : > { %v6088_v38 = vpop.f32.mrf.mxu0 }
 0x437   : > { %v4816_v28 = vadd.f32 %v6088_v38, %v3967_v15 }
 0x438   : > { %v4584_v39 = vpop.f32.mrf.mxu0 }
 0x439   : > { %v4951_v36 = vadd.f32 %v9147_v50, %v4816_v28  ;;  %v4815_v61 = vadd.f32 %v4584_v39, %v3966_v5  ;;  %v3977_v5 = vadd.f32 %v10196_v40, %v9276_v52  ;;  %v10197_v39 = vld [vmem:[#allocation149_spill] sm:$0xff] }
 0x43b   : > { %5080 = vst.msk [vmem:[%s8715_s27 + $0x338] sm:$0xff] %vm4976_vm2, %v4951_v36  ;;  %v4950_v49 = vadd.f32 %v9147_v50, %v4815_v61  ;;  %v10198_v36 = vld [vmem:[#allocation178_spill] sm:$0xff] }
 0x43c   : > { %v3976_v61 = vadd.f32 %v10198_v36, %v10197_v39  ;;  %v10210_v36 = vld [vmem:[#allocation165_spill] sm:$0xff] }
 0x43d   : > { %5079 = vst.msk [vmem:[%s8715_s27 + $0x330] sm:$0xff] %vm4976_vm2, %v4950_v49 }
 0x43e   : > { %v6091_v14 = vpop.f32.mrf.mxu0 }
 0x43f   : > { %v4818_v43 = vadd.f32 %v6091_v14, %v3969_v3 }
 0x440   : > { %v4594_v10 = vpop.f32.mrf.mxu0 }
 0x441   : > { %v4953_v2 = vadd.f32 %v9147_v50, %v4818_v43  ;;  %v4817_v54 = vadd.f32 %v4594_v10, %v3968_v11  ;;  %v10199_v11 = vld [vmem:[#allocation150_spill] sm:$0xff]  ;;  %v10200_v10 = vld [vmem:[#allocation152_spill] sm:$0xff] }
 0x442   : > { %v3979_v52 = vadd.f32 %v10199_v11, %v9294_v46  ;;  %v3470_v11 = vpop.f32.mrf.mxu1 }
 0x443   : > { %5082 = vst.msk [vmem:[%s8715_s27 + $0x348] sm:$0xff] %vm4976_vm2, %v4953_v2  ;;  %v4952_v62 = vadd.f32 %v9147_v50, %v4817_v54  ;;  %v10201_v2 = vld [vmem:[#allocation4_spill] sm:$0xff] }
 0x444   : > { %v3978_v54 = vadd.f32 %v10201_v2, %v10200_v10  ;;  %v10213_v2 = vld [vmem:[#allocation170_spill] sm:$0xff] }
 0x445   : > { %5081 = vst.msk [vmem:[%s8715_s27 + $0x340] sm:$0xff] %vm4976_vm2, %v4952_v62 }
 0x446   : > { %v6094_v37 = vpop.f32.mrf.mxu0 }
 0x447   : > { %v4820_v27 = vadd.f32 %v6094_v37, %v3971_v20 }
 0x448   : > { %v4604_v9 = vpop.f32.mrf.mxu0 }
 0x449   : > { %v4955_v26 = vadd.f32 %v9147_v50, %v4820_v27  ;;  %v4819_v53 = vadd.f32 %v4604_v9, %v3970_v6  ;;  %v10202_v6 = vld [vmem:[#allocation153_spill] sm:$0xff]  ;;  %v10203_v9 = vld [vmem:[#allocation155_spill] sm:$0xff] }
 0x44a   : > { %v3981_v46 = vadd.f32 %v10202_v6, %v9312_v33  ;;  %v10204_v33 = vld [vmem:[#allocation156_spill] sm:$0xff] }
 0x44b   : > { %5084 = vst.msk [vmem:[%s8715_s27 + $0x358] sm:$0xff] %vm4976_vm2, %v4955_v26  ;;  %v4954_v30 = vadd.f32 %v9147_v50, %v4819_v53  ;;  %v3980_v26 = vadd.f32 %v9305_v42, %v10203_v9  ;;  %v3983_v13 = vadd.f32 %v10204_v33, %v9330_v0  ;;  %v10205_v42 = vld [vmem:[#allocation158_spill] sm:$0xff] }
 0x44d   : > { %5083 = vst.msk [vmem:[%s8715_s27 + $0x350] sm:$0xff] %vm4976_vm2, %v4954_v30 }
 0x44e   : > { %v6097_v31 = vpop.f32.mrf.mxu0 }
 0x44f   : > { %v4822_v12 = vadd.f32 %v6097_v31, %v3973_v7 }
 0x450   : > { %v4614_v17 = vpop.f32.mrf.mxu0 }
 0x451   : > { %v4957_v47 = vadd.f32 %v9147_v50, %v4822_v12  ;;  %v4821_v16 = vadd.f32 %v4614_v17, %v3972_v34  ;;  %v3982_v34 = vadd.f32 %v9323_v32, %v10205_v42 }
 0x453   : > { %5086 = vst.msk [vmem:[%s8715_s27 + $0x368] sm:$0xff] %vm4976_vm2, %v4957_v47  ;;  %v4956_v35 = vadd.f32 %v9147_v50, %v4821_v16 }
 0x455   : > { %5085 = vst.msk [vmem:[%s8715_s27 + $0x360] sm:$0xff] %vm4976_vm2, %v4956_v35 }
 0x456   : > { %v6100_v21 = vpop.f32.mrf.mxu0 }
 0x457   : > { %v4824_v23 = vadd.f32 %v6100_v21, %v3975_v51  ;;  %v10207_v51 = vld [vmem:[#allocation161_spill] sm:$0xff] }
 0x458   : > { %v4624_v18 = vpop.f32.mrf.mxu0  ;;  %v3984_v21 = vadd.f32 %v9341_v48, %v10207_v51 }
 0x459   : > { %v4959_v59 = vadd.f32 %v9147_v50, %v4824_v23  ;;  %v4823_v15 = vadd.f32 %v4624_v18, %v3974_v4  ;;  %v10208_v18 = vld [vmem:[#allocation162_spill] sm:$0xff] }
 0x45b   : > { %5088 = vst.msk [vmem:[%s8715_s27 + $0x378] sm:$0xff] %vm4976_vm2, %v4959_v59  ;;  %v4958_v38 = vadd.f32 %v9147_v50, %v4823_v15  ;;  %v3987_v59 = vadd.f32 %v10208_v18, %v9366_v22  ;;  %v10209_v15 = vld [vmem:[#allocation164_spill] sm:$0xff] }
 0x45d   : > { %5087 = vst.msk [vmem:[%s8715_s27 + $0x370] sm:$0xff] %vm4976_vm2, %v4958_v38  ;;  %v3986_v38 = vadd.f32 %v9359_v45, %v10209_v15 }
 0x45e   : > { %v6103_v28 = vpop.f32.mrf.mxu0 }
 0x45f   : > { %v4826_v49 = vadd.f32 %v6103_v28, %v3977_v5 }
 0x460   : > { %v4634_v44 = vpop.f32.mrf.mxu0 }
 0x461   : > { %v4961_v3 = vadd.f32 %v9147_v50, %v4826_v49  ;;  %v4825_v14 = vadd.f32 %v4634_v44, %v3976_v61  ;;  %v3989_v61 = vadd.f32 %v10210_v36, %v9384_v60  ;;  %v10211_v49 = vld [vmem:[#allocation167_spill] sm:$0xff] }
 0x462   : > { %v3988_v44 = vadd.f32 %v9377_v41, %v10211_v49 }
 0x463   : > { %5090 = vst.msk [vmem:[%s8715_s27 + $0x388] sm:$0xff] %vm4976_vm2, %v4961_v3  ;;  %v4960_v29 = vadd.f32 %v9147_v50, %v4825_v14 }
 0x465   : > { %5089 = vst.msk [vmem:[%s8715_s27 + $0x380] sm:$0xff] %vm4976_vm2, %v4960_v29 }
 0x466   : > { %v6106_v43 = vpop.f32.mrf.mxu0 }
 0x467   : > { %v4828_v62 = vadd.f32 %v6106_v43, %v3979_v52  ;;  %v10212_v43 = vld [vmem:[#allocation168_spill] sm:$0xff] }
 0x468   : > { %v4644_v57 = vpop.f32.mrf.mxu0  ;;  %v3991_v10 = vadd.f32 %v10212_v43, %v3470_v11 }
 0x469   : > { %v4963_v20 = vadd.f32 %v9147_v50, %v4828_v62  ;;  %v4827_v37 = vadd.f32 %v4644_v57, %v3978_v54  ;;  %v3990_v54 = vadd.f32 %v9395_v55, %v10213_v2 }
 0x46b   : > { %5092 = vst.msk [vmem:[%s8715_s27 + $0x398] sm:$0xff] %vm4976_vm2, %v4963_v20  ;;  %v4962_v24 = vadd.f32 %v9147_v50, %v4827_v37 }
 0x46d   : > { %5091 = vst.msk [vmem:[%s8715_s27 + $0x390] sm:$0xff] %vm4976_vm2, %v4962_v24 }
 0x46e   : > { %v6109_v27 = vpop.f32.mrf.mxu0 }
 0x46f   : > { %v4830_v53 = vadd.f32 %v6109_v27, %v3981_v46 }
 0x470   : > { %v4654_v30 = vpop.f32.mrf.mxu0 }
 0x471   : > { %v4965_v7 = vadd.f32 %v6173_v58, %v4830_v53  ;;  %v4829_v31 = vadd.f32 %v4654_v30, %v3980_v26 }
 0x473   : > { %5094 = vst.msk [vmem:[%s8715_s27 + $0x3a8] sm:$0xff] %vm4976_vm2, %v4965_v7  ;;  %v4964_v50 = vadd.f32 %v6173_v58, %v4829_v31 }
 0x475   : > { %5093 = vst.msk [vmem:[%s8715_s27 + $0x3a0] sm:$0xff] %vm4976_vm2, %v4964_v50 }
 0x476   : > { %v6112_v63 = vpop.f32.mrf.mxu0 }
 0x477   : > { %v4832_v12 = vadd.f32 %v6112_v63, %v3983_v13 }
 0x478   : > { %v4664_v17 = vpop.f32.mrf.mxu0 }
 0x479   : > { %v4967_v47 = vadd.f32 %v6173_v58, %v4832_v12  ;;  %v4831_v16 = vadd.f32 %v4664_v17, %v3982_v34 }
 0x47b   : > { %5096 = vst.msk [vmem:[%s8715_s27 + $0x3b8] sm:$0xff] %vm4976_vm2, %v4967_v47  ;;  %v4966_v35 = vadd.f32 %v6173_v58, %v4831_v16 }
 0x47d   : > { %5095 = vst.msk [vmem:[%s8715_s27 + $0x3b0] sm:$0xff] %vm4976_vm2, %v4966_v35 }
 0x47e   : > { %v6115_v0 = vpop.f32.mrf.mxu0 }
 0x47f   : > { %v4834_v56 = vadd.f32 %v6115_v0, %v3985_v1 }
 0x480   : > { %v4674_v32 = vpop.f32.mrf.mxu0 }
 0x481   : > { %v4969_v25 = vadd.f32 %v6173_v58, %v4834_v56  ;;  %v4833_v4 = vadd.f32 %v4674_v32, %v3984_v21 }
 0x483   : > { %5098 = vst.msk [vmem:[%s8715_s27 + $0x3c8] sm:$0xff] %vm4976_vm2, %v4969_v25  ;;  %v4968_v23 = vadd.f32 %v6173_v58, %v4833_v4 }
 0x485   : > { %5097 = vst.msk [vmem:[%s8715_s27 + $0x3c0] sm:$0xff] %vm4976_vm2, %v4968_v23 }
 0x486   : > { %v6118_v8 = vpop.f32.mrf.mxu0 }
 0x487   : > { %v4836_v40 = vadd.f32 %v6118_v8, %v3987_v59 }
 0x488   : > { %v4684_v48 = vpop.f32.mrf.mxu0 }
 0x489   : > { %v4971_v5 = vadd.f32 %v6173_v58, %v4836_v40  ;;  %v4835_v28 = vadd.f32 %v4684_v48, %v3986_v38 }
 0x48b   : > { %5100 = vst.msk [vmem:[%s8715_s27 + $0x3d8] sm:$0xff] %vm4976_vm2, %v4971_v5  ;;  %v4970_v39 = vadd.f32 %v6173_v58, %v4835_v28 }
 0x48d   : > { %5099 = vst.msk [vmem:[%s8715_s27 + $0x3d0] sm:$0xff] %vm4976_vm2, %v4970_v39 }
 0x48e   : > { %v6121_v22 = vpop.f32.mrf.mxu0 }
 0x48f   : > { %v4838_v45 = vadd.f32 %v6121_v22, %v3989_v61 }
 0x490   : > { %v4694_v3 = vpop.f32.mrf.mxu0 }
 0x491   : > { %v4973_v14 = vadd.f32 %v6173_v58, %v4838_v45  ;;  %v4837_v29 = vadd.f32 %v4694_v3, %v3988_v44 }
 0x493   : > { %5102 = vst.msk [vmem:[%s8715_s27 + $0x3e8] sm:$0xff] %vm4976_vm2, %v4973_v14  ;;  %v4972_v52 = vadd.f32 %v6173_v58, %v4837_v29 }
 0x495   : > { %5101 = vst.msk [vmem:[%s8715_s27 + $0x3e0] sm:$0xff] %vm4976_vm2, %v4972_v52 }
 0x496   : > { %v6124_v60 = vpop.f32.mrf.mxu0 }
 0x497   : > { %v4840_v62 = vadd.f32 %v6124_v60, %v3991_v10 }
 0x498   : > { %v4704_v41 = vpop.f32.mrf.mxu0 }
 0x499   : > { %v4975_v57 = vadd.f32 %v6173_v58, %v4840_v62  ;;  %v4839_v20 = vadd.f32 %v4704_v41, %v3990_v54 }
 0x49b   : > { %5104 = vst.msk [vmem:[%s8715_s27 + $0x3f8] sm:$0xff] %vm4976_vm2, %v4975_v57  ;;  %v4974_v37 = vadd.f32 %v6173_v58, %v4839_v20 }
 0x49d   : > { %5103 = vst.msk [vmem:[%s8715_s27 + $0x3f0] sm:$0xff] %vm4976_vm2, %v4974_v37 }
 0x49e PF: > { %s17_s24 = sadd.s32 1, %s6180_s24  }
 0x49f   : > { %p14_p4 = scmp.ge.s32.totalorder %s17_s24, 5  }
 0x4a1   :  { %16 = sbr.rel (!%p14_p4) target bundleno = 1 (0x1), region = 78 }

</bundles_post_ra>
